<compile_context>
chip_gen: v5e
topology: v5e:2x2
jax: 0.10.0
libtpu: 0.0.40
codegen_flags: <defaults>
</compile_context>

<pallas_src>
import jax
import jax.numpy as jnp
from jax.experimental import pallas as pl
from jax.experimental.pallas import tpu as pltpu

CFG = dict(vocab=100, emb=32, hidden=32, layers=2, n_authors=5, n_categories=7)
_EPS = 1e-5       # PyTorch LayerNorm default
_OUT_PAD = 128    # lane-dense padded logits width (NA+NC real columns)


# ----------------------------------------------------------------------------
# Fused forward kernel: one grid step == one tile of Bt batch rows.
# Gate lane layout of every fused (.., 8H) tensor: [i_f,i_b,f_f,f_b,g_f,g_b,o_f,o_b]
# ----------------------------------------------------------------------------
def _bilstm_forward_kernel(emb_ref,                          # (S, Bt, E)
                           wih0_ref, whh0_ref, b0_ref,       # (E,8H) (2H,8H) (1,8H)
                           wih1_ref, whh1_ref, b1_ref,       # (2H,8H) (2H,8H) (1,8H)
                           wattn_ref, battn_ref,             # (1,2H) (1,1)
                           hw1_ref, hb1_ref, hg_ref, hbe_ref,  # (2H,2H) (1,2H) x3
                           hw2_ref, hb2_ref,                 # (2H,OUT_PAD) (1,OUT_PAD)
                           out_ref):                         # (Bt, OUT_PAD)
    S, Bt, _ = emb_ref.shape
    H2 = whh0_ref.shape[0]          # 2H (fused fwd|bwd hidden)
    H = H2 // 2
    G = 4 * H2                      # 8H fused gate width

    # Hoisted lane masks (constant across layers/steps).
    lane = jax.lax.broadcasted_iota(jnp.int32, (1, G), 1)
    fwd_mask = (lane % H2) < H                    # lanes belonging to fwd direction
    g_mask = (lane >= 2 * H2) & (lane < 3 * H2)   # cell-candidate (tanh) lanes

    x_seq = emb_ref[...]                          # (S, Bt, E) layer-0 input

    for wih_ref, whh_ref, b_ref in ((wih0_ref, whh0_ref, b0_ref),
                                    (wih1_ref, whh1_ref, b1_ref)):
        in_dim = wih_ref.shape[0]
        whh = whh_ref[...]                        # (2H, 8H) block-diag fwd/bwd
        # Fused hoisted input projection (both directions, all timesteps):
        # one (S*Bt, in) @ (in, 8H) MXU pass.
        gx = jnp.dot(x_seq.reshape(S * Bt, in_dim), wih_ref[...],
                     preferred_element_type=jnp.float32)
        gx = gx.reshape(S, Bt, G) + b_ref[...]    # (S, Bt, 8H)

        h = jnp.zeros((Bt, H2), jnp.float32)      # [h_fwd | h_bwd]
        c = jnp.zeros((Bt, H2), jnp.float32)
        hs = []
        # TODO(synk): if S grows beyond ~16, switch to lax.fori_loop + pl.ds.
        for s in range(S):                        # unrolled, both directions/step
            # fwd lanes take timestep s, bwd lanes take timestep S-1-s.
            gx_s = jnp.where(fwd_mask, gx[s], gx[S - 1 - s])          # (Bt, 8H)
            gates = gx_s + jnp.dot(h, whh,
                                   preferred_element_type=jnp.float32)
            sig = jax.nn.sigmoid(gates)           # full-vreg transcendental
            th = jnp.tanh(gates)                  # full-vreg transcendental
            act = jnp.where(g_mask, th, sig)
            i_g = act[:, 0 * H2:1 * H2]           # [i_f|i_b]
            f_g = act[:, 1 * H2:2 * H2]           # [f_f|f_b]
            g_g = act[:, 2 * H2:3 * H2]           # [g_f|g_b]
            o_g = act[:, 3 * H2:4 * H2]           # [o_f|o_b]
            c = f_g * c + i_g * g_g
            h = o_g * jnp.tanh(c)
            hs.append(h)
        # Bulk re-assembly of the bidirectional sequence (no masked sub-tile
        # stores): time-t output is [h_fwd(t) | h_bwd(t)].
        fwd = jnp.stack([hs[t][:, :H] for t in range(S)], axis=0)      # (S,Bt,H)
        bwd = jnp.stack([hs[S - 1 - t][:, H:] for t in range(S)], axis=0)
        x_seq = jnp.concatenate([fwd, bwd], axis=-1)                   # (S,Bt,2H)
        # TODO(synk): inter-layer LSTM dropout omitted (eval-mode identity).

    lstm_out = x_seq                              # (S, Bt, 2H)
    # TODO(synk): post-LSTM dropout omitted (eval-mode identity).

    # Attention pooling: Linear(2H -> 1) -> softmax over seq -> weighted sum.
    scores = jnp.sum(lstm_out * wattn_ref[...], axis=-1,
                     keepdims=True) + battn_ref[...]                   # (S, Bt, 1)
    m = jnp.max(scores, axis=0, keepdims=True)
    e = jnp.exp(scores - m)
    denom = jnp.sum(e, axis=0, keepdims=True)
    attn = e * pl.reciprocal(denom, approx=True)  # EUP reciprocal (approx)
    context = jnp.sum(attn * lstm_out, axis=0)                         # (Bt, 2H)

    # Fused heads: Linear -> per-head LayerNorm -> ReLU -> block-diag Linear.
    h1 = jnp.dot(context, hw1_ref[...],
                 preferred_element_type=jnp.float32) + hb1_ref[...]    # (Bt, 2H)
    g_all, be_all = hg_ref[...], hbe_ref[...]

    def _ln(x, g, b):
        mu = jnp.mean(x, axis=-1, keepdims=True)
        var = jnp.mean((x - mu) ** 2, axis=-1, keepdims=True)
        return (x - mu) * jax.lax.rsqrt(var + _EPS) * g + b

    ha = _ln(h1[:, :H], g_all[:, :H], be_all[:, :H])       # author half
    hc = _ln(h1[:, H:], g_all[:, H:], be_all[:, H:])       # category half
    hcat = jnp.maximum(jnp.concatenate([ha, hc], axis=-1), 0.0)        # (Bt, 2H)
    # TODO(synk): head dropout omitted (eval-mode identity).
    logits = jnp.dot(hcat, hw2_ref[...],
                     preferred_element_type=jnp.float32) + hb2_ref[...]
    out_ref[...] = logits                                   # (Bt, OUT_PAD) store


# ----------------------------------------------------------------------------
# Params (PyTorch-like structure; synthetic deterministic weights)
# ----------------------------------------------------------------------------
def init_params(key):
    E, H = CFG["emb"], CFG["hidden"]
    NA, NC = CFG["n_authors"], CFG["n_categories"]
    keys = iter(jax.random.split(key, 64))

    def w(shape, scale=0.2):
        return (scale * jax.random.normal(next(keys), shape)).astype(jnp.float32)

    params = {
        "embedding": jax.random.normal(next(keys), (CFG["vocab"], E)
                                       ).astype(jnp.float32),
        # LSTM layer 0 / 1; axis 0 stacks [forward, backward].
        # Stored pre-transposed: W_ih (in, 4H), W_hh (H, 4H); bias = b_ih+b_hh.
        # Gate order along 4H: i, f, g, o (PyTorch).
        "l0_wih": w((2, E, 4 * H)), "l0_whh": w((2, H, 4 * H)),
        "l0_b": w((2, 4 * H), 0.1),
        "l1_wih": w((2, 2 * H, 4 * H)), "l1_whh": w((2, H, 4 * H)),
        "l1_b": w((2, 4 * H), 0.1),
        "w_attn": w((1, 2 * H)), "b_attn": w((1, 1), 0.1),
    }
    for name, ncls in (("author", NA), ("category", NC)):
        params[name] = {
            "w1": w((2 * H, H)), "b1": w((H,), 0.1),
            "g": jnp.ones((H,), jnp.float32), "beta": jnp.zeros((H,), jnp.float32),
            "w2": w((H, ncls)), "b2": w((ncls,), 0.1),
        }
    return params


# ----------------------------------------------------------------------------
# Host-side packing of the per-direction LSTM weights into the fused layout
# [i_f,i_b,f_f,f_b,g_f,g_b,o_f,o_b] used by the kernel.
# ----------------------------------------------------------------------------
def _pack_lstm_layer(wih, whh, b, H):
    in_dim = wih.shape[1]
    # (2, in, 4, H) -> (in, gate, dir, H) -> (in, 8H)
    wih_p = wih.reshape(2, in_dim, 4, H).transpose(1, 2, 0, 3).reshape(in_dim, 8 * H)
    b_p = b.reshape(2, 4, H).transpose(1, 0, 2).reshape(1, 8 * H)
    # Block-diagonal W_hh: rows 0:H (h_fwd) feed forward gate columns,
    # rows H:2H (h_bwd) feed backward gate columns.
    whh_p = jnp.zeros((2 * H, 8 * H), jnp.float32)
    for d in range(2):
        for k in range(4):
            whh_p = whh_p.at[d * H:(d + 1) * H,
                             (2 * k + d) * H:(2 * k + d + 1) * H].set(
                                 whh[d, :, k * H:(k + 1) * H])
    return wih_p, whh_p, b_p


# ----------------------------------------------------------------------------
# Wrapper: embedding gather + weight packing + single pallas_call
# ----------------------------------------------------------------------------
def multi_task_forward(params, input_ids, block_b=8):
    B, S = input_ids.shape
    E, H = CFG["emb"], CFG["hidden"]
    NA, NC = CFG["n_authors"], CFG["n_categories"]

    Bt = block_b
    num_tiles = pl.cdiv(B, Bt)
    B_pad = num_tiles * Bt

    ids = input_ids
    if B_pad != B:
        ids = jnp.concatenate(
            [ids, jnp.zeros((B_pad - B, S), ids.dtype)], axis=0)
    # TODO(synk): embedding gather could be fused via scalar prefetch; kept in XLA.
    emb = params["embedding"][ids.T]                       # (S, B_pad, E)

    l0_wih, l0_whh, l0_b = _pack_lstm_layer(
        params["l0_wih"], params["l0_whh"], params["l0_b"], H)
    l1_wih, l1_whh, l1_b = _pack_lstm_layer(
        params["l1_wih"], params["l1_whh"], params["l1_b"], H)

    # Pack both heads: stage-1 concat along out-dim (lane width 2H),
    # stage-2 as a block-diagonal, lane-padded (2H, OUT_PAD) matmul.
    a, cth = params["author"], params["category"]
    hw1 = jnp.concatenate([a["w1"], cth["w1"]], axis=1)            # (2H, 2H)
    hb1 = jnp.concatenate([a["b1"], cth["b1"]])[None, :]           # (1, 2H)
    hg = jnp.concatenate([a["g"], cth["g"]])[None, :]
    hbe = jnp.concatenate([a["beta"], cth["beta"]])[None, :]
    hw2 = jnp.zeros((2 * H, _OUT_PAD), jnp.float32)
    hw2 = hw2.at[:H, :NA].set(a["w2"]).at[H:, NA:NA + NC].set(cth["w2"])
    hb2 = jnp.zeros((1, _OUT_PAD), jnp.float32)
    hb2 = hb2.at[0, :NA + NC].set(jnp.concatenate([a["b2"], cth["b2"]]))

    weights = (l0_wih, l0_whh, l0_b, l1_wih, l1_whh, l1_b,
               params["w_attn"], params["b_attn"],
               hw1, hb1, hg, hbe, hw2, hb2)

    def _full_spec(x):
        return pl.BlockSpec(x.shape, lambda b, nd=x.ndim: (0,) * nd)

    logits = pl.pallas_call(
        _bilstm_forward_kernel,
        out_shape=jax.ShapeDtypeStruct((B_pad, _OUT_PAD), jnp.float32),
        grid=(num_tiles,),
        in_specs=[pl.BlockSpec((S, Bt, E), lambda b: (0, b, 0))]
                 + [_full_spec(x) for x in weights],
        out_specs=pl.BlockSpec((Bt, _OUT_PAD), lambda b: (b, 0)),
        compiler_params=pltpu.CompilerParams(
            dimension_semantics=("parallel",)),
    )(emb, *weights)

    return logits[:B, :NA], logits[:B, NA:NA + NC]


# ----------------------------------------------------------------------------
# Pure-JAX reference (same math, no Pallas, unpacked weights) for a check
# ----------------------------------------------------------------------------
def _reference_forward(params, input_ids):
    H = CFG["hidden"]
    B, S = input_ids.shape
    x = params["embedding"][input_ids]                     # (B, S, E)
    for wih_s, whh_s, b_s in (
            (params["l0_wih"], params["l0_whh"], params["l0_b"]),
            (params["l1_wih"], params["l1_whh"], params["l1_b"])):
        outs = []
        for d in range(2):
            wih, whh, b = wih_s[d], whh_s[d], b_s[d]
            h = jnp.zeros((B, H), jnp.float32)
            c = jnp.zeros((B, H), jnp.float32)
            hs = [None] * S
            order = range(S) if d == 0 else range(S - 1, -1, -1)
            for t in order:
                gates = x[:, t, :] @ wih + b + h @ whh
                i = jax.nn.sigmoid(gates[:, :H])
                f = jax.nn.sigmoid(gates[:, H:2 * H])
                g = jnp.tanh(gates[:, 2 * H:3 * H])
                o = jax.nn.sigmoid(gates[:, 3 * H:])
                c = f * c + i * g
                h = o * jnp.tanh(c)
                hs[t] = h
            outs.append(jnp.stack(hs, axis=1))             # (B, S, H)
        x = jnp.concatenate(outs, axis=-1)                 # (B, S, 2H)
    scores = jnp.einsum("bsh,oh->bso", x, params["w_attn"]) + params["b_attn"]
    attn = jax.nn.softmax(scores, axis=1)
    context = jnp.sum(attn * x, axis=1)                    # (B, 2H)

    def head(p):
        h1 = context @ p["w1"] + p["b1"]
        mu = h1.mean(-1, keepdims=True)
        var = ((h1 - mu) ** 2).mean(-1, keepdims=True)
        h1 = (h1 - mu) * jax.lax.rsqrt(var + _EPS) * p["g"] + p["beta"]
        h1 = jnp.maximum(h1, 0.0)
        return h1 @ p["w2"] + p["b2"]

    return head(params["author"]), head(params["category"])


if __name__ == "__main__":
    key = jax.random.PRNGKey(0)
    kp, ki = jax.random.split(key)
    params = init_params(kp)

    B, S = 2, 8
    input_ids = jax.random.randint(ki, (B, S), 0, CFG["vocab"], dtype=jnp.int32)

    author_logits, category_logits = jax.jit(multi_task_forward)(params, input_ids)
    jax.block_until_ready((author_logits, category_logits))

    assert author_logits.shape == (B, CFG["n_authors"])
    assert category_logits.shape == (B, CFG["n_categories"])
    assert bool(jnp.all(jnp.isfinite(author_logits)))
    assert bool(jnp.all(jnp.isfinite(category_logits)))

    ref_a, ref_c = jax.jit(_reference_forward)(params, input_ids)
    assert jnp.allclose(author_logits, ref_a, atol=5e-2, rtol=5e-2), (
        float(jnp.max(jnp.abs(author_logits - ref_a))))
    assert jnp.allclose(category_logits, ref_c, atol=5e-2, rtol=5e-2), (
        float(jnp.max(jnp.abs(category_logits - ref_c))))

    print("KERNEL_OK")
</pallas_src>

<mosaic_0001>
module attributes {stable_mosaic.version = 11 : i64} {
  func.func @_bilstm_forward_kernel(%arg0: i32, %arg1: memref<8x8x32xf32, #tpu.memory_space<vmem>>, %arg2: memref<32x256xf32, #tpu.memory_space<vmem>>, %arg3: memref<64x256xf32, #tpu.memory_space<vmem>>, %arg4: memref<1x256xf32, #tpu.memory_space<vmem>>, %arg5: memref<64x256xf32, #tpu.memory_space<vmem>>, %arg6: memref<64x256xf32, #tpu.memory_space<vmem>>, %arg7: memref<1x256xf32, #tpu.memory_space<vmem>>, %arg8: memref<1x64xf32, #tpu.memory_space<vmem>>, %arg9: memref<1x1xf32, #tpu.memory_space<vmem>>, %arg10: memref<64x64xf32, #tpu.memory_space<vmem>>, %arg11: memref<1x64xf32, #tpu.memory_space<vmem>>, %arg12: memref<1x64xf32, #tpu.memory_space<vmem>>, %arg13: memref<1x64xf32, #tpu.memory_space<vmem>>, %arg14: memref<64x128xf32, #tpu.memory_space<vmem>>, %arg15: memref<1x128xf32, #tpu.memory_space<vmem>>, %arg16: memref<8x128xf32, #tpu.memory_space<vmem>>) attributes {dimension_semantics = [#tpu.dimension_semantics<parallel>], iteration_bounds = array<i64: 1>, scalar_prefetch = 0 : i64, scratch_operands = 0 : i64, tpu.core_type = #tpu.core_type<tc>, window_params = [{transform_indices = @transform_0, window_bounds = array<i64: 8, 8, 32>}, {pipeline_mode = #tpu.pipeline_mode<synchronous>, transform_indices = @transform_1, window_bounds = array<i64: 32, 256>}, {pipeline_mode = #tpu.pipeline_mode<synchronous>, transform_indices = @transform_2, window_bounds = array<i64: 64, 256>}, {pipeline_mode = #tpu.pipeline_mode<synchronous>, transform_indices = @transform_3, window_bounds = array<i64: 1, 256>}, {pipeline_mode = #tpu.pipeline_mode<synchronous>, transform_indices = @transform_4, window_bounds = array<i64: 64, 256>}, {pipeline_mode = #tpu.pipeline_mode<synchronous>, transform_indices = @transform_5, window_bounds = array<i64: 64, 256>}, {pipeline_mode = #tpu.pipeline_mode<synchronous>, transform_indices = @transform_6, window_bounds = array<i64: 1, 256>}, {pipeline_mode = #tpu.pipeline_mode<synchronous>, transform_indices = @transform_7, window_bounds = array<i64: 1, 64>}, {pipeline_mode = #tpu.pipeline_mode<synchronous>, transform_indices = @transform_8, window_bounds = array<i64: 1, 1>}, {pipeline_mode = #tpu.pipeline_mode<synchronous>, transform_indices = @transform_9, window_bounds = array<i64: 64, 64>}, {pipeline_mode = #tpu.pipeline_mode<synchronous>, transform_indices = @transform_10, window_bounds = array<i64: 1, 64>}, {pipeline_mode = #tpu.pipeline_mode<synchronous>, transform_indices = @transform_11, window_bounds = array<i64: 1, 64>}, {pipeline_mode = #tpu.pipeline_mode<synchronous>, transform_indices = @transform_12, window_bounds = array<i64: 1, 64>}, {pipeline_mode = #tpu.pipeline_mode<synchronous>, transform_indices = @transform_13, window_bounds = array<i64: 64, 128>}, {pipeline_mode = #tpu.pipeline_mode<synchronous>, transform_indices = @transform_14, window_bounds = array<i64: 1, 128>}, {transform_indices = @transform_15, window_bounds = array<i64: 8, 128>}]} {
    %0 = tpu.iota {dimensions = array<i32: 1>} : vector<1x256xi32>
    %c64_i32 = arith.constant 64 : i32
    %c0_i32 = arith.constant 0 : i32
    %1 = arith.cmpi eq, %c64_i32, %c0_i32 : i32
    %c1_i32 = arith.constant 1 : i32
    %2 = arith.select %1, %c1_i32, %c64_i32 : i32
    %3 = vector.broadcast %2 : i32 to vector<1x256xi32>
    %4 = arith.remsi %0, %3 : vector<1x256xi32>
    %c0_i32_0 = arith.constant 0 : i32
    %5 = vector.broadcast %c0_i32_0 : i32 to vector<1x256xi32>
    %6 = arith.cmpi ne, %4, %5 : vector<1x256xi32>
    %c0_i32_1 = arith.constant 0 : i32
    %7 = vector.broadcast %c0_i32_1 : i32 to vector<1x256xi32>
    %8 = arith.cmpi slt, %4, %7 : vector<1x256xi32>
    %c0_i32_2 = arith.constant 0 : i32
    %9 = arith.cmpi slt, %2, %c0_i32_2 : i32
    %10 = vector.broadcast %9 : i1 to vector<1x256xi1>
    %11 = vector.broadcast %10 : vector<1x256xi1> to vector<1x256xi1>
    %12 = arith.xori %8, %11 : vector<1x256xi1>
    %13 = arith.andi %12, %6 : vector<1x256xi1>
    %14 = vector.broadcast %2 : i32 to vector<1x256xi32>
    %15 = arith.addi %4, %14 : vector<1x256xi32>
    %16 = arith.select %13, %15, %4 : vector<1x256xi1>, vector<1x256xi32>
    %c32_i32 = arith.constant 32 : i32
    %17 = vector.broadcast %c32_i32 : i32 to vector<1x256xi32>
    %18 = arith.cmpi slt, %16, %17 : vector<1x256xi32>
    %c128_i32 = arith.constant 128 : i32
    %19 = vector.broadcast %c128_i32 : i32 to vector<1x256xi32>
    %20 = arith.cmpi sge, %0, %19 : vector<1x256xi32>
    %c192_i32 = arith.constant 192 : i32
    %21 = vector.broadcast %c192_i32 : i32 to vector<1x256xi32>
    %22 = arith.cmpi slt, %0, %21 : vector<1x256xi32>
    %23 = arith.andi %20, %22 : vector<1x256xi1>
    %c0 = arith.constant 0 : index
    %c0_3 = arith.constant 0 : index
    %c0_4 = arith.constant 0 : index
    %24 = vector.load %arg1[%c0, %c0_3, %c0_4] : memref<8x8x32xf32, #tpu.memory_space<vmem>>, vector<8x8x32xf32>
    %c0_5 = arith.constant 0 : index
    %c0_6 = arith.constant 0 : index
    %25 = vector.load %arg3[%c0_5, %c0_6] : memref<64x256xf32, #tpu.memory_space<vmem>>, vector<64x256xf32>
    %26 = vector.shape_cast %24 : vector<8x8x32xf32> to vector<64x32xf32>
    %c0_7 = arith.constant 0 : index
    %c0_8 = arith.constant 0 : index
    %27 = vector.load %arg2[%c0_7, %c0_8] : memref<32x256xf32, #tpu.memory_space<vmem>>, vector<32x256xf32>
    %cst = arith.constant dense<0.000000e+00> : vector<64x256xf32>
    %28 = tpu.matmul %26, %27, %cst {dimension_numbers = #tpu.dot_dimension_numbers<[1], [0], [0], [1], [0, 0, 1, 1], [], []>} : vector<64x32xf32>, vector<32x256xf32>, vector<64x256xf32> -> vector<64x256xf32>
    %29 = vector.shape_cast %28 : vector<64x256xf32> to vector<8x8x256xf32>
    %c0_9 = arith.constant 0 : index
    %c0_10 = arith.constant 0 : index
    %30 = vector.load %arg4[%c0_9, %c0_10] : memref<1x256xf32, #tpu.memory_space<vmem>>, vector<1x256xf32>
    %31 = vector.shape_cast %30 : vector<1x256xf32> to vector<1x1x256xf32>
    %32 = vector.broadcast %31 : vector<1x1x256xf32> to vector<8x8x256xf32>
    %33 = arith.addf %29, %32 : vector<8x8x256xf32>
    %cst_11 = arith.constant 0.000000e+00 : f32
    %34 = vector.broadcast %cst_11 : f32 to vector<8x64xf32>
    %cst_12 = arith.constant 0.000000e+00 : f32
    %35 = vector.broadcast %cst_12 : f32 to vector<8x64xf32>
    %36 = vector.extract_strided_slice %33 {offsets = [0, 0, 0], sizes = [1, 8, 256], strides = [1, 1, 1]} : vector<8x8x256xf32> to vector<1x8x256xf32>
    %37 = vector.shape_cast %36 : vector<1x8x256xf32> to vector<8x256xf32>
    %38 = vector.extract_strided_slice %33 {offsets = [7, 0, 0], sizes = [1, 8, 256], strides = [1, 1, 1]} : vector<8x8x256xf32> to vector<1x8x256xf32>
    %39 = vector.shape_cast %38 : vector<1x8x256xf32> to vector<8x256xf32>
    %40 = vector.shape_cast %18 : vector<1x256xi1> to vector<1x256xi1>
    %41 = vector.broadcast %40 : vector<1x256xi1> to vector<8x256xi1>
    %42 = arith.select %41, %37, %39 : vector<8x256xi1>, vector<8x256xf32>
    %cst_13 = arith.constant dense<0.000000e+00> : vector<8x256xf32>
    %43 = tpu.matmul %34, %25, %cst_13 {dimension_numbers = #tpu.dot_dimension_numbers<[1], [0], [0], [1], [0, 0, 1, 1], [], []>} : vector<8x64xf32>, vector<64x256xf32>, vector<8x256xf32> -> vector<8x256xf32>
    %44 = arith.addf %42, %43 : vector<8x256xf32>
    %45 = arith.negf %44 : vector<8x256xf32>
    %46 = math.exp %45 : vector<8x256xf32>
    %cst_14 = arith.constant 1.000000e+00 : f32
    %47 = vector.broadcast %cst_14 : f32 to vector<8x256xf32>
    %48 = arith.addf %47, %46 : vector<8x256xf32>
    %49 = arith.divf %47, %48 : vector<8x256xf32>
    %50 = math.tanh %44 : vector<8x256xf32>
    %51 = vector.shape_cast %23 : vector<1x256xi1> to vector<1x256xi1>
    %52 = vector.broadcast %51 : vector<1x256xi1> to vector<8x256xi1>
    %53 = arith.select %52, %50, %49 : vector<8x256xi1>, vector<8x256xf32>
    %54 = vector.extract_strided_slice %53 {offsets = [0, 0], sizes = [8, 64], strides = [1, 1]} : vector<8x256xf32> to vector<8x64xf32>
    %55 = vector.extract_strided_slice %53 {offsets = [0, 64], sizes = [8, 64], strides = [1, 1]} : vector<8x256xf32> to vector<8x64xf32>
    %56 = vector.extract_strided_slice %53 {offsets = [0, 128], sizes = [8, 64], strides = [1, 1]} : vector<8x256xf32> to vector<8x64xf32>
    %57 = vector.extract_strided_slice %53 {offsets = [0, 192], sizes = [8, 64], strides = [1, 1]} : vector<8x256xf32> to vector<8x64xf32>
    %58 = arith.mulf %55, %35 : vector<8x64xf32>
    %59 = arith.mulf %54, %56 : vector<8x64xf32>
    %60 = arith.addf %58, %59 : vector<8x64xf32>
    %61 = math.tanh %60 : vector<8x64xf32>
    %62 = arith.mulf %57, %61 : vector<8x64xf32>
    %63 = vector.extract_strided_slice %33 {offsets = [1, 0, 0], sizes = [1, 8, 256], strides = [1, 1, 1]} : vector<8x8x256xf32> to vector<1x8x256xf32>
    %64 = vector.shape_cast %63 : vector<1x8x256xf32> to vector<8x256xf32>
    %65 = vector.extract_strided_slice %33 {offsets = [6, 0, 0], sizes = [1, 8, 256], strides = [1, 1, 1]} : vector<8x8x256xf32> to vector<1x8x256xf32>
    %66 = vector.shape_cast %65 : vector<1x8x256xf32> to vector<8x256xf32>
    %67 = vector.shape_cast %18 : vector<1x256xi1> to vector<1x256xi1>
    %68 = vector.broadcast %67 : vector<1x256xi1> to vector<8x256xi1>
    %69 = arith.select %68, %64, %66 : vector<8x256xi1>, vector<8x256xf32>
    %cst_15 = arith.constant dense<0.000000e+00> : vector<8x256xf32>
    %70 = tpu.matmul %62, %25, %cst_15 {dimension_numbers = #tpu.dot_dimension_numbers<[1], [0], [0], [1], [0, 0, 1, 1], [], []>} : vector<8x64xf32>, vector<64x256xf32>, vector<8x256xf32> -> vector<8x256xf32>
    %71 = arith.addf %69, %70 : vector<8x256xf32>
    %72 = arith.negf %71 : vector<8x256xf32>
    %73 = math.exp %72 : vector<8x256xf32>
    %cst_16 = arith.constant 1.000000e+00 : f32
    %74 = vector.broadcast %cst_16 : f32 to vector<8x256xf32>
    %75 = arith.addf %74, %73 : vector<8x256xf32>
    %76 = arith.divf %74, %75 : vector<8x256xf32>
    %77 = math.tanh %71 : vector<8x256xf32>
    %78 = vector.shape_cast %23 : vector<1x256xi1> to vector<1x256xi1>
    %79 = vector.broadcast %78 : vector<1x256xi1> to vector<8x256xi1>
    %80 = arith.select %79, %77, %76 : vector<8x256xi1>, vector<8x256xf32>
    %81 = vector.extract_strided_slice %80 {offsets = [0, 0], sizes = [8, 64], strides = [1, 1]} : vector<8x256xf32> to vector<8x64xf32>
    %82 = vector.extract_strided_slice %80 {offsets = [0, 64], sizes = [8, 64], strides = [1, 1]} : vector<8x256xf32> to vector<8x64xf32>
    %83 = vector.extract_strided_slice %80 {offsets = [0, 128], sizes = [8, 64], strides = [1, 1]} : vector<8x256xf32> to vector<8x64xf32>
    %84 = vector.extract_strided_slice %80 {offsets = [0, 192], sizes = [8, 64], strides = [1, 1]} : vector<8x256xf32> to vector<8x64xf32>
    %85 = arith.mulf %82, %60 : vector<8x64xf32>
    %86 = arith.mulf %81, %83 : vector<8x64xf32>
    %87 = arith.addf %85, %86 : vector<8x64xf32>
    %88 = math.tanh %87 : vector<8x64xf32>
    %89 = arith.mulf %84, %88 : vector<8x64xf32>
    %90 = vector.extract_strided_slice %33 {offsets = [2, 0, 0], sizes = [1, 8, 256], strides = [1, 1, 1]} : vector<8x8x256xf32> to vector<1x8x256xf32>
    %91 = vector.shape_cast %90 : vector<1x8x256xf32> to vector<8x256xf32>
    %92 = vector.extract_strided_slice %33 {offsets = [5, 0, 0], sizes = [1, 8, 256], strides = [1, 1, 1]} : vector<8x8x256xf32> to vector<1x8x256xf32>
    %93 = vector.shape_cast %92 : vector<1x8x256xf32> to vector<8x256xf32>
    %94 = vector.shape_cast %18 : vector<1x256xi1> to vector<1x256xi1>
    %95 = vector.broadcast %94 : vector<1x256xi1> to vector<8x256xi1>
    %96 = arith.select %95, %91, %93 : vector<8x256xi1>, vector<8x256xf32>
    %cst_17 = arith.constant dense<0.000000e+00> : vector<8x256xf32>
    %97 = tpu.matmul %89, %25, %cst_17 {dimension_numbers = #tpu.dot_dimension_numbers<[1], [0], [0], [1], [0, 0, 1, 1], [], []>} : vector<8x64xf32>, vector<64x256xf32>, vector<8x256xf32> -> vector<8x256xf32>
    %98 = arith.addf %96, %97 : vector<8x256xf32>
    %99 = arith.negf %98 : vector<8x256xf32>
    %100 = math.exp %99 : vector<8x256xf32>
    %cst_18 = arith.constant 1.000000e+00 : f32
    %101 = vector.broadcast %cst_18 : f32 to vector<8x256xf32>
    %102 = arith.addf %101, %100 : vector<8x256xf32>
    %103 = arith.divf %101, %102 : vector<8x256xf32>
    %104 = math.tanh %98 : vector<8x256xf32>
    %105 = vector.shape_cast %23 : vector<1x256xi1> to vector<1x256xi1>
    %106 = vector.broadcast %105 : vector<1x256xi1> to vector<8x256xi1>
    %107 = arith.select %106, %104, %103 : vector<8x256xi1>, vector<8x256xf32>
    %108 = vector.extract_strided_slice %107 {offsets = [0, 0], sizes = [8, 64], strides = [1, 1]} : vector<8x256xf32> to vector<8x64xf32>
    %109 = vector.extract_strided_slice %107 {offsets = [0, 64], sizes = [8, 64], strides = [1, 1]} : vector<8x256xf32> to vector<8x64xf32>
    %110 = vector.extract_strided_slice %107 {offsets = [0, 128], sizes = [8, 64], strides = [1, 1]} : vector<8x256xf32> to vector<8x64xf32>
    %111 = vector.extract_strided_slice %107 {offsets = [0, 192], sizes = [8, 64], strides = [1, 1]} : vector<8x256xf32> to vector<8x64xf32>
    %112 = arith.mulf %109, %87 : vector<8x64xf32>
    %113 = arith.mulf %108, %110 : vector<8x64xf32>
    %114 = arith.addf %112, %113 : vector<8x64xf32>
    %115 = math.tanh %114 : vector<8x64xf32>
    %116 = arith.mulf %111, %115 : vector<8x64xf32>
    %117 = vector.extract_strided_slice %33 {offsets = [3, 0, 0], sizes = [1, 8, 256], strides = [1, 1, 1]} : vector<8x8x256xf32> to vector<1x8x256xf32>
    %118 = vector.shape_cast %117 : vector<1x8x256xf32> to vector<8x256xf32>
    %119 = vector.extract_strided_slice %33 {offsets = [4, 0, 0], sizes = [1, 8, 256], strides = [1, 1, 1]} : vector<8x8x256xf32> to vector<1x8x256xf32>
    %120 = vector.shape_cast %119 : vector<1x8x256xf32> to vector<8x256xf32>
    %121 = vector.shape_cast %18 : vector<1x256xi1> to vector<1x256xi1>
    %122 = vector.broadcast %121 : vector<1x256xi1> to vector<8x256xi1>
    %123 = arith.select %122, %118, %120 : vector<8x256xi1>, vector<8x256xf32>
    %cst_19 = arith.constant dense<0.000000e+00> : vector<8x256xf32>
    %124 = tpu.matmul %116, %25, %cst_19 {dimension_numbers = #tpu.dot_dimension_numbers<[1], [0], [0], [1], [0, 0, 1, 1], [], []>} : vector<8x64xf32>, vector<64x256xf32>, vector<8x256xf32> -> vector<8x256xf32>
    %125 = arith.addf %123, %124 : vector<8x256xf32>
    %126 = arith.negf %125 : vector<8x256xf32>
    %127 = math.exp %126 : vector<8x256xf32>
    %cst_20 = arith.constant 1.000000e+00 : f32
    %128 = vector.broadcast %cst_20 : f32 to vector<8x256xf32>
    %129 = arith.addf %128, %127 : vector<8x256xf32>
    %130 = arith.divf %128, %129 : vector<8x256xf32>
    %131 = math.tanh %125 : vector<8x256xf32>
    %132 = vector.shape_cast %23 : vector<1x256xi1> to vector<1x256xi1>
    %133 = vector.broadcast %132 : vector<1x256xi1> to vector<8x256xi1>
    %134 = arith.select %133, %131, %130 : vector<8x256xi1>, vector<8x256xf32>
    %135 = vector.extract_strided_slice %134 {offsets = [0, 0], sizes = [8, 64], strides = [1, 1]} : vector<8x256xf32> to vector<8x64xf32>
    %136 = vector.extract_strided_slice %134 {offsets = [0, 64], sizes = [8, 64], strides = [1, 1]} : vector<8x256xf32> to vector<8x64xf32>
    %137 = vector.extract_strided_slice %134 {offsets = [0, 128], sizes = [8, 64], strides = [1, 1]} : vector<8x256xf32> to vector<8x64xf32>
    %138 = vector.extract_strided_slice %134 {offsets = [0, 192], sizes = [8, 64], strides = [1, 1]} : vector<8x256xf32> to vector<8x64xf32>
    %139 = arith.mulf %136, %114 : vector<8x64xf32>
    %140 = arith.mulf %135, %137 : vector<8x64xf32>
    %141 = arith.addf %139, %140 : vector<8x64xf32>
    %142 = math.tanh %141 : vector<8x64xf32>
    %143 = arith.mulf %138, %142 : vector<8x64xf32>
    %144 = vector.extract_strided_slice %33 {offsets = [4, 0, 0], sizes = [1, 8, 256], strides = [1, 1, 1]} : vector<8x8x256xf32> to vector<1x8x256xf32>
    %145 = vector.shape_cast %144 : vector<1x8x256xf32> to vector<8x256xf32>
    %146 = vector.extract_strided_slice %33 {offsets = [3, 0, 0], sizes = [1, 8, 256], strides = [1, 1, 1]} : vector<8x8x256xf32> to vector<1x8x256xf32>
    %147 = vector.shape_cast %146 : vector<1x8x256xf32> to vector<8x256xf32>
    %148 = vector.shape_cast %18 : vector<1x256xi1> to vector<1x256xi1>
    %149 = vector.broadcast %148 : vector<1x256xi1> to vector<8x256xi1>
    %150 = arith.select %149, %145, %147 : vector<8x256xi1>, vector<8x256xf32>
    %cst_21 = arith.constant dense<0.000000e+00> : vector<8x256xf32>
    %151 = tpu.matmul %143, %25, %cst_21 {dimension_numbers = #tpu.dot_dimension_numbers<[1], [0], [0], [1], [0, 0, 1, 1], [], []>} : vector<8x64xf32>, vector<64x256xf32>, vector<8x256xf32> -> vector<8x256xf32>
    %152 = arith.addf %150, %151 : vector<8x256xf32>
    %153 = arith.negf %152 : vector<8x256xf32>
    %154 = math.exp %153 : vector<8x256xf32>
    %cst_22 = arith.constant 1.000000e+00 : f32
    %155 = vector.broadcast %cst_22 : f32 to vector<8x256xf32>
    %156 = arith.addf %155, %154 : vector<8x256xf32>
    %157 = arith.divf %155, %156 : vector<8x256xf32>
    %158 = math.tanh %152 : vector<8x256xf32>
    %159 = vector.shape_cast %23 : vector<1x256xi1> to vector<1x256xi1>
    %160 = vector.broadcast %159 : vector<1x256xi1> to vector<8x256xi1>
    %161 = arith.select %160, %158, %157 : vector<8x256xi1>, vector<8x256xf32>
    %162 = vector.extract_strided_slice %161 {offsets = [0, 0], sizes = [8, 64], strides = [1, 1]} : vector<8x256xf32> to vector<8x64xf32>
    %163 = vector.extract_strided_slice %161 {offsets = [0, 64], sizes = [8, 64], strides = [1, 1]} : vector<8x256xf32> to vector<8x64xf32>
    %164 = vector.extract_strided_slice %161 {offsets = [0, 128], sizes = [8, 64], strides = [1, 1]} : vector<8x256xf32> to vector<8x64xf32>
    %165 = vector.extract_strided_slice %161 {offsets = [0, 192], sizes = [8, 64], strides = [1, 1]} : vector<8x256xf32> to vector<8x64xf32>
    %166 = arith.mulf %163, %141 : vector<8x64xf32>
    %167 = arith.mulf %162, %164 : vector<8x64xf32>
    %168 = arith.addf %166, %167 : vector<8x64xf32>
    %169 = math.tanh %168 : vector<8x64xf32>
    %170 = arith.mulf %165, %169 : vector<8x64xf32>
    %171 = vector.extract_strided_slice %33 {offsets = [5, 0, 0], sizes = [1, 8, 256], strides = [1, 1, 1]} : vector<8x8x256xf32> to vector<1x8x256xf32>
    %172 = vector.shape_cast %171 : vector<1x8x256xf32> to vector<8x256xf32>
    %173 = vector.extract_strided_slice %33 {offsets = [2, 0, 0], sizes = [1, 8, 256], strides = [1, 1, 1]} : vector<8x8x256xf32> to vector<1x8x256xf32>
    %174 = vector.shape_cast %173 : vector<1x8x256xf32> to vector<8x256xf32>
    %175 = vector.shape_cast %18 : vector<1x256xi1> to vector<1x256xi1>
    %176 = vector.broadcast %175 : vector<1x256xi1> to vector<8x256xi1>
    %177 = arith.select %176, %172, %174 : vector<8x256xi1>, vector<8x256xf32>
    %cst_23 = arith.constant dense<0.000000e+00> : vector<8x256xf32>
    %178 = tpu.matmul %170, %25, %cst_23 {dimension_numbers = #tpu.dot_dimension_numbers<[1], [0], [0], [1], [0, 0, 1, 1], [], []>} : vector<8x64xf32>, vector<64x256xf32>, vector<8x256xf32> -> vector<8x256xf32>
    %179 = arith.addf %177, %178 : vector<8x256xf32>
    %180 = arith.negf %179 : vector<8x256xf32>
    %181 = math.exp %180 : vector<8x256xf32>
    %cst_24 = arith.constant 1.000000e+00 : f32
    %182 = vector.broadcast %cst_24 : f32 to vector<8x256xf32>
    %183 = arith.addf %182, %181 : vector<8x256xf32>
    %184 = arith.divf %182, %183 : vector<8x256xf32>
    %185 = math.tanh %179 : vector<8x256xf32>
    %186 = vector.shape_cast %23 : vector<1x256xi1> to vector<1x256xi1>
    %187 = vector.broadcast %186 : vector<1x256xi1> to vector<8x256xi1>
    %188 = arith.select %187, %185, %184 : vector<8x256xi1>, vector<8x256xf32>
    %189 = vector.extract_strided_slice %188 {offsets = [0, 0], sizes = [8, 64], strides = [1, 1]} : vector<8x256xf32> to vector<8x64xf32>
    %190 = vector.extract_strided_slice %188 {offsets = [0, 64], sizes = [8, 64], strides = [1, 1]} : vector<8x256xf32> to vector<8x64xf32>
    %191 = vector.extract_strided_slice %188 {offsets = [0, 128], sizes = [8, 64], strides = [1, 1]} : vector<8x256xf32> to vector<8x64xf32>
    %192 = vector.extract_strided_slice %188 {offsets = [0, 192], sizes = [8, 64], strides = [1, 1]} : vector<8x256xf32> to vector<8x64xf32>
    %193 = arith.mulf %190, %168 : vector<8x64xf32>
    %194 = arith.mulf %189, %191 : vector<8x64xf32>
    %195 = arith.addf %193, %194 : vector<8x64xf32>
    %196 = math.tanh %195 : vector<8x64xf32>
    %197 = arith.mulf %192, %196 : vector<8x64xf32>
    %198 = vector.extract_strided_slice %33 {offsets = [6, 0, 0], sizes = [1, 8, 256], strides = [1, 1, 1]} : vector<8x8x256xf32> to vector<1x8x256xf32>
    %199 = vector.shape_cast %198 : vector<1x8x256xf32> to vector<8x256xf32>
    %200 = vector.extract_strided_slice %33 {offsets = [1, 0, 0], sizes = [1, 8, 256], strides = [1, 1, 1]} : vector<8x8x256xf32> to vector<1x8x256xf32>
    %201 = vector.shape_cast %200 : vector<1x8x256xf32> to vector<8x256xf32>
    %202 = vector.shape_cast %18 : vector<1x256xi1> to vector<1x256xi1>
    %203 = vector.broadcast %202 : vector<1x256xi1> to vector<8x256xi1>
    %204 = arith.select %203, %199, %201 : vector<8x256xi1>, vector<8x256xf32>
    %cst_25 = arith.constant dense<0.000000e+00> : vector<8x256xf32>
    %205 = tpu.matmul %197, %25, %cst_25 {dimension_numbers = #tpu.dot_dimension_numbers<[1], [0], [0], [1], [0, 0, 1, 1], [], []>} : vector<8x64xf32>, vector<64x256xf32>, vector<8x256xf32> -> vector<8x256xf32>
    %206 = arith.addf %204, %205 : vector<8x256xf32>
    %207 = arith.negf %206 : vector<8x256xf32>
    %208 = math.exp %207 : vector<8x256xf32>
    %cst_26 = arith.constant 1.000000e+00 : f32
    %209 = vector.broadcast %cst_26 : f32 to vector<8x256xf32>
    %210 = arith.addf %209, %208 : vector<8x256xf32>
    %211 = arith.divf %209, %210 : vector<8x256xf32>
    %212 = math.tanh %206 : vector<8x256xf32>
    %213 = vector.shape_cast %23 : vector<1x256xi1> to vector<1x256xi1>
    %214 = vector.broadcast %213 : vector<1x256xi1> to vector<8x256xi1>
    %215 = arith.select %214, %212, %211 : vector<8x256xi1>, vector<8x256xf32>
    %216 = vector.extract_strided_slice %215 {offsets = [0, 0], sizes = [8, 64], strides = [1, 1]} : vector<8x256xf32> to vector<8x64xf32>
    %217 = vector.extract_strided_slice %215 {offsets = [0, 64], sizes = [8, 64], strides = [1, 1]} : vector<8x256xf32> to vector<8x64xf32>
    %218 = vector.extract_strided_slice %215 {offsets = [0, 128], sizes = [8, 64], strides = [1, 1]} : vector<8x256xf32> to vector<8x64xf32>
    %219 = vector.extract_strided_slice %215 {offsets = [0, 192], sizes = [8, 64], strides = [1, 1]} : vector<8x256xf32> to vector<8x64xf32>
    %220 = arith.mulf %217, %195 : vector<8x64xf32>
    %221 = arith.mulf %216, %218 : vector<8x64xf32>
    %222 = arith.addf %220, %221 : vector<8x64xf32>
    %223 = math.tanh %222 : vector<8x64xf32>
    %224 = arith.mulf %219, %223 : vector<8x64xf32>
    %225 = vector.extract_strided_slice %33 {offsets = [7, 0, 0], sizes = [1, 8, 256], strides = [1, 1, 1]} : vector<8x8x256xf32> to vector<1x8x256xf32>
    %226 = vector.shape_cast %225 : vector<1x8x256xf32> to vector<8x256xf32>
    %227 = vector.extract_strided_slice %33 {offsets = [0, 0, 0], sizes = [1, 8, 256], strides = [1, 1, 1]} : vector<8x8x256xf32> to vector<1x8x256xf32>
    %228 = vector.shape_cast %227 : vector<1x8x256xf32> to vector<8x256xf32>
    %229 = vector.shape_cast %18 : vector<1x256xi1> to vector<1x256xi1>
    %230 = vector.broadcast %229 : vector<1x256xi1> to vector<8x256xi1>
    %231 = arith.select %230, %226, %228 : vector<8x256xi1>, vector<8x256xf32>
    %cst_27 = arith.constant dense<0.000000e+00> : vector<8x256xf32>
    %232 = tpu.matmul %224, %25, %cst_27 {dimension_numbers = #tpu.dot_dimension_numbers<[1], [0], [0], [1], [0, 0, 1, 1], [], []>} : vector<8x64xf32>, vector<64x256xf32>, vector<8x256xf32> -> vector<8x256xf32>
    %233 = arith.addf %231, %232 : vector<8x256xf32>
    %234 = arith.negf %233 : vector<8x256xf32>
    %235 = math.exp %234 : vector<8x256xf32>
    %cst_28 = arith.constant 1.000000e+00 : f32
    %236 = vector.broadcast %cst_28 : f32 to vector<8x256xf32>
    %237 = arith.addf %236, %235 : vector<8x256xf32>
    %238 = arith.divf %236, %237 : vector<8x256xf32>
    %239 = math.tanh %233 : vector<8x256xf32>
    %240 = vector.shape_cast %23 : vector<1x256xi1> to vector<1x256xi1>
    %241 = vector.broadcast %240 : vector<1x256xi1> to vector<8x256xi1>
    %242 = arith.select %241, %239, %238 : vector<8x256xi1>, vector<8x256xf32>
    %243 = vector.extract_strided_slice %242 {offsets = [0, 0], sizes = [8, 64], strides = [1, 1]} : vector<8x256xf32> to vector<8x64xf32>
    %244 = vector.extract_strided_slice %242 {offsets = [0, 64], sizes = [8, 64], strides = [1, 1]} : vector<8x256xf32> to vector<8x64xf32>
    %245 = vector.extract_strided_slice %242 {offsets = [0, 128], sizes = [8, 64], strides = [1, 1]} : vector<8x256xf32> to vector<8x64xf32>
    %246 = vector.extract_strided_slice %242 {offsets = [0, 192], sizes = [8, 64], strides = [1, 1]} : vector<8x256xf32> to vector<8x64xf32>
    %247 = arith.mulf %244, %222 : vector<8x64xf32>
    %248 = arith.mulf %243, %245 : vector<8x64xf32>
    %249 = arith.addf %247, %248 : vector<8x64xf32>
    %250 = math.tanh %249 : vector<8x64xf32>
    %251 = arith.mulf %246, %250 : vector<8x64xf32>
    %252 = vector.extract_strided_slice %62 {offsets = [0, 0], sizes = [8, 32], strides = [1, 1]} : vector<8x64xf32> to vector<8x32xf32>
    %253 = vector.extract_strided_slice %89 {offsets = [0, 0], sizes = [8, 32], strides = [1, 1]} : vector<8x64xf32> to vector<8x32xf32>
    %254 = vector.extract_strided_slice %116 {offsets = [0, 0], sizes = [8, 32], strides = [1, 1]} : vector<8x64xf32> to vector<8x32xf32>
    %255 = vector.extract_strided_slice %143 {offsets = [0, 0], sizes = [8, 32], strides = [1, 1]} : vector<8x64xf32> to vector<8x32xf32>
    %256 = vector.extract_strided_slice %170 {offsets = [0, 0], sizes = [8, 32], strides = [1, 1]} : vector<8x64xf32> to vector<8x32xf32>
    %257 = vector.extract_strided_slice %197 {offsets = [0, 0], sizes = [8, 32], strides = [1, 1]} : vector<8x64xf32> to vector<8x32xf32>
    %258 = vector.extract_strided_slice %224 {offsets = [0, 0], sizes = [8, 32], strides = [1, 1]} : vector<8x64xf32> to vector<8x32xf32>
    %259 = vector.extract_strided_slice %251 {offsets = [0, 0], sizes = [8, 32], strides = [1, 1]} : vector<8x64xf32> to vector<8x32xf32>
    %260 = vector.shape_cast %252 : vector<8x32xf32> to vector<1x8x32xf32>
    %261 = vector.shape_cast %253 : vector<8x32xf32> to vector<1x8x32xf32>
    %262 = vector.shape_cast %254 : vector<8x32xf32> to vector<1x8x32xf32>
    %263 = vector.shape_cast %255 : vector<8x32xf32> to vector<1x8x32xf32>
    %264 = vector.shape_cast %256 : vector<8x32xf32> to vector<1x8x32xf32>
    %265 = vector.shape_cast %257 : vector<8x32xf32> to vector<1x8x32xf32>
    %266 = vector.shape_cast %258 : vector<8x32xf32> to vector<1x8x32xf32>
    %267 = vector.shape_cast %259 : vector<8x32xf32> to vector<1x8x32xf32>
    %268 = tpu.concatenate %260, %261, %262, %263, %264, %265, %266, %267 in 0 : vector<1x8x32xf32>, vector<1x8x32xf32>, vector<1x8x32xf32>, vector<1x8x32xf32>, vector<1x8x32xf32>, vector<1x8x32xf32>, vector<1x8x32xf32>, vector<1x8x32xf32> -> vector<8x8x32xf32>
    %269 = vector.extract_strided_slice %251 {offsets = [0, 32], sizes = [8, 32], strides = [1, 1]} : vector<8x64xf32> to vector<8x32xf32>
    %270 = vector.extract_strided_slice %224 {offsets = [0, 32], sizes = [8, 32], strides = [1, 1]} : vector<8x64xf32> to vector<8x32xf32>
    %271 = vector.extract_strided_slice %197 {offsets = [0, 32], sizes = [8, 32], strides = [1, 1]} : vector<8x64xf32> to vector<8x32xf32>
    %272 = vector.extract_strided_slice %170 {offsets = [0, 32], sizes = [8, 32], strides = [1, 1]} : vector<8x64xf32> to vector<8x32xf32>
    %273 = vector.extract_strided_slice %143 {offsets = [0, 32], sizes = [8, 32], strides = [1, 1]} : vector<8x64xf32> to vector<8x32xf32>
    %274 = vector.extract_strided_slice %116 {offsets = [0, 32], sizes = [8, 32], strides = [1, 1]} : vector<8x64xf32> to vector<8x32xf32>
    %275 = vector.extract_strided_slice %89 {offsets = [0, 32], sizes = [8, 32], strides = [1, 1]} : vector<8x64xf32> to vector<8x32xf32>
    %276 = vector.extract_strided_slice %62 {offsets = [0, 32], sizes = [8, 32], strides = [1, 1]} : vector<8x64xf32> to vector<8x32xf32>
    %277 = vector.shape_cast %269 : vector<8x32xf32> to vector<1x8x32xf32>
    %278 = vector.shape_cast %270 : vector<8x32xf32> to vector<1x8x32xf32>
    %279 = vector.shape_cast %271 : vector<8x32xf32> to vector<1x8x32xf32>
    %280 = vector.shape_cast %272 : vector<8x32xf32> to vector<1x8x32xf32>
    %281 = vector.shape_cast %273 : vector<8x32xf32> to vector<1x8x32xf32>
    %282 = vector.shape_cast %274 : vector<8x32xf32> to vector<1x8x32xf32>
    %283 = vector.shape_cast %275 : vector<8x32xf32> to vector<1x8x32xf32>
    %284 = vector.shape_cast %276 : vector<8x32xf32> to vector<1x8x32xf32>
    %285 = tpu.concatenate %277, %278, %279, %280, %281, %282, %283, %284 in 0 : vector<1x8x32xf32>, vector<1x8x32xf32>, vector<1x8x32xf32>, vector<1x8x32xf32>, vector<1x8x32xf32>, vector<1x8x32xf32>, vector<1x8x32xf32>, vector<1x8x32xf32> -> vector<8x8x32xf32>
    %286 = tpu.concatenate %268, %285 in 2 : vector<8x8x32xf32>, vector<8x8x32xf32> -> vector<8x8x64xf32>
    %c0_29 = arith.constant 0 : index
    %c0_30 = arith.constant 0 : index
    %287 = vector.load %arg6[%c0_29, %c0_30] : memref<64x256xf32, #tpu.memory_space<vmem>>, vector<64x256xf32>
    %288 = vector.shape_cast %286 : vector<8x8x64xf32> to vector<64x64xf32>
    %c0_31 = arith.constant 0 : index
    %c0_32 = arith.constant 0 : index
    %289 = vector.load %arg5[%c0_31, %c0_32] : memref<64x256xf32, #tpu.memory_space<vmem>>, vector<64x256xf32>
    %cst_33 = arith.constant dense<0.000000e+00> : vector<64x256xf32>
    %290 = tpu.matmul %288, %289, %cst_33 {dimension_numbers = #tpu.dot_dimension_numbers<[1], [0], [0], [1], [0, 0, 1, 1], [], []>} : vector<64x64xf32>, vector<64x256xf32>, vector<64x256xf32> -> vector<64x256xf32>
    %291 = vector.shape_cast %290 : vector<64x256xf32> to vector<8x8x256xf32>
    %c0_34 = arith.constant 0 : index
    %c0_35 = arith.constant 0 : index
    %292 = vector.load %arg7[%c0_34, %c0_35] : memref<1x256xf32, #tpu.memory_space<vmem>>, vector<1x256xf32>
    %293 = vector.shape_cast %292 : vector<1x256xf32> to vector<1x1x256xf32>
    %294 = vector.broadcast %293 : vector<1x1x256xf32> to vector<8x8x256xf32>
    %295 = arith.addf %291, %294 : vector<8x8x256xf32>
    %cst_36 = arith.constant 0.000000e+00 : f32
    %296 = vector.broadcast %cst_36 : f32 to vector<8x64xf32>
    %cst_37 = arith.constant 0.000000e+00 : f32
    %297 = vector.broadcast %cst_37 : f32 to vector<8x64xf32>
    %298 = vector.extract_strided_slice %295 {offsets = [0, 0, 0], sizes = [1, 8, 256], strides = [1, 1, 1]} : vector<8x8x256xf32> to vector<1x8x256xf32>
    %299 = vector.shape_cast %298 : vector<1x8x256xf32> to vector<8x256xf32>
    %300 = vector.extract_strided_slice %295 {offsets = [7, 0, 0], sizes = [1, 8, 256], strides = [1, 1, 1]} : vector<8x8x256xf32> to vector<1x8x256xf32>
    %301 = vector.shape_cast %300 : vector<1x8x256xf32> to vector<8x256xf32>
    %302 = vector.shape_cast %18 : vector<1x256xi1> to vector<1x256xi1>
    %303 = vector.broadcast %302 : vector<1x256xi1> to vector<8x256xi1>
    %304 = arith.select %303, %299, %301 : vector<8x256xi1>, vector<8x256xf32>
    %cst_38 = arith.constant dense<0.000000e+00> : vector<8x256xf32>
    %305 = tpu.matmul %296, %287, %cst_38 {dimension_numbers = #tpu.dot_dimension_numbers<[1], [0], [0], [1], [0, 0, 1, 1], [], []>} : vector<8x64xf32>, vector<64x256xf32>, vector<8x256xf32> -> vector<8x256xf32>
    %306 = arith.addf %304, %305 : vector<8x256xf32>
    %307 = arith.negf %306 : vector<8x256xf32>
    %308 = math.exp %307 : vector<8x256xf32>
    %cst_39 = arith.constant 1.000000e+00 : f32
    %309 = vector.broadcast %cst_39 : f32 to vector<8x256xf32>
    %310 = arith.addf %309, %308 : vector<8x256xf32>
    %311 = arith.divf %309, %310 : vector<8x256xf32>
    %312 = math.tanh %306 : vector<8x256xf32>
    %313 = vector.shape_cast %23 : vector<1x256xi1> to vector<1x256xi1>
    %314 = vector.broadcast %313 : vector<1x256xi1> to vector<8x256xi1>
    %315 = arith.select %314, %312, %311 : vector<8x256xi1>, vector<8x256xf32>
    %316 = vector.extract_strided_slice %315 {offsets = [0, 0], sizes = [8, 64], strides = [1, 1]} : vector<8x256xf32> to vector<8x64xf32>
    %317 = vector.extract_strided_slice %315 {offsets = [0, 64], sizes = [8, 64], strides = [1, 1]} : vector<8x256xf32> to vector<8x64xf32>
    %318 = vector.extract_strided_slice %315 {offsets = [0, 128], sizes = [8, 64], strides = [1, 1]} : vector<8x256xf32> to vector<8x64xf32>
    %319 = vector.extract_strided_slice %315 {offsets = [0, 192], sizes = [8, 64], strides = [1, 1]} : vector<8x256xf32> to vector<8x64xf32>
    %320 = arith.mulf %317, %297 : vector<8x64xf32>
    %321 = arith.mulf %316, %318 : vector<8x64xf32>
    %322 = arith.addf %320, %321 : vector<8x64xf32>
    %323 = math.tanh %322 : vector<8x64xf32>
    %324 = arith.mulf %319, %323 : vector<8x64xf32>
    %325 = vector.extract_strided_slice %295 {offsets = [1, 0, 0], sizes = [1, 8, 256], strides = [1, 1, 1]} : vector<8x8x256xf32> to vector<1x8x256xf32>
    %326 = vector.shape_cast %325 : vector<1x8x256xf32> to vector<8x256xf32>
    %327 = vector.extract_strided_slice %295 {offsets = [6, 0, 0], sizes = [1, 8, 256], strides = [1, 1, 1]} : vector<8x8x256xf32> to vector<1x8x256xf32>
    %328 = vector.shape_cast %327 : vector<1x8x256xf32> to vector<8x256xf32>
    %329 = vector.shape_cast %18 : vector<1x256xi1> to vector<1x256xi1>
    %330 = vector.broadcast %329 : vector<1x256xi1> to vector<8x256xi1>
    %331 = arith.select %330, %326, %328 : vector<8x256xi1>, vector<8x256xf32>
    %cst_40 = arith.constant dense<0.000000e+00> : vector<8x256xf32>
    %332 = tpu.matmul %324, %287, %cst_40 {dimension_numbers = #tpu.dot_dimension_numbers<[1], [0], [0], [1], [0, 0, 1, 1], [], []>} : vector<8x64xf32>, vector<64x256xf32>, vector<8x256xf32> -> vector<8x256xf32>
    %333 = arith.addf %331, %332 : vector<8x256xf32>
    %334 = arith.negf %333 : vector<8x256xf32>
    %335 = math.exp %334 : vector<8x256xf32>
    %cst_41 = arith.constant 1.000000e+00 : f32
    %336 = vector.broadcast %cst_41 : f32 to vector<8x256xf32>
    %337 = arith.addf %336, %335 : vector<8x256xf32>
    %338 = arith.divf %336, %337 : vector<8x256xf32>
    %339 = math.tanh %333 : vector<8x256xf32>
    %340 = vector.shape_cast %23 : vector<1x256xi1> to vector<1x256xi1>
    %341 = vector.broadcast %340 : vector<1x256xi1> to vector<8x256xi1>
    %342 = arith.select %341, %339, %338 : vector<8x256xi1>, vector<8x256xf32>
    %343 = vector.extract_strided_slice %342 {offsets = [0, 0], sizes = [8, 64], strides = [1, 1]} : vector<8x256xf32> to vector<8x64xf32>
    %344 = vector.extract_strided_slice %342 {offsets = [0, 64], sizes = [8, 64], strides = [1, 1]} : vector<8x256xf32> to vector<8x64xf32>
    %345 = vector.extract_strided_slice %342 {offsets = [0, 128], sizes = [8, 64], strides = [1, 1]} : vector<8x256xf32> to vector<8x64xf32>
    %346 = vector.extract_strided_slice %342 {offsets = [0, 192], sizes = [8, 64], strides = [1, 1]} : vector<8x256xf32> to vector<8x64xf32>
    %347 = arith.mulf %344, %322 : vector<8x64xf32>
    %348 = arith.mulf %343, %345 : vector<8x64xf32>
    %349 = arith.addf %347, %348 : vector<8x64xf32>
    %350 = math.tanh %349 : vector<8x64xf32>
    %351 = arith.mulf %346, %350 : vector<8x64xf32>
    %352 = vector.extract_strided_slice %295 {offsets = [2, 0, 0], sizes = [1, 8, 256], strides = [1, 1, 1]} : vector<8x8x256xf32> to vector<1x8x256xf32>
    %353 = vector.shape_cast %352 : vector<1x8x256xf32> to vector<8x256xf32>
    %354 = vector.extract_strided_slice %295 {offsets = [5, 0, 0], sizes = [1, 8, 256], strides = [1, 1, 1]} : vector<8x8x256xf32> to vector<1x8x256xf32>
    %355 = vector.shape_cast %354 : vector<1x8x256xf32> to vector<8x256xf32>
    %356 = vector.shape_cast %18 : vector<1x256xi1> to vector<1x256xi1>
    %357 = vector.broadcast %356 : vector<1x256xi1> to vector<8x256xi1>
    %358 = arith.select %357, %353, %355 : vector<8x256xi1>, vector<8x256xf32>
    %cst_42 = arith.constant dense<0.000000e+00> : vector<8x256xf32>
    %359 = tpu.matmul %351, %287, %cst_42 {dimension_numbers = #tpu.dot_dimension_numbers<[1], [0], [0], [1], [0, 0, 1, 1], [], []>} : vector<8x64xf32>, vector<64x256xf32>, vector<8x256xf32> -> vector<8x256xf32>
    %360 = arith.addf %358, %359 : vector<8x256xf32>
    %361 = arith.negf %360 : vector<8x256xf32>
    %362 = math.exp %361 : vector<8x256xf32>
    %cst_43 = arith.constant 1.000000e+00 : f32
    %363 = vector.broadcast %cst_43 : f32 to vector<8x256xf32>
    %364 = arith.addf %363, %362 : vector<8x256xf32>
    %365 = arith.divf %363, %364 : vector<8x256xf32>
    %366 = math.tanh %360 : vector<8x256xf32>
    %367 = vector.shape_cast %23 : vector<1x256xi1> to vector<1x256xi1>
    %368 = vector.broadcast %367 : vector<1x256xi1> to vector<8x256xi1>
    %369 = arith.select %368, %366, %365 : vector<8x256xi1>, vector<8x256xf32>
    %370 = vector.extract_strided_slice %369 {offsets = [0, 0], sizes = [8, 64], strides = [1, 1]} : vector<8x256xf32> to vector<8x64xf32>
    %371 = vector.extract_strided_slice %369 {offsets = [0, 64], sizes = [8, 64], strides = [1, 1]} : vector<8x256xf32> to vector<8x64xf32>
    %372 = vector.extract_strided_slice %369 {offsets = [0, 128], sizes = [8, 64], strides = [1, 1]} : vector<8x256xf32> to vector<8x64xf32>
    %373 = vector.extract_strided_slice %369 {offsets = [0, 192], sizes = [8, 64], strides = [1, 1]} : vector<8x256xf32> to vector<8x64xf32>
    %374 = arith.mulf %371, %349 : vector<8x64xf32>
    %375 = arith.mulf %370, %372 : vector<8x64xf32>
    %376 = arith.addf %374, %375 : vector<8x64xf32>
    %377 = math.tanh %376 : vector<8x64xf32>
    %378 = arith.mulf %373, %377 : vector<8x64xf32>
    %379 = vector.extract_strided_slice %295 {offsets = [3, 0, 0], sizes = [1, 8, 256], strides = [1, 1, 1]} : vector<8x8x256xf32> to vector<1x8x256xf32>
    %380 = vector.shape_cast %379 : vector<1x8x256xf32> to vector<8x256xf32>
    %381 = vector.extract_strided_slice %295 {offsets = [4, 0, 0], sizes = [1, 8, 256], strides = [1, 1, 1]} : vector<8x8x256xf32> to vector<1x8x256xf32>
    %382 = vector.shape_cast %381 : vector<1x8x256xf32> to vector<8x256xf32>
    %383 = vector.shape_cast %18 : vector<1x256xi1> to vector<1x256xi1>
    %384 = vector.broadcast %383 : vector<1x256xi1> to vector<8x256xi1>
    %385 = arith.select %384, %380, %382 : vector<8x256xi1>, vector<8x256xf32>
    %cst_44 = arith.constant dense<0.000000e+00> : vector<8x256xf32>
    %386 = tpu.matmul %378, %287, %cst_44 {dimension_numbers = #tpu.dot_dimension_numbers<[1], [0], [0], [1], [0, 0, 1, 1], [], []>} : vector<8x64xf32>, vector<64x256xf32>, vector<8x256xf32> -> vector<8x256xf32>
    %387 = arith.addf %385, %386 : vector<8x256xf32>
    %388 = arith.negf %387 : vector<8x256xf32>
    %389 = math.exp %388 : vector<8x256xf32>
    %cst_45 = arith.constant 1.000000e+00 : f32
    %390 = vector.broadcast %cst_45 : f32 to vector<8x256xf32>
    %391 = arith.addf %390, %389 : vector<8x256xf32>
    %392 = arith.divf %390, %391 : vector<8x256xf32>
    %393 = math.tanh %387 : vector<8x256xf32>
    %394 = vector.shape_cast %23 : vector<1x256xi1> to vector<1x256xi1>
    %395 = vector.broadcast %394 : vector<1x256xi1> to vector<8x256xi1>
    %396 = arith.select %395, %393, %392 : vector<8x256xi1>, vector<8x256xf32>
    %397 = vector.extract_strided_slice %396 {offsets = [0, 0], sizes = [8, 64], strides = [1, 1]} : vector<8x256xf32> to vector<8x64xf32>
    %398 = vector.extract_strided_slice %396 {offsets = [0, 64], sizes = [8, 64], strides = [1, 1]} : vector<8x256xf32> to vector<8x64xf32>
    %399 = vector.extract_strided_slice %396 {offsets = [0, 128], sizes = [8, 64], strides = [1, 1]} : vector<8x256xf32> to vector<8x64xf32>
    %400 = vector.extract_strided_slice %396 {offsets = [0, 192], sizes = [8, 64], strides = [1, 1]} : vector<8x256xf32> to vector<8x64xf32>
    %401 = arith.mulf %398, %376 : vector<8x64xf32>
    %402 = arith.mulf %397, %399 : vector<8x64xf32>
    %403 = arith.addf %401, %402 : vector<8x64xf32>
    %404 = math.tanh %403 : vector<8x64xf32>
    %405 = arith.mulf %400, %404 : vector<8x64xf32>
    %406 = vector.extract_strided_slice %295 {offsets = [4, 0, 0], sizes = [1, 8, 256], strides = [1, 1, 1]} : vector<8x8x256xf32> to vector<1x8x256xf32>
    %407 = vector.shape_cast %406 : vector<1x8x256xf32> to vector<8x256xf32>
    %408 = vector.extract_strided_slice %295 {offsets = [3, 0, 0], sizes = [1, 8, 256], strides = [1, 1, 1]} : vector<8x8x256xf32> to vector<1x8x256xf32>
    %409 = vector.shape_cast %408 : vector<1x8x256xf32> to vector<8x256xf32>
    %410 = vector.shape_cast %18 : vector<1x256xi1> to vector<1x256xi1>
    %411 = vector.broadcast %410 : vector<1x256xi1> to vector<8x256xi1>
    %412 = arith.select %411, %407, %409 : vector<8x256xi1>, vector<8x256xf32>
    %cst_46 = arith.constant dense<0.000000e+00> : vector<8x256xf32>
    %413 = tpu.matmul %405, %287, %cst_46 {dimension_numbers = #tpu.dot_dimension_numbers<[1], [0], [0], [1], [0, 0, 1, 1], [], []>} : vector<8x64xf32>, vector<64x256xf32>, vector<8x256xf32> -> vector<8x256xf32>
    %414 = arith.addf %412, %413 : vector<8x256xf32>
    %415 = arith.negf %414 : vector<8x256xf32>
    %416 = math.exp %415 : vector<8x256xf32>
    %cst_47 = arith.constant 1.000000e+00 : f32
    %417 = vector.broadcast %cst_47 : f32 to vector<8x256xf32>
    %418 = arith.addf %417, %416 : vector<8x256xf32>
    %419 = arith.divf %417, %418 : vector<8x256xf32>
    %420 = math.tanh %414 : vector<8x256xf32>
    %421 = vector.shape_cast %23 : vector<1x256xi1> to vector<1x256xi1>
    %422 = vector.broadcast %421 : vector<1x256xi1> to vector<8x256xi1>
    %423 = arith.select %422, %420, %419 : vector<8x256xi1>, vector<8x256xf32>
    %424 = vector.extract_strided_slice %423 {offsets = [0, 0], sizes = [8, 64], strides = [1, 1]} : vector<8x256xf32> to vector<8x64xf32>
    %425 = vector.extract_strided_slice %423 {offsets = [0, 64], sizes = [8, 64], strides = [1, 1]} : vector<8x256xf32> to vector<8x64xf32>
    %426 = vector.extract_strided_slice %423 {offsets = [0, 128], sizes = [8, 64], strides = [1, 1]} : vector<8x256xf32> to vector<8x64xf32>
    %427 = vector.extract_strided_slice %423 {offsets = [0, 192], sizes = [8, 64], strides = [1, 1]} : vector<8x256xf32> to vector<8x64xf32>
    %428 = arith.mulf %425, %403 : vector<8x64xf32>
    %429 = arith.mulf %424, %426 : vector<8x64xf32>
    %430 = arith.addf %428, %429 : vector<8x64xf32>
    %431 = math.tanh %430 : vector<8x64xf32>
    %432 = arith.mulf %427, %431 : vector<8x64xf32>
    %433 = vector.extract_strided_slice %295 {offsets = [5, 0, 0], sizes = [1, 8, 256], strides = [1, 1, 1]} : vector<8x8x256xf32> to vector<1x8x256xf32>
    %434 = vector.shape_cast %433 : vector<1x8x256xf32> to vector<8x256xf32>
    %435 = vector.extract_strided_slice %295 {offsets = [2, 0, 0], sizes = [1, 8, 256], strides = [1, 1, 1]} : vector<8x8x256xf32> to vector<1x8x256xf32>
    %436 = vector.shape_cast %435 : vector<1x8x256xf32> to vector<8x256xf32>
    %437 = vector.shape_cast %18 : vector<1x256xi1> to vector<1x256xi1>
    %438 = vector.broadcast %437 : vector<1x256xi1> to vector<8x256xi1>
    %439 = arith.select %438, %434, %436 : vector<8x256xi1>, vector<8x256xf32>
    %cst_48 = arith.constant dense<0.000000e+00> : vector<8x256xf32>
    %440 = tpu.matmul %432, %287, %cst_48 {dimension_numbers = #tpu.dot_dimension_numbers<[1], [0], [0], [1], [0, 0, 1, 1], [], []>} : vector<8x64xf32>, vector<64x256xf32>, vector<8x256xf32> -> vector<8x256xf32>
    %441 = arith.addf %439, %440 : vector<8x256xf32>
    %442 = arith.negf %441 : vector<8x256xf32>
    %443 = math.exp %442 : vector<8x256xf32>
    %cst_49 = arith.constant 1.000000e+00 : f32
    %444 = vector.broadcast %cst_49 : f32 to vector<8x256xf32>
    %445 = arith.addf %444, %443 : vector<8x256xf32>
    %446 = arith.divf %444, %445 : vector<8x256xf32>
    %447 = math.tanh %441 : vector<8x256xf32>
    %448 = vector.shape_cast %23 : vector<1x256xi1> to vector<1x256xi1>
    %449 = vector.broadcast %448 : vector<1x256xi1> to vector<8x256xi1>
    %450 = arith.select %449, %447, %446 : vector<8x256xi1>, vector<8x256xf32>
    %451 = vector.extract_strided_slice %450 {offsets = [0, 0], sizes = [8, 64], strides = [1, 1]} : vector<8x256xf32> to vector<8x64xf32>
    %452 = vector.extract_strided_slice %450 {offsets = [0, 64], sizes = [8, 64], strides = [1, 1]} : vector<8x256xf32> to vector<8x64xf32>
    %453 = vector.extract_strided_slice %450 {offsets = [0, 128], sizes = [8, 64], strides = [1, 1]} : vector<8x256xf32> to vector<8x64xf32>
    %454 = vector.extract_strided_slice %450 {offsets = [0, 192], sizes = [8, 64], strides = [1, 1]} : vector<8x256xf32> to vector<8x64xf32>
    %455 = arith.mulf %452, %430 : vector<8x64xf32>
    %456 = arith.mulf %451, %453 : vector<8x64xf32>
    %457 = arith.addf %455, %456 : vector<8x64xf32>
    %458 = math.tanh %457 : vector<8x64xf32>
    %459 = arith.mulf %454, %458 : vector<8x64xf32>
    %460 = vector.extract_strided_slice %295 {offsets = [6, 0, 0], sizes = [1, 8, 256], strides = [1, 1, 1]} : vector<8x8x256xf32> to vector<1x8x256xf32>
    %461 = vector.shape_cast %460 : vector<1x8x256xf32> to vector<8x256xf32>
    %462 = vector.extract_strided_slice %295 {offsets = [1, 0, 0], sizes = [1, 8, 256], strides = [1, 1, 1]} : vector<8x8x256xf32> to vector<1x8x256xf32>
    %463 = vector.shape_cast %462 : vector<1x8x256xf32> to vector<8x256xf32>
    %464 = vector.shape_cast %18 : vector<1x256xi1> to vector<1x256xi1>
    %465 = vector.broadcast %464 : vector<1x256xi1> to vector<8x256xi1>
    %466 = arith.select %465, %461, %463 : vector<8x256xi1>, vector<8x256xf32>
    %cst_50 = arith.constant dense<0.000000e+00> : vector<8x256xf32>
    %467 = tpu.matmul %459, %287, %cst_50 {dimension_numbers = #tpu.dot_dimension_numbers<[1], [0], [0], [1], [0, 0, 1, 1], [], []>} : vector<8x64xf32>, vector<64x256xf32>, vector<8x256xf32> -> vector<8x256xf32>
    %468 = arith.addf %466, %467 : vector<8x256xf32>
    %469 = arith.negf %468 : vector<8x256xf32>
    %470 = math.exp %469 : vector<8x256xf32>
    %cst_51 = arith.constant 1.000000e+00 : f32
    %471 = vector.broadcast %cst_51 : f32 to vector<8x256xf32>
    %472 = arith.addf %471, %470 : vector<8x256xf32>
    %473 = arith.divf %471, %472 : vector<8x256xf32>
    %474 = math.tanh %468 : vector<8x256xf32>
    %475 = vector.shape_cast %23 : vector<1x256xi1> to vector<1x256xi1>
    %476 = vector.broadcast %475 : vector<1x256xi1> to vector<8x256xi1>
    %477 = arith.select %476, %474, %473 : vector<8x256xi1>, vector<8x256xf32>
    %478 = vector.extract_strided_slice %477 {offsets = [0, 0], sizes = [8, 64], strides = [1, 1]} : vector<8x256xf32> to vector<8x64xf32>
    %479 = vector.extract_strided_slice %477 {offsets = [0, 64], sizes = [8, 64], strides = [1, 1]} : vector<8x256xf32> to vector<8x64xf32>
    %480 = vector.extract_strided_slice %477 {offsets = [0, 128], sizes = [8, 64], strides = [1, 1]} : vector<8x256xf32> to vector<8x64xf32>
    %481 = vector.extract_strided_slice %477 {offsets = [0, 192], sizes = [8, 64], strides = [1, 1]} : vector<8x256xf32> to vector<8x64xf32>
    %482 = arith.mulf %479, %457 : vector<8x64xf32>
    %483 = arith.mulf %478, %480 : vector<8x64xf32>
    %484 = arith.addf %482, %483 : vector<8x64xf32>
    %485 = math.tanh %484 : vector<8x64xf32>
    %486 = arith.mulf %481, %485 : vector<8x64xf32>
    %487 = vector.extract_strided_slice %295 {offsets = [7, 0, 0], sizes = [1, 8, 256], strides = [1, 1, 1]} : vector<8x8x256xf32> to vector<1x8x256xf32>
    %488 = vector.shape_cast %487 : vector<1x8x256xf32> to vector<8x256xf32>
    %489 = vector.extract_strided_slice %295 {offsets = [0, 0, 0], sizes = [1, 8, 256], strides = [1, 1, 1]} : vector<8x8x256xf32> to vector<1x8x256xf32>
    %490 = vector.shape_cast %489 : vector<1x8x256xf32> to vector<8x256xf32>
    %491 = vector.shape_cast %18 : vector<1x256xi1> to vector<1x256xi1>
    %492 = vector.broadcast %491 : vector<1x256xi1> to vector<8x256xi1>
    %493 = arith.select %492, %488, %490 : vector<8x256xi1>, vector<8x256xf32>
    %cst_52 = arith.constant dense<0.000000e+00> : vector<8x256xf32>
    %494 = tpu.matmul %486, %287, %cst_52 {dimension_numbers = #tpu.dot_dimension_numbers<[1], [0], [0], [1], [0, 0, 1, 1], [], []>} : vector<8x64xf32>, vector<64x256xf32>, vector<8x256xf32> -> vector<8x256xf32>
    %495 = arith.addf %493, %494 : vector<8x256xf32>
    %496 = arith.negf %495 : vector<8x256xf32>
    %497 = math.exp %496 : vector<8x256xf32>
    %cst_53 = arith.constant 1.000000e+00 : f32
    %498 = vector.broadcast %cst_53 : f32 to vector<8x256xf32>
    %499 = arith.addf %498, %497 : vector<8x256xf32>
    %500 = arith.divf %498, %499 : vector<8x256xf32>
    %501 = math.tanh %495 : vector<8x256xf32>
    %502 = vector.shape_cast %23 : vector<1x256xi1> to vector<1x256xi1>
    %503 = vector.broadcast %502 : vector<1x256xi1> to vector<8x256xi1>
    %504 = arith.select %503, %501, %500 : vector<8x256xi1>, vector<8x256xf32>
    %505 = vector.extract_strided_slice %504 {offsets = [0, 0], sizes = [8, 64], strides = [1, 1]} : vector<8x256xf32> to vector<8x64xf32>
    %506 = vector.extract_strided_slice %504 {offsets = [0, 64], sizes = [8, 64], strides = [1, 1]} : vector<8x256xf32> to vector<8x64xf32>
    %507 = vector.extract_strided_slice %504 {offsets = [0, 128], sizes = [8, 64], strides = [1, 1]} : vector<8x256xf32> to vector<8x64xf32>
    %508 = vector.extract_strided_slice %504 {offsets = [0, 192], sizes = [8, 64], strides = [1, 1]} : vector<8x256xf32> to vector<8x64xf32>
    %509 = arith.mulf %506, %484 : vector<8x64xf32>
    %510 = arith.mulf %505, %507 : vector<8x64xf32>
    %511 = arith.addf %509, %510 : vector<8x64xf32>
    %512 = math.tanh %511 : vector<8x64xf32>
    %513 = arith.mulf %508, %512 : vector<8x64xf32>
    %514 = vector.extract_strided_slice %324 {offsets = [0, 0], sizes = [8, 32], strides = [1, 1]} : vector<8x64xf32> to vector<8x32xf32>
    %515 = vector.extract_strided_slice %351 {offsets = [0, 0], sizes = [8, 32], strides = [1, 1]} : vector<8x64xf32> to vector<8x32xf32>
    %516 = vector.extract_strided_slice %378 {offsets = [0, 0], sizes = [8, 32], strides = [1, 1]} : vector<8x64xf32> to vector<8x32xf32>
    %517 = vector.extract_strided_slice %405 {offsets = [0, 0], sizes = [8, 32], strides = [1, 1]} : vector<8x64xf32> to vector<8x32xf32>
    %518 = vector.extract_strided_slice %432 {offsets = [0, 0], sizes = [8, 32], strides = [1, 1]} : vector<8x64xf32> to vector<8x32xf32>
    %519 = vector.extract_strided_slice %459 {offsets = [0, 0], sizes = [8, 32], strides = [1, 1]} : vector<8x64xf32> to vector<8x32xf32>
    %520 = vector.extract_strided_slice %486 {offsets = [0, 0], sizes = [8, 32], strides = [1, 1]} : vector<8x64xf32> to vector<8x32xf32>
    %521 = vector.extract_strided_slice %513 {offsets = [0, 0], sizes = [8, 32], strides = [1, 1]} : vector<8x64xf32> to vector<8x32xf32>
    %522 = vector.shape_cast %514 : vector<8x32xf32> to vector<1x8x32xf32>
    %523 = vector.shape_cast %515 : vector<8x32xf32> to vector<1x8x32xf32>
    %524 = vector.shape_cast %516 : vector<8x32xf32> to vector<1x8x32xf32>
    %525 = vector.shape_cast %517 : vector<8x32xf32> to vector<1x8x32xf32>
    %526 = vector.shape_cast %518 : vector<8x32xf32> to vector<1x8x32xf32>
    %527 = vector.shape_cast %519 : vector<8x32xf32> to vector<1x8x32xf32>
    %528 = vector.shape_cast %520 : vector<8x32xf32> to vector<1x8x32xf32>
    %529 = vector.shape_cast %521 : vector<8x32xf32> to vector<1x8x32xf32>
    %530 = tpu.concatenate %522, %523, %524, %525, %526, %527, %528, %529 in 0 : vector<1x8x32xf32>, vector<1x8x32xf32>, vector<1x8x32xf32>, vector<1x8x32xf32>, vector<1x8x32xf32>, vector<1x8x32xf32>, vector<1x8x32xf32>, vector<1x8x32xf32> -> vector<8x8x32xf32>
    %531 = vector.extract_strided_slice %513 {offsets = [0, 32], sizes = [8, 32], strides = [1, 1]} : vector<8x64xf32> to vector<8x32xf32>
    %532 = vector.extract_strided_slice %486 {offsets = [0, 32], sizes = [8, 32], strides = [1, 1]} : vector<8x64xf32> to vector<8x32xf32>
    %533 = vector.extract_strided_slice %459 {offsets = [0, 32], sizes = [8, 32], strides = [1, 1]} : vector<8x64xf32> to vector<8x32xf32>
    %534 = vector.extract_strided_slice %432 {offsets = [0, 32], sizes = [8, 32], strides = [1, 1]} : vector<8x64xf32> to vector<8x32xf32>
    %535 = vector.extract_strided_slice %405 {offsets = [0, 32], sizes = [8, 32], strides = [1, 1]} : vector<8x64xf32> to vector<8x32xf32>
    %536 = vector.extract_strided_slice %378 {offsets = [0, 32], sizes = [8, 32], strides = [1, 1]} : vector<8x64xf32> to vector<8x32xf32>
    %537 = vector.extract_strided_slice %351 {offsets = [0, 32], sizes = [8, 32], strides = [1, 1]} : vector<8x64xf32> to vector<8x32xf32>
    %538 = vector.extract_strided_slice %324 {offsets = [0, 32], sizes = [8, 32], strides = [1, 1]} : vector<8x64xf32> to vector<8x32xf32>
    %539 = vector.shape_cast %531 : vector<8x32xf32> to vector<1x8x32xf32>
    %540 = vector.shape_cast %532 : vector<8x32xf32> to vector<1x8x32xf32>
    %541 = vector.shape_cast %533 : vector<8x32xf32> to vector<1x8x32xf32>
    %542 = vector.shape_cast %534 : vector<8x32xf32> to vector<1x8x32xf32>
    %543 = vector.shape_cast %535 : vector<8x32xf32> to vector<1x8x32xf32>
    %544 = vector.shape_cast %536 : vector<8x32xf32> to vector<1x8x32xf32>
    %545 = vector.shape_cast %537 : vector<8x32xf32> to vector<1x8x32xf32>
    %546 = vector.shape_cast %538 : vector<8x32xf32> to vector<1x8x32xf32>
    %547 = tpu.concatenate %539, %540, %541, %542, %543, %544, %545, %546 in 0 : vector<1x8x32xf32>, vector<1x8x32xf32>, vector<1x8x32xf32>, vector<1x8x32xf32>, vector<1x8x32xf32>, vector<1x8x32xf32>, vector<1x8x32xf32>, vector<1x8x32xf32> -> vector<8x8x32xf32>
    %548 = tpu.concatenate %530, %547 in 2 : vector<8x8x32xf32>, vector<8x8x32xf32> -> vector<8x8x64xf32>
    %c0_54 = arith.constant 0 : index
    %c0_55 = arith.constant 0 : index
    %549 = vector.load %arg8[%c0_54, %c0_55] : memref<1x64xf32, #tpu.memory_space<vmem>>, vector<1x64xf32>
    %550 = vector.shape_cast %549 : vector<1x64xf32> to vector<1x1x64xf32>
    %551 = vector.broadcast %550 : vector<1x1x64xf32> to vector<8x8x64xf32>
    %552 = arith.mulf %548, %551 : vector<8x8x64xf32>
    %cst_56 = arith.constant dense<0.000000e+00> : vector<8x8xf32>
    %553 = vector.multi_reduction <add>, %552, %cst_56 [2] : vector<8x8x64xf32> to vector<8x8xf32>
    %554 = vector.shape_cast %553 : vector<8x8xf32> to vector<8x8x1xf32>
    %c0_57 = arith.constant 0 : index
    %c0_58 = arith.constant 0 : index
    %555 = vector.load %arg9[%c0_57, %c0_58] : memref<1x1xf32, #tpu.memory_space<vmem>>, vector<1x1xf32>
    %556 = vector.shape_cast %555 : vector<1x1xf32> to vector<1x1x1xf32>
    %557 = vector.broadcast %556 : vector<1x1x1xf32> to vector<8x8x1xf32>
    %558 = arith.addf %554, %557 : vector<8x8x1xf32>
    %cst_59 = arith.constant dense<0xFF800000> : vector<8x1xf32>
    %559 = vector.multi_reduction <maximumf>, %558, %cst_59 [0] : vector<8x8x1xf32> to vector<8x1xf32>
    %560 = vector.shape_cast %559 : vector<8x1xf32> to vector<1x8x1xf32>
    %561 = vector.broadcast %560 : vector<1x8x1xf32> to vector<8x8x1xf32>
    %562 = arith.subf %558, %561 : vector<8x8x1xf32>
    %563 = math.exp %562 : vector<8x8x1xf32>
    %cst_60 = arith.constant dense<0.000000e+00> : vector<8x1xf32>
    %564 = vector.multi_reduction <add>, %563, %cst_60 [0] : vector<8x8x1xf32> to vector<8x1xf32>
    %565 = vector.shape_cast %564 : vector<8x1xf32> to vector<1x8x1xf32>
    %566 = tpu.reciprocal %565 {approx = true} : vector<1x8x1xf32> -> vector<1x8x1xf32>
    %567 = vector.broadcast %566 : vector<1x8x1xf32> to vector<8x8x1xf32>
    %568 = arith.mulf %563, %567 : vector<8x8x1xf32>
    %569 = vector.broadcast %568 : vector<8x8x1xf32> to vector<8x8x64xf32>
    %570 = arith.mulf %569, %548 : vector<8x8x64xf32>
    %cst_61 = arith.constant dense<0.000000e+00> : vector<8x64xf32>
    %571 = vector.multi_reduction <add>, %570, %cst_61 [0] : vector<8x8x64xf32> to vector<8x64xf32>
    %c0_62 = arith.constant 0 : index
    %c0_63 = arith.constant 0 : index
    %572 = vector.load %arg10[%c0_62, %c0_63] : memref<64x64xf32, #tpu.memory_space<vmem>>, vector<64x64xf32>
    %cst_64 = arith.constant dense<0.000000e+00> : vector<8x64xf32>
    %573 = tpu.matmul %571, %572, %cst_64 {dimension_numbers = #tpu.dot_dimension_numbers<[1], [0], [0], [1], [0, 0, 1, 1], [], []>} : vector<8x64xf32>, vector<64x64xf32>, vector<8x64xf32> -> vector<8x64xf32>
    %c0_65 = arith.constant 0 : index
    %c0_66 = arith.constant 0 : index
    %574 = vector.load %arg11[%c0_65, %c0_66] : memref<1x64xf32, #tpu.memory_space<vmem>>, vector<1x64xf32>
    %575 = vector.broadcast %574 : vector<1x64xf32> to vector<8x64xf32>
    %576 = arith.addf %573, %575 : vector<8x64xf32>
    %c0_67 = arith.constant 0 : index
    %c0_68 = arith.constant 0 : index
    %577 = vector.load %arg12[%c0_67, %c0_68] : memref<1x64xf32, #tpu.memory_space<vmem>>, vector<1x64xf32>
    %c0_69 = arith.constant 0 : index
    %c0_70 = arith.constant 0 : index
    %578 = vector.load %arg13[%c0_69, %c0_70] : memref<1x64xf32, #tpu.memory_space<vmem>>, vector<1x64xf32>
    %579 = vector.extract_strided_slice %576 {offsets = [0, 0], sizes = [8, 32], strides = [1, 1]} : vector<8x64xf32> to vector<8x32xf32>
    %580 = vector.extract_strided_slice %577 {offsets = [0, 0], sizes = [1, 32], strides = [1, 1]} : vector<1x64xf32> to vector<1x32xf32>
    %581 = vector.extract_strided_slice %578 {offsets = [0, 0], sizes = [1, 32], strides = [1, 1]} : vector<1x64xf32> to vector<1x32xf32>
    %cst_71 = arith.constant dense<0.000000e+00> : vector<8xf32>
    %582 = vector.multi_reduction <add>, %579, %cst_71 [1] : vector<8x32xf32> to vector<8xf32>
    %583 = vector.shape_cast %582 : vector<8xf32> to vector<8x1xf32>
    %cst_72 = arith.constant 3.200000e+01 : f32
    %584 = vector.broadcast %cst_72 : f32 to vector<8x1xf32>
    %585 = arith.divf %583, %584 : vector<8x1xf32>
    %586 = vector.broadcast %585 : vector<8x1xf32> to vector<8x32xf32>
    %587 = arith.subf %579, %586 : vector<8x32xf32>
    %588 = arith.mulf %587, %587 : vector<8x32xf32>
    %cst_73 = arith.constant dense<0.000000e+00> : vector<8xf32>
    %589 = vector.multi_reduction <add>, %588, %cst_73 [1] : vector<8x32xf32> to vector<8xf32>
    %590 = vector.shape_cast %589 : vector<8xf32> to vector<8x1xf32>
    %cst_74 = arith.constant 3.200000e+01 : f32
    %591 = vector.broadcast %cst_74 : f32 to vector<8x1xf32>
    %592 = arith.divf %590, %591 : vector<8x1xf32>
    %593 = vector.broadcast %585 : vector<8x1xf32> to vector<8x32xf32>
    %594 = arith.subf %579, %593 : vector<8x32xf32>
    %cst_75 = arith.constant 9.99999974E-6 : f32
    %595 = vector.broadcast %cst_75 : f32 to vector<8x1xf32>
    %596 = arith.addf %592, %595 : vector<8x1xf32>
    %597 = math.rsqrt %596 : vector<8x1xf32>
    %598 = vector.broadcast %597 : vector<8x1xf32> to vector<8x32xf32>
    %599 = arith.mulf %594, %598 : vector<8x32xf32>
    %600 = vector.broadcast %580 : vector<1x32xf32> to vector<8x32xf32>
    %601 = arith.mulf %599, %600 : vector<8x32xf32>
    %602 = vector.broadcast %581 : vector<1x32xf32> to vector<8x32xf32>
    %603 = arith.addf %601, %602 : vector<8x32xf32>
    %604 = vector.extract_strided_slice %576 {offsets = [0, 32], sizes = [8, 32], strides = [1, 1]} : vector<8x64xf32> to vector<8x32xf32>
    %605 = vector.extract_strided_slice %577 {offsets = [0, 32], sizes = [1, 32], strides = [1, 1]} : vector<1x64xf32> to vector<1x32xf32>
    %606 = vector.extract_strided_slice %578 {offsets = [0, 32], sizes = [1, 32], strides = [1, 1]} : vector<1x64xf32> to vector<1x32xf32>
    %cst_76 = arith.constant dense<0.000000e+00> : vector<8xf32>
    %607 = vector.multi_reduction <add>, %604, %cst_76 [1] : vector<8x32xf32> to vector<8xf32>
    %608 = vector.shape_cast %607 : vector<8xf32> to vector<8x1xf32>
    %cst_77 = arith.constant 3.200000e+01 : f32
    %609 = vector.broadcast %cst_77 : f32 to vector<8x1xf32>
    %610 = arith.divf %608, %609 : vector<8x1xf32>
    %611 = vector.broadcast %610 : vector<8x1xf32> to vector<8x32xf32>
    %612 = arith.subf %604, %611 : vector<8x32xf32>
    %613 = arith.mulf %612, %612 : vector<8x32xf32>
    %cst_78 = arith.constant dense<0.000000e+00> : vector<8xf32>
    %614 = vector.multi_reduction <add>, %613, %cst_78 [1] : vector<8x32xf32> to vector<8xf32>
    %615 = vector.shape_cast %614 : vector<8xf32> to vector<8x1xf32>
    %cst_79 = arith.constant 3.200000e+01 : f32
    %616 = vector.broadcast %cst_79 : f32 to vector<8x1xf32>
    %617 = arith.divf %615, %616 : vector<8x1xf32>
    %618 = vector.broadcast %610 : vector<8x1xf32> to vector<8x32xf32>
    %619 = arith.subf %604, %618 : vector<8x32xf32>
    %cst_80 = arith.constant 9.99999974E-6 : f32
    %620 = vector.broadcast %cst_80 : f32 to vector<8x1xf32>
    %621 = arith.addf %617, %620 : vector<8x1xf32>
    %622 = math.rsqrt %621 : vector<8x1xf32>
    %623 = vector.broadcast %622 : vector<8x1xf32> to vector<8x32xf32>
    %624 = arith.mulf %619, %623 : vector<8x32xf32>
    %625 = vector.broadcast %605 : vector<1x32xf32> to vector<8x32xf32>
    %626 = arith.mulf %624, %625 : vector<8x32xf32>
    %627 = vector.broadcast %606 : vector<1x32xf32> to vector<8x32xf32>
    %628 = arith.addf %626, %627 : vector<8x32xf32>
    %629 = tpu.concatenate %603, %628 in 1 : vector<8x32xf32>, vector<8x32xf32> -> vector<8x64xf32>
    %cst_81 = arith.constant 0.000000e+00 : f32
    %630 = vector.broadcast %cst_81 : f32 to vector<8x64xf32>
    %631 = arith.maximumf %629, %630 : vector<8x64xf32>
    %c0_82 = arith.constant 0 : index
    %c0_83 = arith.constant 0 : index
    %632 = vector.load %arg14[%c0_82, %c0_83] : memref<64x128xf32, #tpu.memory_space<vmem>>, vector<64x128xf32>
    %cst_84 = arith.constant dense<0.000000e+00> : vector<8x128xf32>
    %633 = tpu.matmul %631, %632, %cst_84 {dimension_numbers = #tpu.dot_dimension_numbers<[1], [0], [0], [1], [0, 0, 1, 1], [], []>} : vector<8x64xf32>, vector<64x128xf32>, vector<8x128xf32> -> vector<8x128xf32>
    %c0_85 = arith.constant 0 : index
    %c0_86 = arith.constant 0 : index
    %634 = vector.load %arg15[%c0_85, %c0_86] : memref<1x128xf32, #tpu.memory_space<vmem>>, vector<1x128xf32>
    %635 = vector.broadcast %634 : vector<1x128xf32> to vector<8x128xf32>
    %636 = arith.addf %633, %635 : vector<8x128xf32>
    %c0_87 = arith.constant 0 : index
    %c0_88 = arith.constant 0 : index
    %637 = vector.load %arg16[%c0_87, %c0_88] : memref<8x128xf32, #tpu.memory_space<vmem>>, vector<8x128xf32>
    tpu.vector_store %arg16[%c0_87, %c0_88], %636 {strides = array<i32>} : memref<8x128xf32, #tpu.memory_space<vmem>>, vector<8x128xf32>,
    return
  }
  func.func @transform_0(%arg0: i32) -> (i32, i32, i32) {
    %c0_i32 = arith.constant 0 : i32
    %c0_i32_0 = arith.constant 0 : i32
    %c0_i32_1 = arith.constant 0 : i32
    return %c0_i32, %arg0, %c0_i32_0 : i32, i32, i32
  }
  func.func @transform_1(%arg0: i32) -> (i32, i32) {
    %c0_i32 = arith.constant 0 : i32
    %c0_i32_0 = arith.constant 0 : i32
    %c0_i32_1 = arith.constant 0 : i32
    return %c0_i32, %c0_i32_0 : i32, i32
  }
  func.func @transform_2(%arg0: i32) -> (i32, i32) {
    %c0_i32 = arith.constant 0 : i32
    %c0_i32_0 = arith.constant 0 : i32
    %c0_i32_1 = arith.constant 0 : i32
    return %c0_i32, %c0_i32_0 : i32, i32
  }
  func.func @transform_3(%arg0: i32) -> (i32, i32) {
    %c0_i32 = arith.constant 0 : i32
    %c0_i32_0 = arith.constant 0 : i32
    %c0_i32_1 = arith.constant 0 : i32
    return %c0_i32, %c0_i32_0 : i32, i32
  }
  func.func @transform_4(%arg0: i32) -> (i32, i32) {
    %c0_i32 = arith.constant 0 : i32
    %c0_i32_0 = arith.constant 0 : i32
    %c0_i32_1 = arith.constant 0 : i32
    return %c0_i32, %c0_i32_0 : i32, i32
  }
  func.func @transform_5(%arg0: i32) -> (i32, i32) {
    %c0_i32 = arith.constant 0 : i32
    %c0_i32_0 = arith.constant 0 : i32
    %c0_i32_1 = arith.constant 0 : i32
    return %c0_i32, %c0_i32_0 : i32, i32
  }
  func.func @transform_6(%arg0: i32) -> (i32, i32) {
    %c0_i32 = arith.constant 0 : i32
    %c0_i32_0 = arith.constant 0 : i32
    %c0_i32_1 = arith.constant 0 : i32
    return %c0_i32, %c0_i32_0 : i32, i32
  }
  func.func @transform_7(%arg0: i32) -> (i32, i32) {
    %c0_i32 = arith.constant 0 : i32
    %c0_i32_0 = arith.constant 0 : i32
    %c0_i32_1 = arith.constant 0 : i32
    return %c0_i32, %c0_i32_0 : i32, i32
  }
  func.func @transform_8(%arg0: i32) -> (i32, i32) {
    %c0_i32 = arith.constant 0 : i32
    %c0_i32_0 = arith.constant 0 : i32
    %c0_i32_1 = arith.constant 0 : i32
    return %c0_i32, %c0_i32_0 : i32, i32
  }
  func.func @transform_9(%arg0: i32) -> (i32, i32) {
    %c0_i32 = arith.constant 0 : i32
    %c0_i32_0 = arith.constant 0 : i32
    %c0_i32_1 = arith.constant 0 : i32
    return %c0_i32, %c0_i32_0 : i32, i32
  }
  func.func @transform_10(%arg0: i32) -> (i32, i32) {
    %c0_i32 = arith.constant 0 : i32
    %c0_i32_0 = arith.constant 0 : i32
    %c0_i32_1 = arith.constant 0 : i32
    return %c0_i32, %c0_i32_0 : i32, i32
  }
  func.func @transform_11(%arg0: i32) -> (i32, i32) {
    %c0_i32 = arith.constant 0 : i32
    %c0_i32_0 = arith.constant 0 : i32
    %c0_i32_1 = arith.constant 0 : i32
    return %c0_i32, %c0_i32_0 : i32, i32
  }
  func.func @transform_12(%arg0: i32) -> (i32, i32) {
    %c0_i32 = arith.constant 0 : i32
    %c0_i32_0 = arith.constant 0 : i32
    %c0_i32_1 = arith.constant 0 : i32
    return %c0_i32, %c0_i32_0 : i32, i32
  }
  func.func @transform_13(%arg0: i32) -> (i32, i32) {
    %c0_i32 = arith.constant 0 : i32
    %c0_i32_0 = arith.constant 0 : i32
    %c0_i32_1 = arith.constant 0 : i32
    return %c0_i32, %c0_i32_0 : i32, i32
  }
  func.func @transform_14(%arg0: i32) -> (i32, i32) {
    %c0_i32 = arith.constant 0 : i32
    %c0_i32_0 = arith.constant 0 : i32
    %c0_i32_1 = arith.constant 0 : i32
    return %c0_i32, %c0_i32_0 : i32, i32
  }
  func.func @transform_15(%arg0: i32) -> (i32, i32) {
    %c0_i32 = arith.constant 0 : i32
    %c0_i32_0 = arith.constant 0 : i32
    return %arg0, %c0_i32 : i32, i32
  }
}

</mosaic_0001>

<bundles_post_ra>
// kernel: multi_task_forward.1
= control target key start
LH: loop header
LB: loop body
LE: loop exit
PB: predicated region body
PF: predicated region fallthrough
CT: control target
= control target key end

     0   :  { %vm119_vm0 = vcmask 261120   ;;  %v4072_v28 = vmov 0.0   ;;  %v52_v44 = vlaneseq  ;;  %vm254_vm12 = vcmask 523264   ;;  %s2698_s25 = smov 96   ;;  %s4056_s1 = inlined_call_operand.vmem [shape: f32[32,256], index: 1, kind: input, shape index: {}]   ;;  %s4057_s0 = inlined_call_operand.vmem [shape: f32[8,8,32], index: 0, kind: input, shape index: {}]   ;;  %s4058_s2 = inlined_call_operand.vmem [shape: f32[64,256], index: 2, kind: input, shape index: {}]   ;;  %s4059_s3 = inlined_call_operand.vmem [shape: f32[1,256], index: 3, kind: input, shape index: {}]   ;;  %s4060_s4 = inlined_call_operand.vmem [shape: f32[64,256], index: 4, kind: input, shape index: {}]   ;;  %s4061_s5 = inlined_call_operand.vmem [shape: f32[64,256], index: 5, kind: input, shape index: {}]   ;;  %s4062_s6 = inlined_call_operand.vmem [shape: f32[1,256], index: 6, kind: input, shape index: {}]   ;;  %s4063_s7 = inlined_call_operand.vmem [shape: f32[1,64], index: 7, kind: input, shape index: {}]   ;;  %s4064_s8 = inlined_call_operand.<no memory space> [shape: f32[1,1], index: 8, kind: input, shape index: {}]   ;;  %s4065_s10 = inlined_call_operand.vmem [shape: f32[1,64], index: 10, kind: input, shape index: {}]   ;;  %s4066_s9 = inlined_call_operand.vmem [shape: f32[64,64], index: 9, kind: input, shape index: {}]   ;;  %s4067_s11 = inlined_call_operand.vmem [shape: f32[1,64], index: 11, kind: input, shape index: {}]   ;;  %s4068_s12 = inlined_call_operand.vmem [shape: f32[1,64], index: 12, kind: input, shape index: {}]   ;;  %s4069_s14 = inlined_call_operand.vmem [shape: f32[1,128], index: 14, kind: input, shape index: {}]   ;;  %s4070_s13 = inlined_call_operand.vmem [shape: f32[64,128], index: 13, kind: input, shape index: {}]   ;;  %s4071_s15 = inlined_call_operand.vmem [shape: f32[8,128], index: 15, kind: output, shape index: {}]  }
   0x1   :  { %v117_v0 = vld [vmem:[%s4056_s1 + $0x30] sm:$0xff]  ;;  %v118_v1 = vld [vmem:[%s4056_s1 + $0x38] sm:$0xff]  ;;  %v115_v2 = vld [vmem:[%s4056_s1 + $0x20] sm:$0xff] }
   0x2   :  { %156 = vmatpush.msra.mxu0 %v117_v0  ;;  %197 = vmatpush.msra.mxu1 %v118_v1  ;;  %v116_v3 = vld [vmem:[%s4056_s1 + $0x28] sm:$0xff]  ;;  %v113_v4 = vld [vmem:[%s4056_s1 + $0x10] sm:$0xff]  ;;  %v114_v5 = vld [vmem:[%s4056_s1 + $0x18] sm:$0xff]  ;;  %v53_v47 = vand.u32 127, %v52_v44 }
   0x3   :  { %v111_v6 = vld [vmem:[%s4056_s1] sm:$0xff]  ;;  %v112_v7 = vld [vmem:[%s4056_s1 + $0x8] sm:$0xff]  ;;  %v2812_v9 = vld [vmem:[%s4058_s2 + $0x70] sm:$0xff] }
   0x4   :  { %157 = vmatpush.msra.mxu0 %v115_v2  ;;  %198 = vmatpush.msra.mxu1 %v116_v3  ;;  %v87_v8 = vld [vmem:[%s4057_s0] sm:$0xff]  ;;  %v2817_v10 = vld [vmem:[%s4058_s2 + $0x78] sm:$0xff]  ;;  %v88_v11 = vld [vmem:[%s4057_s0 + $0x8] sm:$0xff]  ;;  %v3017_v50 = vadd.s32 128, %v53_v47  ;;  %v59_v53 = vand.u32 63, %v53_v47 }
   0x5   :  { %266 = vmatpush.msra.mxu2 %v2812_v9  ;;  %286 = vmatpush.msra.mxu3 %v2817_v10  ;;  %v2829_v12 = vld [vmem:[%s4058_s2 + $0x60] sm:$0xff]  ;;  %v2834_v13 = vld [vmem:[%s4058_s2 + $0x68] sm:$0xff]  ;;  %v2841_v14 = vld [vmem:[%s4058_s2 + $0x50] sm:$0xff] }
   0x6   :  { %158 = vmatpush.msra.mxu0 %v113_v4  ;;  %199 = vmatpush.msra.mxu1 %v114_v5  ;;  %v2846_v15 = vld [vmem:[%s4058_s2 + $0x58] sm:$0xff]  ;;  %v2853_v16 = vld [vmem:[%s4058_s2 + $0x40] sm:$0xff]  ;;  %v2858_v17 = vld [vmem:[%s4058_s2 + $0x48] sm:$0xff]  ;;  %v66_v54 = vand.u32 63, %v3017_v50  ;;  %vm3024_vm1 = vcmp.lt.s32.totalorder %v59_v53, 32  ;;  %vm84_vm8 = vcmp.lt.s32.totalorder %v3017_v50, 192 }
   0x7   :  { %267 = vmatpush.msra.mxu2 %v2829_v12  ;;  %287 = vmatpush.msra.mxu3 %v2834_v13  ;;  %v2867_v18 = vld [vmem:[%s4058_s2 + $0x30] sm:$0xff]  ;;  %v2872_v19 = vld [vmem:[%s4058_s2 + $0x38] sm:$0xff]  ;;  %v2888_v21 = vld [vmem:[%s4058_s2 + $0x20] sm:$0xff] }
   0x8   :  { %159 = vmatpush.msra.mxu0 %v111_v6  ;;  %200 = vmatpush.msra.mxu1 %v112_v7  ;;  %v89_v20 = vld [vmem:[%s4057_s0 + $0x10] sm:$0xff]  ;;  %v2893_v22 = vld [vmem:[%s4058_s2 + $0x28] sm:$0xff]  ;;  %v2905_v24 = vld [vmem:[%s4058_s2 + $0x18] sm:$0xff]  ;;  %vm3028_vm2 = vcmp.lt.s32.totalorder %v66_v54, 32 }
   0x9   :  { %2371 = vmatmul.msk.f32.vlgmr.msra.gmra.mxu0 %vm119_vm0, %v87_v8  ;;  %2379 = vmatmul.msk.f32.vlgmr.msra.gmra.mxu1 %vm119_vm0, %v87_v8  ;;  %v2900_v23 = vld [vmem:[%s4058_s2 + $0x10] sm:$0xff]  ;;  %v2912_v25 = vld [vmem:[%s4058_s2] sm:$0xff]  ;;  %v2917_v26 = vld [vmem:[%s4058_s2 + $0x8] sm:$0xff] }
   0xa   :  { %690 = vmatpush.msrb.mxu1 %v2817_v10  ;;  %670 = vmatpush.msrb.mxu0 %v2812_v9  ;;  %v90_v27 = vld [vmem:[%s4057_s0 + $0x18] sm:$0xff]  ;;  %v91_v29 = vld [vmem:[%s4057_s0 + $0x20] sm:$0xff]  ;;  %v92_v30 = vld [vmem:[%s4057_s0 + $0x28] sm:$0xff] }
   0xb   :  { %268 = vmatpush.msra.mxu2 %v2841_v14  ;;  %288 = vmatpush.msra.mxu3 %v2846_v15  ;;  %v93_v31 = vld [vmem:[%s4057_s0 + $0x30] sm:$0xff]  ;;  %v94_v32 = vld [vmem:[%s4057_s0 + $0x38] sm:$0xff]  ;;  %v226_v35 = vld [vmem:[%s4059_s3] sm:$0x3]  ;;  %s2696_s0 = smov 64  }
   0xc   :  { %691 = vmatpush.msrb.mxu1 %v2834_v13  ;;  %671 = vmatpush.msrb.mxu0 %v2829_v12  ;;  %v228_v36 = vperm.slane %v226_v35, 0  ;;  %v229_v37 = vperm.slane %v226_v35, 1 }
   0xd   :  { %269 = vmatpush.msra.mxu2 %v2853_v16  ;;  %289 = vmatpush.msra.mxu3 %v2858_v17 }
   0xe   :  { %692 = vmatpush.msrb.mxu1 %v2846_v15  ;;  %672 = vmatpush.msrb.mxu0 %v2841_v14 }
   0xf   :  { %270 = vmatpush.msra.mxu2 %v2867_v18  ;;  %290 = vmatpush.msra.mxu3 %v2872_v19 }
  0x10   :  { %693 = vmatpush.msrb.mxu1 %v2858_v17  ;;  %673 = vmatpush.msrb.mxu0 %v2853_v16 }
  0x11   :  { %2372 = vmatmul.msk.f32.gmra.mxu0 %vm119_vm0, %v88_v11  ;;  %2380 = vmatmul.msk.f32.gmra.mxu1 %vm119_vm0, %v88_v11 }
  0x12   :  { %271 = vmatpush.msra.mxu2 %v2888_v21  ;;  %291 = vmatpush.msra.mxu3 %v2893_v22 }
  0x13   :  { %694 = vmatpush.msrb.mxu1 %v2872_v19  ;;  %674 = vmatpush.msrb.mxu0 %v2867_v18 }
  0x14   :  { %272 = vmatpush.msra.mxu2 %v2900_v23  ;;  %292 = vmatpush.msra.mxu3 %v2905_v24 }
  0x15   :  { %695 = vmatpush.msrb.mxu1 %v2893_v22  ;;  %675 = vmatpush.msrb.mxu0 %v2888_v21 }
  0x16   :  { %273 = vmatpush.msra.mxu2 %v2912_v25  ;;  %293 = vmatpush.msra.mxu3 %v2917_v26 }
  0x17   :  { %274 = vmatmul.f32.vlgmr.msra.gmra.mxu2 %v4072_v28  ;;  %294 = vmatmul.f32.vlgmr.msra.gmra.mxu3 %v4072_v28 }
  0x18   :  { %370 = vmatpush.msrb.mxu2 %v2812_v9  ;;  %390 = vmatpush.msrb.mxu3 %v2817_v10 }
  0x19   :  { %2373 = vmatmul.msk.f32.gmra.mxu0 %vm119_vm0, %v89_v20  ;;  %2381 = vmatmul.msk.f32.gmra.mxu1 %vm119_vm0, %v89_v20 }
  0x1a   :  { %371 = vmatpush.msrb.mxu2 %v2829_v12  ;;  %391 = vmatpush.msrb.mxu3 %v2834_v13 }
  0x1b   :  { %696 = vmatpush.msrb.mxu1 %v2905_v24  ;;  %676 = vmatpush.msrb.mxu0 %v2900_v23 }
  0x1c   :  { %372 = vmatpush.msrb.mxu2 %v2841_v14  ;;  %392 = vmatpush.msrb.mxu3 %v2846_v15 }
  0x1d   :  { %697 = vmatpush.msrb.mxu1 %v2917_v26  ;;  %677 = vmatpush.msrb.mxu0 %v2912_v25 }
  0x1e   :  { %373 = vmatpush.msrb.mxu2 %v2853_v16  ;;  %393 = vmatpush.msrb.mxu3 %v2858_v17 }
  0x1f   :  { %870 = vmatpush.msra.mxu0 %v2812_v9  ;;  %890 = vmatpush.msra.mxu1 %v2817_v10 }
  0x20   :  { %374 = vmatpush.msrb.mxu2 %v2867_v18  ;;  %394 = vmatpush.msrb.mxu3 %v2872_v19 }
  0x21   :  { %2374 = vmatmul.msk.f32.gmra.mxu0 %vm119_vm0, %v90_v27  ;;  %2382 = vmatmul.msk.f32.gmra.mxu1 %vm119_vm0, %v90_v27 }
  0x22   :  { %375 = vmatpush.msrb.mxu2 %v2888_v21  ;;  %395 = vmatpush.msrb.mxu3 %v2893_v22 }
  0x23   :  { %871 = vmatpush.msra.mxu0 %v2829_v12  ;;  %891 = vmatpush.msra.mxu1 %v2834_v13 }
  0x24   :  { %376 = vmatpush.msrb.mxu2 %v2900_v23  ;;  %396 = vmatpush.msrb.mxu3 %v2905_v24 }
  0x25   :  { %872 = vmatpush.msra.mxu0 %v2841_v14  ;;  %892 = vmatpush.msra.mxu1 %v2846_v15 }
  0x26   :  { %377 = vmatpush.msrb.mxu2 %v2912_v25  ;;  %397 = vmatpush.msrb.mxu3 %v2917_v26 }
  0x27   :  { %873 = vmatpush.msra.mxu0 %v2853_v16  ;;  %893 = vmatpush.msra.mxu1 %v2858_v17 }
  0x28   :  { %470 = vmatpush.msra.mxu2 %v2812_v9  ;;  %490 = vmatpush.msra.mxu3 %v2817_v10 }
  0x29   :  { %2375 = vmatmul.msk.f32.gmra.mxu0 %vm119_vm0, %v91_v29  ;;  %2383 = vmatmul.msk.f32.gmra.mxu1 %vm119_vm0, %v91_v29 }
  0x2a   :  { %471 = vmatpush.msra.mxu2 %v2829_v12  ;;  %491 = vmatpush.msra.mxu3 %v2834_v13 }
  0x2b   :  { %874 = vmatpush.msra.mxu0 %v2867_v18  ;;  %894 = vmatpush.msra.mxu1 %v2872_v19 }
  0x2c   :  { %472 = vmatpush.msra.mxu2 %v2841_v14  ;;  %492 = vmatpush.msra.mxu3 %v2846_v15 }
  0x2d   :  { %875 = vmatpush.msra.mxu0 %v2888_v21  ;;  %895 = vmatpush.msra.mxu1 %v2893_v22 }
  0x2e   :  { %473 = vmatpush.msra.mxu2 %v2853_v16  ;;  %493 = vmatpush.msra.mxu3 %v2858_v17 }
  0x2f   :  { %876 = vmatpush.msra.mxu0 %v2900_v23  ;;  %896 = vmatpush.msra.mxu1 %v2905_v24 }
  0x30   :  { %474 = vmatpush.msra.mxu2 %v2867_v18  ;;  %494 = vmatpush.msra.mxu3 %v2872_v19 }
  0x31   :  { %2376 = vmatmul.msk.f32.gmra.mxu0 %vm119_vm0, %v92_v30  ;;  %2384 = vmatmul.msk.f32.gmra.mxu1 %vm119_vm0, %v92_v30 }
  0x32   :  { %475 = vmatpush.msra.mxu2 %v2888_v21  ;;  %495 = vmatpush.msra.mxu3 %v2893_v22 }
  0x33   :  { %877 = vmatpush.msra.mxu0 %v2912_v25  ;;  %897 = vmatpush.msra.mxu1 %v2917_v26 }
  0x34   :  { %476 = vmatpush.msra.mxu2 %v2900_v23  ;;  %496 = vmatpush.msra.mxu3 %v2905_v24 }
  0x36   :  { %477 = vmatpush.msra.mxu2 %v2912_v25  ;;  %497 = vmatpush.msra.mxu3 %v2917_v26 }
  0x39   :  { %2377 = vmatmul.msk.f32.gmra.mxu0 %vm119_vm0, %v93_v31  ;;  %2385 = vmatmul.msk.f32.gmra.mxu1 %vm119_vm0, %v93_v31 }
  0x41   :  { %2378 = vmatmul.msk.f32.gmra.mxu0 %vm119_vm0, %v94_v32  ;;  %2386 = vmatmul.msk.f32.gmra.mxu1 %vm119_vm0, %v94_v32 }
  0x86   :  { %v161_v33 = vpop.f32.mrf.mxu0  ;;  %v202_v34 = vpop.f32.mrf.mxu1 }
  0x8e   :  { %v164_v38 = vpop.f32.mrf.mxu0  ;;  %v205_v39 = vpop.f32.mrf.mxu1 }
  0x8f   :  { %v3009_v40 = vadd.f32 %v228_v36, %v164_v38  ;;  %v3011_v41 = vadd.f32 %v229_v37, %v205_v39 }
  0x96   :  { %v167_v42 = vpop.f32.mrf.mxu0  ;;  %v208_v43 = vpop.f32.mrf.mxu1 }
  0x97   :  { %v3013_v45 = vadd.f32 %v228_v36, %v167_v42  ;;  %v3015_v46 = vadd.f32 %v229_v37, %v208_v43  ;;  %v3092_v42 = vadd.f32 %v228_v36, %v161_v33  ;;  %v3094_v43 = vadd.f32 %v229_v37, %v202_v34 }
  0x9e   :  { %v170_v48 = vpop.f32.mrf.mxu0  ;;  %v211_v49 = vpop.f32.mrf.mxu1 }
  0x9f   :  { %v3019_v51 = vadd.f32 %v228_v36, %v170_v48  ;;  %v3021_v52 = vadd.f32 %v229_v37, %v211_v49  ;;  %v275_v48 = vpop.f32.mrf.mxu2  ;;  %v295_v49 = vpop.f32.mrf.mxu3 }
  0xa6   :  { %v173_v55 = vpop.f32.mrf.mxu0  ;;  %v214_v56 = vpop.f32.mrf.mxu1 }
  0xa7   :  { %v3032_v59 = vadd.f32 %v228_v36, %v173_v55  ;;  %v3034_v60 = vadd.f32 %v229_v37, %v214_v56 }
  0xa9   :  { %v555_v61 = vsel %vm3024_vm1, %v3019_v51, %v3032_v59  ;;  %v556_v62 = vsel %vm3028_vm2, %v3021_v52, %v3034_v60  ;;  %v655_v63 = vsel %vm3024_vm1, %v3032_v59, %v3019_v51  ;;  %v656_v0 = vsel %vm3028_vm2, %v3034_v60, %v3021_v52 }
  0xae   :  { %v176_v1 = vpop.f32.mrf.mxu0  ;;  %v217_v2 = vpop.f32.mrf.mxu1 }
  0xaf   :  { %v3052_v3 = vadd.f32 %v228_v36, %v176_v1  ;;  %v3054_v4 = vadd.f32 %v229_v37, %v217_v2 }
  0xb1   :  { %v455_v5 = vsel %vm3024_vm1, %v3013_v45, %v3052_v3  ;;  %v456_v6 = vsel %vm3028_vm2, %v3015_v46, %v3054_v4 }
  0xb6   :  { %v179_v11 = vpop.f32.mrf.mxu0  ;;  %v220_v20 = vpop.f32.mrf.mxu1 }
  0xb7   :  { %v3072_v27 = vadd.f32 %v228_v36, %v179_v11  ;;  %v3074_v29 = vadd.f32 %v229_v37, %v220_v20 }
  0xb9   :  { %v355_v30 = vsel %vm3024_vm1, %v3009_v40, %v3072_v27  ;;  %v356_v31 = vsel %vm3028_vm2, %v3011_v41, %v3074_v29 }
  0xbe   :  { %v182_v38 = vpop.f32.mrf.mxu0  ;;  %v223_v39 = vpop.f32.mrf.mxu1 }
  0xbf   :  { %v3096_v44 = vadd.f32 %v228_v36, %v182_v38  ;;  %v3098_v47 = vadd.f32 %v229_v37, %v223_v39 }
  0xc1   :  { %v252_v53 = vsel %vm3024_vm1, %v3092_v42, %v3096_v44  ;;  %v253_v54 = vsel %vm3028_vm2, %v3094_v43, %v3098_v47 }
  0xc2   :  { %v298_v36 = vadd.f32 %v275_v48, %v252_v53  ;;  %v299_v37 = vadd.f32 %v295_v49, %v253_v54 }
  0xc4   :  { %v2387_v55 = vmul.f32 -1.442695, %v298_v36  ;;  %v2388_v56 = vmul.f32 -1.442695, %v299_v37 }
  0xc6   :  { %2479 = vpow2.f32 %v2387_v55 }
  0xc7   :  { %2481 = vpow2.f32 %v2388_v56 }
  0xcc   :  { %v2480_v1 = vpop.eup %2479 }
  0xcd   :  { %v2482_v2 = vpop.eup %2481  ;;  %v306_v11 = vadd.f32 1.0, %v2480_v1 }
  0xce   :  { %v307_v20 = vadd.f32 1.0, %v2482_v2 }
  0xcf   :  { %2483 = vrcp.f32 %v306_v11  ;;  %v319_v32 = vand.u32 2147483648, %v306_v11  ;;  %v317_v49 = vand.u32 2147483647, %v306_v11  ;;  %vm313_vm5 = vweird.f32 %v306_v11 }
  0xd0   :  { %2485 = vrcp.f32 %v307_v20  ;;  %v334_v53 = vand.u32 2147483648, %v307_v20  ;;  %v332_v36 = vand.u32 2147483647, %v307_v20  ;;  %vm328_vm7 = vweird.f32 %v307_v20 }
  0xd1   :  { %2487 = vtanh.f32 %v299_v37  ;;  %v320_v56 = vor.u32 1.1754944e-38, %v319_v32  ;;  %vm318_vm9 = vcmp.eq.f32.partialorder %v317_v49, 8.507059e+37 }
  0xd2   :  { %vm333_vm11 = vcmp.eq.f32.partialorder %v332_v36, 8.507059e+37 }
  0xd5   :  { %v2484_v38 = vpop.eup %2483 }
  0xd6   :  { %v2486_v39 = vpop.eup %2485  ;;  %v309_v28 = vmul.f32 %v2484_v38, %v306_v11  ;;  %vm314_vm3 = vweird.f32 %v2484_v38 }
  0xd7   :  { %v324_v33 = vmul.f32 %v2486_v39, %v307_v20  ;;  %vm329_vm4 = vweird.f32 %v2486_v39  ;;  %vm315_vm6 = vmor %vm313_vm5, %vm314_vm3 }
  0xd8   :  { %v310_v35 = vsub.f32 1.0, %v309_v28  ;;  %vm330_vm10 = vmor %vm328_vm7, %vm329_vm4  ;;  %v335_v28 = vor.u32 1.1754944e-38, %v334_v53 }
  0xd9   :  { %v325_v34 = vsub.f32 1.0, %v324_v33  ;;  %v2488_v33 = vpop.eup %2487 }
  0xda   :  { %v311_v48 = vmul.f32 %v2484_v38, %v310_v35 }
  0xdb   :  { %v326_v54 = vmul.f32 %v2486_v39, %v325_v34 }
  0xdc   :  { %v312_v55 = vadd.f32 %v2484_v38, %v311_v48 }
  0xdd   :  { %v327_v1 = vadd.f32 %v2486_v39, %v326_v54 }
  0xde   :  { %v316_v2 = vsel %vm315_vm6, %v2484_v38, %v312_v55 }
  0xdf   :  { %v321_v35 = vsel %vm318_vm9, %v320_v56, %v316_v2  ;;  %v331_v37 = vsel %vm330_vm10, %v2486_v39, %v327_v1 }
  0xe0   :  { %v336_v8 = vsel %vm333_vm11, %v335_v28, %v331_v37  ;;  %v346_v32 = vmul.f32 0.0, %v321_v35 }
  0xe1   :  { %v345_v34 = vsel %vm84_vm8, %v2488_v33, %v336_v8 }
  0xe2   :  { %v347_v48 = vmul.f32 %v345_v34, %v321_v35 }
  0xe4   :  { %349 = vrot.lane.b32.xlu0 %v347_v48, %s2696_s0 }
 0x156   :  { %v350_v11 = vpop.permute.xlu0 %349 }
 0x157   :  { %v3120_v20 = vadd.f32 %v350_v11, %v346_v32 }
 0x159   :  { %2489 = vtanh.f32 %v3120_v20 }
 0x15f   :  { %v2490_v38 = vpop.eup %2489 }
 0x160   :  { %v354_v49 = vmul.f32 %v2490_v38, %v345_v34 }
 0x162   :  { %358 = vrot.lane.b32.xlu0 %v354_v49, %s2696_s0 }
 0x1d4   :  { %v3124_v39 = vpop.permute.xlu0 %358 }
 0x1d5   :  { %2389 = vmatmul.msk.f32.vlgmr.msrb.gmra.mxu2 %vm254_vm12, %v3124_v39  ;;  %2390 = vmatmul.msk.f32.vlgmr.msrb.gmra.mxu3 %vm254_vm12, %v3124_v39 }
 0x1d6   :  { %570 = vmatpush.msrb.mxu2 %v2812_v9  ;;  %590 = vmatpush.msrb.mxu3 %v2817_v10 }
 0x1d8   :  { %571 = vmatpush.msrb.mxu2 %v2829_v12  ;;  %591 = vmatpush.msrb.mxu3 %v2834_v13 }
 0x1da   :  { %572 = vmatpush.msrb.mxu2 %v2841_v14  ;;  %592 = vmatpush.msrb.mxu3 %v2846_v15 }
 0x1dc   :  { %573 = vmatpush.msrb.mxu2 %v2853_v16  ;;  %593 = vmatpush.msrb.mxu3 %v2858_v17 }
 0x1de   :  { %574 = vmatpush.msrb.mxu2 %v2867_v18  ;;  %594 = vmatpush.msrb.mxu3 %v2872_v19 }
 0x1e0   :  { %575 = vmatpush.msrb.mxu2 %v2888_v21  ;;  %595 = vmatpush.msrb.mxu3 %v2893_v22 }
 0x1e2   :  { %576 = vmatpush.msrb.mxu2 %v2900_v23  ;;  %596 = vmatpush.msrb.mxu3 %v2905_v24 }
 0x1e4   :  { %577 = vmatpush.msrb.mxu2 %v2912_v25  ;;  %597 = vmatpush.msrb.mxu3 %v2917_v26 }
 0x258   :  { %v379_v8 = vpop.f32.mrf.mxu2  ;;  %v399_v53 = vpop.f32.mrf.mxu3 }
 0x259   :  { %v402_v54 = vadd.f32 %v379_v8, %v355_v30  ;;  %v403_v36 = vadd.f32 %v399_v53, %v356_v31 }
 0x25b   :  { %v2391_v55 = vmul.f32 -1.442695, %v402_v54  ;;  %v2392_v56 = vmul.f32 -1.442695, %v403_v36 }
 0x25d   :  { %2491 = vpow2.f32 %v2391_v55 }
 0x25e   :  { %2493 = vpow2.f32 %v2392_v56 }
 0x263   :  { %v2492_v1 = vpop.eup %2491 }
 0x264   :  { %v2494_v2 = vpop.eup %2493  ;;  %v410_v28 = vadd.f32 1.0, %v2492_v1 }
 0x265   :  { %v411_v33 = vadd.f32 1.0, %v2494_v2 }
 0x266   :  { %2495 = vrcp.f32 %v410_v28  ;;  %v423_v32 = vand.u32 2147483648, %v410_v28  ;;  %v421_v31 = vand.u32 2147483647, %v410_v28  ;;  %vm417_vm15 = vweird.f32 %v410_v28 }
 0x267   :  { %2497 = vrcp.f32 %v411_v33  ;;  %v438_v49 = vand.u32 2147483648, %v411_v33  ;;  %v436_v53 = vand.u32 2147483647, %v411_v33  ;;  %vm432_vm4 = vweird.f32 %v411_v33 }
 0x268   :  { %2499 = vtanh.f32 %v403_v36  ;;  %v424_v55 = vor.u32 1.1754944e-38, %v423_v32  ;;  %vm422_vm5 = vcmp.eq.f32.partialorder %v421_v31, 8.507059e+37 }
 0x269   :  { %v439_v2 = vor.u32 1.1754944e-38, %v438_v49  ;;  %vm437_vm7 = vcmp.eq.f32.partialorder %v436_v53, 8.507059e+37 }
 0x26c   :  { %v2496_v35 = vpop.eup %2495 }
 0x26d   :  { %v2498_v37 = vpop.eup %2497  ;;  %v413_v34 = vmul.f32 %v2496_v35, %v410_v28  ;;  %vm418_vm13 = vweird.f32 %v2496_v35 }
 0x26e   :  { %v428_v30 = vmul.f32 %v2498_v37, %v411_v33  ;;  %vm433_vm14 = vweird.f32 %v2498_v37  ;;  %vm419_vm3 = vmor %vm417_vm15, %vm418_vm13  ;;  %v2500_v36 = vpop.eup %2499 }
 0x26f   :  { %v414_v48 = vsub.f32 1.0, %v413_v34  ;;  %vm434_vm6 = vmor %vm432_vm4, %vm433_vm14 }
 0x270   :  { %v429_v11 = vsub.f32 1.0, %v428_v30 }
 0x271   :  { %v415_v38 = vmul.f32 %v2496_v35, %v414_v48 }
 0x272   :  { %v430_v8 = vmul.f32 %v2498_v37, %v429_v11 }
 0x273   :  { %v416_v54 = vadd.f32 %v2496_v35, %v415_v38 }
 0x274   :  { %v431_v56 = vadd.f32 %v2498_v37, %v430_v8 }
 0x275   :  { %v420_v1 = vsel %vm419_vm3, %v2496_v35, %v416_v54 }
 0x276   :  { %v425_v34 = vsel %vm422_vm5, %v424_v55, %v420_v1  ;;  %v435_v30 = vsel %vm434_vm6, %v2498_v37, %v431_v56 }
 0x277   :  { %v440_v48 = vsel %vm437_vm7, %v439_v2, %v435_v30  ;;  %v446_v28 = vmul.f32 %v425_v34, %v3120_v20 }
 0x278   :  { %v445_v11 = vsel %vm84_vm8, %v2500_v36, %v440_v48 }
 0x279   :  { %v447_v7 = vmul.f32 %v445_v11, %v425_v34 }
 0x27b   :  { %449 = vrot.lane.b32.xlu1 %v447_v7, %s2696_s0 }
 0x2ed   :  { %v450_v32 = vpop.permute.xlu1 %449 }
 0x2ee   :  { %v3160_v38 = vadd.f32 %v450_v32, %v446_v28 }
 0x2f0   :  { %2501 = vtanh.f32 %v3160_v38 }
 0x2f6   :  { %v2502_v33 = vpop.eup %2501 }
 0x2f7   :  { %v454_v35 = vmul.f32 %v2502_v33, %v445_v11 }
 0x2f9   :  { %458 = vrot.lane.b32.xlu1 %v454_v35, %s2696_s0 }
 0x36b   :  { %v3164_v37 = vpop.permute.xlu1 %458 }
 0x36c   :  { %2393 = vmatmul.msk.f32.vlgmr.msra.gmra.mxu2 %vm254_vm12, %v3164_v37  ;;  %2394 = vmatmul.msk.f32.vlgmr.msra.gmra.mxu3 %vm254_vm12, %v3164_v37 }
 0x36d   :  { %770 = vmatpush.msra.mxu2 %v2812_v9  ;;  %790 = vmatpush.msra.mxu3 %v2817_v10 }
 0x36f   :  { %771 = vmatpush.msra.mxu2 %v2829_v12  ;;  %791 = vmatpush.msra.mxu3 %v2834_v13 }
 0x371   :  { %772 = vmatpush.msra.mxu2 %v2841_v14  ;;  %792 = vmatpush.msra.mxu3 %v2846_v15 }
 0x373   :  { %773 = vmatpush.msra.mxu2 %v2853_v16  ;;  %793 = vmatpush.msra.mxu3 %v2858_v17 }
 0x375   :  { %774 = vmatpush.msra.mxu2 %v2867_v18  ;;  %794 = vmatpush.msra.mxu3 %v2872_v19 }
 0x377   :  { %775 = vmatpush.msra.mxu2 %v2888_v21  ;;  %795 = vmatpush.msra.mxu3 %v2893_v22 }
 0x379   :  { %776 = vmatpush.msra.mxu2 %v2900_v23  ;;  %796 = vmatpush.msra.mxu3 %v2905_v24 }
 0x37b   :  { %777 = vmatpush.msra.mxu2 %v2912_v25  ;;  %797 = vmatpush.msra.mxu3 %v2917_v26 }
 0x3ef   :  { %v479_v7 = vpop.f32.mrf.mxu2  ;;  %v499_v20 = vpop.f32.mrf.mxu3 }
 0x3f0   :  { %v502_v31 = vadd.f32 %v479_v7, %v455_v5  ;;  %v503_v49 = vadd.f32 %v499_v20, %v456_v6 }
 0x3f2   :  { %v2395_v8 = vmul.f32 -1.442695, %v502_v31  ;;  %v2396_v53 = vmul.f32 -1.442695, %v503_v49 }
 0x3f4   :  { %2503 = vpow2.f32 %v2395_v8 }
 0x3f5   :  { %2505 = vpow2.f32 %v2396_v53 }
 0x3fa   :  { %v2504_v54 = vpop.eup %2503 }
 0x3fb   :  { %v2506_v55 = vpop.eup %2505  ;;  %v510_v56 = vadd.f32 1.0, %v2504_v54 }
 0x3fc   :  { %v511_v1 = vadd.f32 1.0, %v2506_v55 }
 0x3fd   :  { %2507 = vrcp.f32 %v510_v56  ;;  %v523_v48 = vand.u32 2147483648, %v510_v56  ;;  %v521_v6 = vand.u32 2147483647, %v510_v56  ;;  %vm517_vm11 = vweird.f32 %v510_v56 }
 0x3fe   :  { %2509 = vrcp.f32 %v511_v1  ;;  %v538_v32 = vand.u32 2147483648, %v511_v1  ;;  %v536_v35 = vand.u32 2147483647, %v511_v1  ;;  %vm532_vm14 = vweird.f32 %v511_v1 }
 0x3ff   :  { %2511 = vtanh.f32 %v503_v49  ;;  %v524_v20 = vor.u32 1.1754944e-38, %v523_v48  ;;  %vm522_vm15 = vcmp.eq.f32.partialorder %v521_v6, 8.507059e+37 }
 0x400   :  { %v539_v53 = vor.u32 1.1754944e-38, %v538_v32  ;;  %vm537_vm4 = vcmp.eq.f32.partialorder %v536_v35, 8.507059e+37 }
 0x403   :  { %v2508_v2 = vpop.eup %2507 }
 0x404   :  { %v2510_v36 = vpop.eup %2509  ;;  %v513_v34 = vmul.f32 %v2508_v2, %v510_v56  ;;  %vm518_vm9 = vweird.f32 %v2508_v2 }
 0x405   :  { %v528_v5 = vmul.f32 %v2510_v36, %v511_v1  ;;  %vm533_vm10 = vweird.f32 %v2510_v36  ;;  %vm519_vm13 = vmor %vm517_vm11, %vm518_vm9  ;;  %v2512_v49 = vpop.eup %2511 }
 0x406   :  { %v514_v30 = vsub.f32 1.0, %v513_v34  ;;  %vm534_vm3 = vmor %vm532_vm14, %vm533_vm10 }
 0x407   :  { %v529_v11 = vsub.f32 1.0, %v528_v5 }
 0x408   :  { %v515_v28 = vmul.f32 %v2508_v2, %v514_v30 }
 0x409   :  { %v530_v33 = vmul.f32 %v2510_v36, %v529_v11 }
 0x40a   :  { %v516_v7 = vadd.f32 %v2508_v2, %v515_v28 }
 0x40b   :  { %v531_v31 = vadd.f32 %v2510_v36, %v530_v33 }
 0x40c   :  { %v520_v8 = vsel %vm519_vm13, %v2508_v2, %v516_v7 }
 0x40d   :  { %v525_v54 = vsel %vm522_vm15, %v524_v20, %v520_v8  ;;  %v535_v55 = vsel %vm534_vm3, %v2510_v36, %v531_v31 }
 0x40e   :  { %v540_v34 = vsel %vm537_vm4, %v539_v53, %v535_v55  ;;  %v546_v56 = vmul.f32 %v525_v54, %v3160_v38 }
 0x40f   :  { %v545_v5 = vsel %vm84_vm8, %v2512_v49, %v540_v34 }
 0x410   :  { %v547_v30 = vmul.f32 %v545_v5, %v525_v54 }
 0x412   :  { %549 = vrot.lane.b32.xlu2 %v547_v30, %s2696_s0 }
 0x46c   :  { %v550_v48 = vpop.permute.xlu2 %549 }
 0x46d   :  { %v3200_v11 = vadd.f32 %v550_v48, %v546_v56 }
 0x46f   :  { %2513 = vtanh.f32 %v3200_v11 }
 0x475   :  { %v2514_v1 = vpop.eup %2513 }
 0x476   :  { %v554_v2 = vmul.f32 %v2514_v1, %v545_v5 }
 0x478   :  { %558 = vrot.lane.b32.xlu2 %v554_v2, %s2696_s0 }
 0x4d2   :  { %v3204_v36 = vpop.permute.xlu2 %558 }
 0x4d3   :  { %2397 = vmatmul.msk.f32.vlgmr.msrb.gmra.mxu2 %vm254_vm12, %v3204_v36  ;;  %2398 = vmatmul.msk.f32.vlgmr.msrb.gmra.mxu3 %vm254_vm12, %v3204_v36 }
 0x4d4   :  { %970 = vmatpush.msrb.mxu2 %v2812_v9  ;;  %990 = vmatpush.msrb.mxu3 %v2817_v10 }
 0x4d6   :  { %971 = vmatpush.msrb.mxu2 %v2829_v12  ;;  %991 = vmatpush.msrb.mxu3 %v2834_v13 }
 0x4d8   :  { %972 = vmatpush.msrb.mxu2 %v2841_v14  ;;  %992 = vmatpush.msrb.mxu3 %v2846_v15 }
 0x4da   :  { %973 = vmatpush.msrb.mxu2 %v2853_v16  ;;  %993 = vmatpush.msrb.mxu3 %v2858_v17 }
 0x4dc   :  { %974 = vmatpush.msrb.mxu2 %v2867_v18  ;;  %994 = vmatpush.msrb.mxu3 %v2872_v19 }
 0x4de   :  { %975 = vmatpush.msrb.mxu2 %v2888_v21  ;;  %995 = vmatpush.msrb.mxu3 %v2893_v22 }
 0x4e0   :  { %976 = vmatpush.msrb.mxu2 %v2900_v23  ;;  %996 = vmatpush.msrb.mxu3 %v2905_v24 }
 0x4e2   :  { %977 = vmatpush.msrb.mxu2 %v2912_v25  ;;  %997 = vmatpush.msrb.mxu3 %v2917_v26 }
 0x556   :  { %v579_v9 = vpop.f32.mrf.mxu2  ;;  %v599_v10 = vpop.f32.mrf.mxu3 }
 0x557   :  { %v602_v12 = vadd.f32 %v579_v9, %v555_v61  ;;  %v603_v13 = vadd.f32 %v599_v10, %v556_v62 }
 0x559   :  { %v2399_v14 = vmul.f32 -1.442695, %v602_v12  ;;  %v2400_v15 = vmul.f32 -1.442695, %v603_v13 }
 0x55b   :  { %2515 = vpow2.f32 %v2399_v14 }
 0x55c   :  { %2517 = vpow2.f32 %v2400_v15 }
 0x561   :  { %v2516_v16 = vpop.eup %2515 }
 0x562   :  { %v2518_v17 = vpop.eup %2517  ;;  %v610_v18 = vadd.f32 1.0, %v2516_v16 }
 0x563   :  { %v611_v19 = vadd.f32 1.0, %v2518_v17 }
 0x564   :  { %2519 = vrcp.f32 %v610_v18  ;;  %v623_v61 = vand.u32 2147483648, %v610_v18  ;;  %v621_v62 = vand.u32 2147483647, %v610_v18  ;;  %vm617_vm7 = vweird.f32 %v610_v18 }
 0x565   :  { %2521 = vrcp.f32 %v611_v19  ;;  %v638_v28 = vand.u32 2147483648, %v611_v19  ;;  %v636_v32 = vand.u32 2147483647, %v611_v19  ;;  %vm632_vm10 = vweird.f32 %v611_v19 }
 0x566   :  { %2523 = vtanh.f32 %v603_v13  ;;  %v624_v35 = vor.u32 1.1754944e-38, %v623_v61  ;;  %vm622_vm11 = vcmp.eq.f32.partialorder %v621_v62, 8.507059e+37 }
 0x567   :  { %v639_v31 = vor.u32 1.1754944e-38, %v638_v28  ;;  %vm637_vm14 = vcmp.eq.f32.partialorder %v636_v32, 8.507059e+37 }
 0x56a   :  { %v2520_v21 = vpop.eup %2519 }
 0x56b   :  { %v2522_v22 = vpop.eup %2521  ;;  %v613_v23 = vmul.f32 %v2520_v21, %v610_v18  ;;  %vm618_vm5 = vweird.f32 %v2520_v21 }
 0x56c   :  { %v628_v24 = vmul.f32 %v2522_v22, %v611_v19  ;;  %vm633_vm6 = vweird.f32 %v2522_v22  ;;  %vm619_vm9 = vmor %vm617_vm7, %vm618_vm5  ;;  %v2524_v8 = vpop.eup %2523 }
 0x56d   :  { %v614_v25 = vsub.f32 1.0, %v613_v23  ;;  %vm634_vm13 = vmor %vm632_vm10, %vm633_vm6 }
 0x56e   :  { %v629_v26 = vsub.f32 1.0, %v628_v24 }
 0x56f   :  { %v615_v38 = vmul.f32 %v2520_v21, %v614_v25 }
 0x570   :  { %v630_v6 = vmul.f32 %v2522_v22, %v629_v26 }
 0x571   :  { %v616_v33 = vadd.f32 %v2520_v21, %v615_v38 }
 0x572   :  { %v631_v7 = vadd.f32 %v2522_v22, %v630_v6 }
 0x573   :  { %v620_v20 = vsel %vm619_vm9, %v2520_v21, %v616_v33 }
 0x574   :  { %v625_v53 = vsel %vm622_vm11, %v624_v35, %v620_v20  ;;  %v635_v49 = vsel %vm634_vm13, %v2522_v22, %v631_v7 }
 0x575   :  { %v640_v54 = vsel %vm637_vm14, %v639_v31, %v635_v49  ;;  %v646_v5 = vmul.f32 %v625_v53, %v3200_v11 }
 0x576   :  { %v645_v55 = vsel %vm84_vm8, %v2524_v8, %v640_v54 }
 0x577   :  { %v647_v34 = vmul.f32 %v645_v55, %v625_v53 }
 0x579   :  { %649 = vrot.lane.b32.xlu0 %v647_v34, %s2696_s0 }
 0x5eb   :  { %v650_v30 = vpop.permute.xlu0 %649 }
 0x5ec   :  { %v652_v56 = vadd.f32 %v650_v30, %v646_v5  ;;  %v4078_v30 = vsel %vm3024_vm1, %v3052_v3, %v3013_v45 }
 0x5ee   :  { %2525 = vtanh.f32 %v652_v56 }
 0x5f4   :  { %v2526_v48 = vpop.eup %2525 }
 0x5f5   :  { %v654_v1 = vmul.f32 %v2526_v48, %v645_v55  ;;  %v4079_v48 = vsel %vm3028_vm2, %v3054_v4, %v3015_v46 }
 0x5f7   :  { %658 = vrot.lane.b32.xlu1 %v654_v1, %s2696_s0 }
 0x669   :  { %v3241_v2 = vpop.permute.xlu1 %658 }
 0x66a   :  { %2401 = vmatmul.msk.f32.vlgmr.msrb.gmra.mxu0 %vm254_vm12, %v3241_v2  ;;  %2402 = vmatmul.msk.f32.vlgmr.msrb.gmra.mxu1 %vm254_vm12, %v3241_v2 }
 0x6e7   :  { %v679_v9 = vpop.f32.mrf.mxu0  ;;  %v699_v10 = vpop.f32.mrf.mxu1 }
 0x6e8   :  { %v702_v11 = vadd.f32 %v679_v9, %v655_v63  ;;  %v703_v12 = vadd.f32 %v699_v10, %v656_v0 }
 0x6ea   :  { %v2403_v13 = vmul.f32 -1.442695, %v702_v11  ;;  %v2404_v14 = vmul.f32 -1.442695, %v703_v12 }
 0x6ec   :  { %2527 = vpow2.f32 %v2403_v13 }
 0x6ed   :  { %2529 = vpow2.f32 %v2404_v14 }
 0x6f2   :  { %v2528_v15 = vpop.eup %2527 }
 0x6f3   :  { %v2530_v16 = vpop.eup %2529  ;;  %v710_v17 = vadd.f32 1.0, %v2528_v15 }
 0x6f4   :  { %v711_v18 = vadd.f32 1.0, %v2530_v16 }
 0x6f5   :  { %2531 = vrcp.f32 %v710_v17  ;;  %v723_v23 = vand.u32 2147483648, %v710_v17  ;;  %v721_v60 = vand.u32 2147483647, %v710_v17  ;;  %vm717_vm4 = vweird.f32 %v710_v17 }
 0x6f6   :  { %2533 = vrcp.f32 %v711_v18  ;;  %v738_v0 = vand.u32 2147483648, %v711_v18  ;;  %v736_v25 = vand.u32 2147483647, %v711_v18  ;;  %vm732_vm6 = vweird.f32 %v711_v18 }
 0x6f7   :  { %2535 = vtanh.f32 %v703_v12  ;;  %v724_v61 = vor.u32 1.1754944e-38, %v723_v23  ;;  %vm722_vm7 = vcmp.eq.f32.partialorder %v721_v60, 8.507059e+37 }
 0x6f8   :  { %v739_v28 = vor.u32 1.1754944e-38, %v738_v0  ;;  %vm737_vm10 = vcmp.eq.f32.partialorder %v736_v25, 8.507059e+37 }
 0x6fb   :  { %v2532_v19 = vpop.eup %2531 }
 0x6fc   :  { %v2534_v21 = vpop.eup %2533  ;;  %v713_v51 = vmul.f32 %v2532_v19, %v710_v17  ;;  %vm718_vm15 = vweird.f32 %v2532_v19 }
 0x6fd   :  { %v728_v59 = vmul.f32 %v2534_v21, %v711_v18  ;;  %vm733_vm3 = vweird.f32 %v2534_v21  ;;  %vm719_vm5 = vmor %vm717_vm4, %vm718_vm15  ;;  %v2536_v6 = vpop.eup %2535 }
 0x6fe   :  { %v714_v63 = vsub.f32 1.0, %v713_v51  ;;  %vm734_vm9 = vmor %vm732_vm6, %vm733_vm3 }
 0x6ff   :  { %v729_v22 = vsub.f32 1.0, %v728_v59 }
 0x700   :  { %v715_v52 = vmul.f32 %v2532_v19, %v714_v63 }
 0x701   :  { %v730_v24 = vmul.f32 %v2534_v21, %v729_v22 }
 0x702   :  { %v716_v26 = vadd.f32 %v2532_v19, %v715_v52 }
 0x703   :  { %v731_v38 = vadd.f32 %v2534_v21, %v730_v24 }
 0x704   :  { %v720_v62 = vsel %vm719_vm5, %v2532_v19, %v716_v26 }
 0x705   :  { %v725_v32 = vsel %vm722_vm7, %v724_v61, %v720_v62  ;;  %v735_v33 = vsel %vm734_vm9, %v2534_v21, %v731_v38 }
 0x706   :  { %v740_v35 = vsel %vm737_vm10, %v739_v28, %v735_v33  ;;  %v746_v31 = vmul.f32 %v725_v32, %v652_v56 }
 0x707   :  { %v745_v7 = vsel %vm84_vm8, %v2536_v6, %v740_v35 }
 0x708   :  { %v747_v20 = vmul.f32 %v745_v7, %v725_v32 }
 0x70a   :  { %749 = vrot.lane.b32.xlu2 %v747_v20, %s2696_s0 }
 0x764   :  { %v750_v8 = vpop.permute.xlu2 %749 }
 0x765   :  { %v752_v53 = vadd.f32 %v750_v8, %v746_v31  ;;  %v4080_v31 = vsel %vm3024_vm1, %v3072_v27, %v3009_v40 }
 0x767   :  { %2537 = vtanh.f32 %v752_v53 }
 0x76d   :  { %v2538_v49 = vpop.eup %2537 }
 0x76e   :  { %v754_v54 = vmul.f32 %v2538_v49, %v745_v7 }
 0x770   :  { %758 = vrot.lane.b32.xlu0 %v754_v54, %s2696_s0 }
 0x7e2   :  { %v3261_v55 = vpop.permute.xlu0 %758 }
 0x7e3   :  { %2405 = vmatmul.msk.f32.vlgmr.msra.gmra.mxu2 %vm254_vm12, %v3261_v55  ;;  %2406 = vmatmul.msk.f32.vlgmr.msra.gmra.mxu3 %vm254_vm12, %v3261_v55 }
 0x866   :  { %v779_v34 = vpop.f32.mrf.mxu2  ;;  %v799_v5 = vpop.f32.mrf.mxu3 }
 0x867   :  { %v802_v56 = vadd.f32 %v779_v34, %v4078_v30  ;;  %v803_v1 = vadd.f32 %v799_v5, %v4079_v48 }
 0x869   :  { %v2407_v9 = vmul.f32 -1.442695, %v802_v56  ;;  %v2408_v10 = vmul.f32 -1.442695, %v803_v1 }
 0x86b   :  { %2539 = vpow2.f32 %v2407_v9 }
 0x86c   :  { %2541 = vpow2.f32 %v2408_v10 }
 0x871   :  { %v2540_v11 = vpop.eup %2539 }
 0x872   :  { %v2542_v12 = vpop.eup %2541  ;;  %v810_v13 = vadd.f32 1.0, %v2540_v11 }
 0x873   :  { %v811_v14 = vadd.f32 1.0, %v2542_v12 }
 0x874   :  { %2543 = vrcp.f32 %v810_v13  ;;  %v823_v19 = vand.u32 2147483648, %v810_v13  ;;  %v821_v4 = vand.u32 2147483647, %v810_v13  ;;  %vm817_vm14 = vweird.f32 %v810_v13 }
 0x875   :  { %2545 = vrcp.f32 %v811_v14  ;;  %v838_v21 = vand.u32 2147483648, %v811_v14  ;;  %v836_v59 = vand.u32 2147483647, %v811_v14  ;;  %vm832_vm3 = vweird.f32 %v811_v14 }
 0x876   :  { %2547 = vtanh.f32 %v803_v1  ;;  %v824_v22 = vor.u32 1.1754944e-38, %v823_v19  ;;  %vm822_vm4 = vcmp.eq.f32.partialorder %v821_v4, 8.507059e+37 }
 0x877   :  { %v839_v60 = vor.u32 1.1754944e-38, %v838_v21  ;;  %vm837_vm6 = vcmp.eq.f32.partialorder %v836_v59, 8.507059e+37 }
 0x87a   :  { %v2544_v15 = vpop.eup %2543 }
 0x87b   :  { %v2546_v16 = vpop.eup %2545  ;;  %v813_v45 = vmul.f32 %v2544_v15, %v810_v13  ;;  %vm818_vm11 = vweird.f32 %v2544_v15 }
 0x87c   :  { %v828_v3 = vmul.f32 %v2546_v16, %v811_v14  ;;  %vm833_vm13 = vweird.f32 %v2546_v16  ;;  %vm819_vm15 = vmor %vm817_vm14, %vm818_vm11  ;;  %v2548_v0 = vpop.eup %2547 }
 0x87d   :  { %v814_v17 = vsub.f32 1.0, %v813_v45  ;;  %vm834_vm5 = vmor %vm832_vm3, %vm833_vm13 }
 0x87e   :  { %v829_v18 = vsub.f32 1.0, %v828_v3 }
 0x87f   :  { %v815_v46 = vmul.f32 %v2544_v15, %v814_v17 }
 0x880   :  { %v830_v51 = vmul.f32 %v2546_v16, %v829_v18 }
 0x881   :  { %v816_v63 = vadd.f32 %v2544_v15, %v815_v46 }
 0x882   :  { %v831_v23 = vadd.f32 %v2546_v16, %v830_v51 }
 0x883   :  { %v820_v52 = vsel %vm819_vm15, %v2544_v15, %v816_v63 }
 0x884   :  { %v825_v24 = vsel %vm822_vm4, %v824_v22, %v820_v52  ;;  %v835_v25 = vsel %vm834_vm5, %v2546_v16, %v831_v23 }
 0x885   :  { %v840_v26 = vsel %vm837_vm6, %v839_v60, %v835_v25  ;;  %v846_v62 = vmul.f32 %v825_v24, %v752_v53  ;;  %v4081_v53 = vsel %vm3028_vm2, %v3074_v29, %v3011_v41 }
 0x886   :  { %v845_v61 = vsel %vm84_vm8, %v2548_v0, %v840_v26  ;;  %v4082_v26 = vsel %vm3024_vm1, %v3096_v44, %v3092_v42 }
 0x887   :  { %v847_v38 = vmul.f32 %v845_v61, %v825_v24 }
 0x889   :  { %849 = vrot.lane.b32.xlu1 %v847_v38, %s2696_s0  ;;  %v4083_v38 = vsel %vm3028_vm2, %v3098_v47, %v3094_v43 }
 0x8fb   :  { %v850_v28 = vpop.permute.xlu1 %849 }
 0x8fc   :  { %v852_v6 = vadd.f32 %v850_v28, %v846_v62 }
 0x8fe   :  { %2549 = vtanh.f32 %v852_v6 }
 0x904   :  { %v2550_v32 = vpop.eup %2549 }
 0x905   :  { %v854_v33 = vmul.f32 %v2550_v32, %v845_v61 }
 0x907   :  { %858 = vrot.lane.b32.xlu2 %v854_v33, %s2696_s0 }
 0x961   :  { %v3281_v35 = vpop.permute.xlu2 %858 }
 0x962   :  { %2409 = vmatmul.msk.f32.vlgmr.msra.gmra.mxu0 %vm254_vm12, %v3281_v35  ;;  %2410 = vmatmul.msk.f32.vlgmr.msra.gmra.mxu1 %vm254_vm12, %v3281_v35 }
 0x9df   :  { %v879_v7 = vpop.f32.mrf.mxu0  ;;  %v899_v20 = vpop.f32.mrf.mxu1 }
 0x9e0   :  { %v902_v8 = vadd.f32 %v879_v7, %v4080_v31  ;;  %v903_v49 = vadd.f32 %v899_v20, %v4081_v53 }
 0x9e2   :  { %v2411_v54 = vmul.f32 -1.442695, %v902_v8  ;;  %v2412_v34 = vmul.f32 -1.442695, %v903_v49 }
 0x9e4   :  { %2551 = vpow2.f32 %v2411_v54 }
 0x9e5   :  { %2553 = vpow2.f32 %v2412_v34 }
 0x9ea   :  { %v2552_v5 = vpop.eup %2551 }
 0x9eb   :  { %v2554_v30 = vpop.eup %2553  ;;  %v910_v56 = vadd.f32 1.0, %v2552_v5 }
 0x9ec   :  { %v911_v48 = vadd.f32 1.0, %v2554_v30 }
 0x9ed   :  { %2555 = vrcp.f32 %v910_v56  ;;  %v923_v12 = vand.u32 2147483648, %v910_v56  ;;  %v921_v29 = vand.u32 2147483647, %v910_v56  ;;  %vm917_vm10 = vweird.f32 %v910_v56 }
 0x9ee   :  { %2557 = vrcp.f32 %v911_v48  ;;  %v938_v13 = vand.u32 2147483648, %v911_v48  ;;  %v936_v15 = vand.u32 2147483647, %v911_v48  ;;  %vm932_vm13 = vweird.f32 %v911_v48 }
 0x9ef   :  { %2559 = vtanh.f32 %v903_v49  ;;  %v924_v45 = vor.u32 1.1754944e-38, %v923_v12  ;;  %vm922_vm14 = vcmp.eq.f32.partialorder %v921_v29, 8.507059e+37 }
 0x9f0   :  { %v939_v18 = vor.u32 1.1754944e-38, %v938_v13  ;;  %vm937_vm3 = vcmp.eq.f32.partialorder %v936_v15, 8.507059e+37  ;;  %v1104_v13 = vld [vmem:[%s4060_s4 + $0x70] sm:$0xff]  ;;  %v1102_v15 = vld [vmem:[%s4060_s4 + $0x60] sm:$0xff] }
 0x9f1   :  { %1138 = vmatpush.msrb.mxu0 %v1104_v13 }
 0x9f3   :  { %v2556_v1 = vpop.eup %2555  ;;  %1139 = vmatpush.msrb.mxu0 %v1102_v15 }
 0x9f4   :  { %v2558_v9 = vpop.eup %2557  ;;  %v913_v40 = vmul.f32 %v2556_v1, %v910_v56  ;;  %vm918_vm7 = vweird.f32 %v2556_v1 }
 0x9f5   :  { %v928_v27 = vmul.f32 %v2558_v9, %v911_v48  ;;  %vm933_vm9 = vweird.f32 %v2558_v9  ;;  %vm919_vm11 = vmor %vm917_vm10, %vm918_vm7  ;;  %v2560_v19 = vpop.eup %2559 }
 0x9f6   :  { %v914_v10 = vsub.f32 1.0, %v913_v40  ;;  %vm934_vm15 = vmor %vm932_vm13, %vm933_vm9 }
 0x9f7   :  { %v929_v11 = vsub.f32 1.0, %v928_v27 }
 0x9f8   :  { %v915_v41 = vmul.f32 %v2556_v1, %v914_v10 }
 0x9f9   :  { %v930_v14 = vmul.f32 %v2558_v9, %v929_v11 }
 0x9fa   :  { %v916_v16 = vadd.f32 %v2556_v1, %v915_v41 }
 0x9fb   :  { %v931_v3 = vadd.f32 %v2558_v9, %v930_v14  ;;  %v1105_v14 = vld [vmem:[%s4060_s4 + $0x78] sm:$0xff] }
 0x9fc   :  { %v920_v17 = vsel %vm919_vm11, %v2556_v1, %v916_v16  ;;  %1179 = vmatpush.msrb.mxu1 %v1105_v14  ;;  %v1103_v16 = vld [vmem:[%s4060_s4 + $0x68] sm:$0xff] }
 0x9fd   :  { %v925_v46 = vsel %vm922_vm14, %v924_v45, %v920_v17  ;;  %v935_v4 = vsel %vm934_vm15, %v2558_v9, %v931_v3  ;;  %v1100_v45 = vld [vmem:[%s4060_s4 + $0x50] sm:$0xff]  ;;  %v1101_v3 = vld [vmem:[%s4060_s4 + $0x58] sm:$0xff]  ;;  %v1098_v17 = vld [vmem:[%s4060_s4 + $0x40] sm:$0xff] }
 0x9fe   :  { %v940_v21 = vsel %vm937_vm3, %v939_v18, %v935_v4  ;;  %v946_v63 = vmul.f32 %v925_v46, %v852_v6  ;;  %1180 = vmatpush.msrb.mxu1 %v1103_v16  ;;  %v1099_v18 = vld [vmem:[%s4060_s4 + $0x48] sm:$0xff]  ;;  %1140 = vmatpush.msrb.mxu0 %v1100_v45  ;;  %v1094_v4 = vld [vmem:[%s4060_s4 + $0x20] sm:$0xff] }
 0x9ff   :  { %v945_v51 = vsel %vm84_vm8, %v2560_v19, %v940_v21  ;;  %v1096_v19 = vld [vmem:[%s4060_s4 + $0x30] sm:$0xff]  ;;  %v1095_v21 = vld [vmem:[%s4060_s4 + $0x28] sm:$0xff] }
 0xa00   :  { %v947_v59 = vmul.f32 %v945_v51, %v925_v46  ;;  %1181 = vmatpush.msrb.mxu1 %v1101_v3  ;;  %v1097_v46 = vld [vmem:[%s4060_s4 + $0x38] sm:$0xff]  ;;  %1141 = vmatpush.msrb.mxu0 %v1098_v17 }
 0xa02   :  { %949 = vrot.lane.b32.xlu0 %v947_v59, %s2696_s0  ;;  %1182 = vmatpush.msrb.mxu1 %v1099_v18  ;;  %v1093_v59 = vld [vmem:[%s4060_s4 + $0x18] sm:$0xff] }
 0xa03   :  { %1142 = vmatpush.msrb.mxu0 %v1096_v19 }
 0xa04   :  { %1183 = vmatpush.msrb.mxu1 %v1097_v46 }
 0xa05   :  { %1143 = vmatpush.msrb.mxu0 %v1094_v4 }
 0xa06   :  { %1184 = vmatpush.msrb.mxu1 %v1095_v21 }
 0xa08   :  { %1185 = vmatpush.msrb.mxu1 %v1093_v59 }
 0xa74   :  { %v950_v22 = vpop.permute.xlu0 %949 }
 0xa75   :  { %v3300_v23 = vadd.f32 %v950_v22, %v946_v63 }
 0xa77   :  { %2561 = vtanh.f32 %v3300_v23 }
 0xa7d   :  { %v2562_v52 = vpop.eup %2561 }
 0xa7e   :  { %v954_v60 = vmul.f32 %v2562_v52, %v945_v51  ;;  %v1092_v51 = vld [vmem:[%s4060_s4 + $0x10] sm:$0xff] }
 0xa7f   :  { %1144 = vmatpush.msrb.mxu0 %v1092_v51 }
 0xa80   :  { %958 = vrot.lane.b32.xlu1 %v954_v60, %s2696_s0 }
 0xaf2   :  { %v3304_v0 = vpop.permute.xlu1 %958 }
 0xaf3   :  { %2413 = vmatmul.msk.f32.vlgmr.msrb.gmra.mxu2 %vm254_vm12, %v3304_v0  ;;  %2414 = vmatmul.msk.f32.vlgmr.msrb.gmra.mxu3 %vm254_vm12, %v3304_v0 }
 0xb76   :  { %v979_v24 = vpop.f32.mrf.mxu2  ;;  %v999_v25 = vpop.f32.mrf.mxu3 }
 0xb77   :  { %v1002_v61 = vadd.f32 %v979_v24, %v4082_v26  ;;  %v1003_v62 = vadd.f32 %v999_v25, %v4083_v38  ;;  %v1090_v25 = vld [vmem:[%s4060_s4] sm:$0xff]  ;;  %v1091_v26 = vld [vmem:[%s4060_s4 + $0x8] sm:$0xff]  ;;  %v3383_v38 = vld [vmem:[%s4061_s5 + $0x70] sm:$0xff] }
 0xb78   :  { %1145 = vmatpush.msrb.mxu0 %v1090_v25  ;;  %1186 = vmatpush.msrb.mxu1 %v1091_v26 }
 0xb79   :  { %v2415_v28 = vmul.f32 -1.442695, %v1002_v61  ;;  %v2416_v6 = vmul.f32 -1.442695, %v1003_v62  ;;  %1244 = vmatpush.msra.mxu2 %v3383_v38 }
 0xb7a   :  { %1644 = vmatpush.msra.mxu0 %v3383_v38 }
 0xb7b   :  { %2563 = vpow2.f32 %v2415_v28  ;;  %v1067_v28 = vsel %vm119_vm0, %v3164_v37, %v3304_v0 }
 0xb7c   :  { %2565 = vpow2.f32 %v2416_v6  ;;  %v3400_v6 = vld [vmem:[%s4061_s5 + $0x60] sm:$0xff] }
 0xb7d   :  { %1245 = vmatpush.msra.mxu2 %v3400_v6  ;;  %1645 = vmatpush.msra.mxu0 %v3400_v6 }
 0xb81   :  { %v2564_v32 = vpop.eup %2563 }
 0xb82   :  { %v2566_v33 = vpop.eup %2565  ;;  %v1010_v7 = vadd.f32 1.0, %v2564_v32  ;;  %v3405_v32 = vld [vmem:[%s4061_s5 + $0x68] sm:$0xff] }
 0xb83   :  { %v1011_v20 = vadd.f32 1.0, %v2566_v33  ;;  %v3412_v33 = vld [vmem:[%s4061_s5 + $0x50] sm:$0xff] }
 0xb84   :  { %2567 = vrcp.f32 %v1010_v7  ;;  %v1023_v54 = vand.u32 2147483648, %v1010_v7  ;;  %v1021_v47 = vand.u32 2147483647, %v1010_v7  ;;  %vm1017_vm6 = vweird.f32 %v1010_v7  ;;  %1246 = vmatpush.msra.mxu2 %v3412_v33  ;;  %1646 = vmatpush.msra.mxu0 %v3412_v33 }
 0xb85   :  { %2569 = vrcp.f32 %v1011_v20  ;;  %v1038_v34 = vand.u32 2147483648, %v1011_v20  ;;  %v1036_v30 = vand.u32 2147483647, %v1011_v20  ;;  %vm1032_vm9 = vweird.f32 %v1011_v20 }
 0xb86   :  { %2571 = vtanh.f32 %v1003_v62  ;;  %v1024_v48 = vor.u32 1.1754944e-38, %v1023_v54  ;;  %vm1022_vm10 = vcmp.eq.f32.partialorder %v1021_v47, 8.507059e+37  ;;  %v3388_v62 = vld [vmem:[%s4061_s5 + $0x78] sm:$0xff]  ;;  %v3471_v54 = vld [vmem:[%s4061_s5 + $0x10] sm:$0xff]  ;;  %v3483_v47 = vld [vmem:[%s4061_s5] sm:$0xff] }
 0xb87   :  { %v1039_v40 = vor.u32 1.1754944e-38, %v1038_v34  ;;  %vm1037_vm13 = vcmp.eq.f32.partialorder %v1036_v30, 8.507059e+37  ;;  %1264 = vmatpush.msra.mxu3 %v3388_v62  ;;  %1664 = vmatpush.msra.mxu1 %v3388_v62  ;;  %v3488_v34 = vld [vmem:[%s4061_s5 + $0x8] sm:$0xff]  ;;  %v1069_v30 = vsel %vm119_vm0, %v3241_v2, %v3261_v55 }
 0xb89   :  { %1265 = vmatpush.msra.mxu3 %v3405_v32  ;;  %1665 = vmatpush.msra.mxu1 %v3405_v32 }
 0xb8a   :  { %v2568_v31 = vpop.eup %2567 }
 0xb8b   :  { %v2570_v8 = vpop.eup %2569  ;;  %v1013_v42 = vmul.f32 %v2568_v31, %v1010_v7  ;;  %vm1018_vm4 = vweird.f32 %v2568_v31  ;;  %v3417_v7 = vld [vmem:[%s4061_s5 + $0x58] sm:$0xff] }
 0xb8c   :  { %v1028_v44 = vmul.f32 %v2570_v8, %v1011_v20  ;;  %vm1033_vm5 = vweird.f32 %v2570_v8  ;;  %vm1019_vm7 = vmor %vm1017_vm6, %vm1018_vm4  ;;  %v2572_v27 = vpop.eup %2571  ;;  %v3424_v20 = vld [vmem:[%s4061_s5 + $0x40] sm:$0xff]  ;;  %1266 = vmatpush.msra.mxu3 %v3417_v7  ;;  %1666 = vmatpush.msra.mxu1 %v3417_v7 }
 0xb8d   :  { %v1014_v53 = vsub.f32 1.0, %v1013_v42  ;;  %vm1034_vm11 = vmor %vm1032_vm9, %vm1033_vm5  ;;  %v3443_v42 = vld [vmem:[%s4061_s5 + $0x38] sm:$0xff]  ;;  %1247 = vmatpush.msra.mxu2 %v3424_v20  ;;  %1647 = vmatpush.msra.mxu0 %v3424_v20 }
 0xb8e   :  { %v1029_v49 = vsub.f32 1.0, %v1028_v44  ;;  %v1068_v44 = vsel %vm119_vm0, %v3204_v36, %v3281_v35 }
 0xb8f   :  { %v1015_v43 = vmul.f32 %v2568_v31, %v1014_v53  ;;  %v3459_v53 = vld [vmem:[%s4061_s5 + $0x20] sm:$0xff] }
 0xb90   :  { %v1030_v5 = vmul.f32 %v2570_v8, %v1029_v49  ;;  %v3464_v49 = vld [vmem:[%s4061_s5 + $0x28] sm:$0xff] }
 0xb91   :  { %v1016_v56 = vadd.f32 %v2568_v31, %v1015_v43  ;;  %v3476_v43 = vld [vmem:[%s4061_s5 + $0x18] sm:$0xff] }
 0xb92   :  { %v1031_v1 = vadd.f32 %v2570_v8, %v1030_v5  ;;  %v4084_v5 = vmov 0.0  }
 0xb93   :  { %v1020_v9 = vsel %vm1019_vm7, %v2568_v31, %v1016_v56  ;;  %v3429_v31 = vld [vmem:[%s4061_s5 + $0x48] sm:$0xff]  ;;  %v1070_v56 = vsel %vm119_vm0, %v3261_v55, %v3241_v2  ;;  %v1071_v2 = vsel %vm119_vm0, %v3281_v35, %v3204_v36  ;;  %v1072_v36 = vsel %vm119_vm0, %v3304_v0, %v3164_v37  ;;  %v1212_v0 = vld [vmem:[%s4062_s6] sm:$0x3] }
 0xb94   :  { %v1025_v10 = vsel %vm1022_vm10, %v1024_v48, %v1020_v9  ;;  %v1035_v11 = vsel %vm1034_vm11, %v2570_v8, %v1031_v1  ;;  %v3438_v8 = vld [vmem:[%s4061_s5 + $0x30] sm:$0xff]  ;;  %1267 = vmatpush.msra.mxu3 %v3429_v31  ;;  %1667 = vmatpush.msra.mxu1 %v3429_v31  ;;  %v1214_v48 = vperm.slane %v1212_v0, 0  ;;  %v1215_v1 = vperm.slane %v1212_v0, 1 }
 0xb95   :  { %v1040_v12 = vsel %vm1037_vm13, %v1039_v40, %v1035_v11  ;;  %v1046_v63 = vmul.f32 %v1025_v10, %v3300_v23  ;;  %1248 = vmatpush.msra.mxu2 %v3438_v8  ;;  %1648 = vmatpush.msra.mxu0 %v3438_v8 }
 0xb96   :  { %v1045_v41 = vsel %vm84_vm8, %v2572_v27, %v1040_v12  ;;  %1268 = vmatpush.msra.mxu3 %v3443_v42  ;;  %1668 = vmatpush.msra.mxu1 %v3443_v42 }
 0xb97   :  { %v1047_v29 = vmul.f32 %v1045_v41, %v1025_v10  ;;  %1249 = vmatpush.msra.mxu2 %v3459_v53  ;;  %1649 = vmatpush.msra.mxu0 %v3459_v53 }
 0xb98   :  { %1269 = vmatpush.msra.mxu3 %v3464_v49  ;;  %1669 = vmatpush.msra.mxu1 %v3464_v49 }
 0xb99   :  { %1049 = vrot.lane.b32.xlu2 %v1047_v29, %s2696_s0  ;;  %1250 = vmatpush.msra.mxu2 %v3471_v54 }
 0xb9a   :  { %1270 = vmatpush.msra.mxu3 %v3476_v43  ;;  %1670 = vmatpush.msra.mxu1 %v3476_v43 }
 0xb9b   :  { %1251 = vmatpush.msra.mxu2 %v3483_v47  ;;  %1650 = vmatpush.msra.mxu0 %v3471_v54 }
 0xb9c   :  { %1271 = vmatpush.msra.mxu3 %v3488_v34  ;;  %1252 = vmatmul.f32.vlgmr.msra.gmra.mxu2 %v4084_v5 }
 0xb9d   :  { %1272 = vmatmul.f32.vlgmr.msra.gmra.mxu3 %v4084_v5  ;;  %1344 = vmatpush.msrb.mxu2 %v3383_v38 }
 0xb9e   :  { %1364 = vmatpush.msrb.mxu3 %v3388_v62  ;;  %1671 = vmatpush.msra.mxu1 %v3488_v34 }
 0xb9f   :  { %1345 = vmatpush.msrb.mxu2 %v3400_v6  ;;  %1651 = vmatpush.msra.mxu0 %v3483_v47 }
 0xba0   :  { %1365 = vmatpush.msrb.mxu3 %v3405_v32 }
 0xba1   :  { %1346 = vmatpush.msrb.mxu2 %v3412_v33 }
 0xba2   :  { %1366 = vmatpush.msrb.mxu3 %v3417_v7 }
 0xba3   :  { %1347 = vmatpush.msrb.mxu2 %v3424_v20 }
 0xba4   :  { %1367 = vmatpush.msrb.mxu3 %v3429_v31 }
 0xba5   :  { %1348 = vmatpush.msrb.mxu2 %v3438_v8 }
 0xba6   :  { %1368 = vmatpush.msrb.mxu3 %v3443_v42 }
 0xba7   :  { %1349 = vmatpush.msrb.mxu2 %v3459_v53 }
 0xba8   :  { %1369 = vmatpush.msrb.mxu3 %v3464_v49 }
 0xba9   :  { %1350 = vmatpush.msrb.mxu2 %v3471_v54 }
 0xbaa   :  { %1370 = vmatpush.msrb.mxu3 %v3476_v43 }
 0xbab   :  { %1351 = vmatpush.msrb.mxu2 %v3483_v47 }
 0xbac   :  { %1371 = vmatpush.msrb.mxu3 %v3488_v34 }
 0xbad   :  { %1444 = vmatpush.msra.mxu2 %v3383_v38 }
 0xbae   :  { %1464 = vmatpush.msra.mxu3 %v3388_v62 }
 0xbaf   :  { %1445 = vmatpush.msra.mxu2 %v3400_v6 }
 0xbb0   :  { %1465 = vmatpush.msra.mxu3 %v3405_v32 }
 0xbb1   :  { %1446 = vmatpush.msra.mxu2 %v3412_v33 }
 0xbb2   :  { %1466 = vmatpush.msra.mxu3 %v3417_v7 }
 0xbb3   :  { %1447 = vmatpush.msra.mxu2 %v3424_v20 }
 0xbb4   :  { %1467 = vmatpush.msra.mxu3 %v3429_v31 }
 0xbb5   :  { %1448 = vmatpush.msra.mxu2 %v3438_v8 }
 0xbb6   :  { %1468 = vmatpush.msra.mxu3 %v3443_v42 }
 0xbb7   :  { %1449 = vmatpush.msra.mxu2 %v3459_v53 }
 0xbb8   :  { %1469 = vmatpush.msra.mxu3 %v3464_v49 }
 0xbb9   :  { %1450 = vmatpush.msra.mxu2 %v3471_v54 }
 0xbba   :  { %1470 = vmatpush.msra.mxu3 %v3476_v43 }
 0xbbb   :  { %1451 = vmatpush.msra.mxu2 %v3483_v47 }
 0xbbc   :  { %1471 = vmatpush.msra.mxu3 %v3488_v34 }
 0xbf3   :  { %v1050_v22 = vpop.permute.xlu2 %1049 }
 0xbf4   :  { %v1052_v52 = vadd.f32 %v1050_v22, %v1046_v63 }
 0xbf6   :  { %2573 = vtanh.f32 %v1052_v52 }
 0xbfc   :  { %v2574_v60 = vpop.eup %2573 }
 0xbfd   :  { %v1054_v24 = vmul.f32 %v2574_v60, %v1045_v41 }
 0xbff   :  { %1056 = vrot.lane.b32.xlu0 %v1054_v24, %s2696_s0 }
 0xc71   :  { %v3373_v61 = vpop.permute.xlu0 %1056 }
 0xc72   :  { %v1066_v23 = vsel %vm119_vm0, %v3124_v39, %v3373_v61  ;;  %v1073_v37 = vsel %vm119_vm0, %v3373_v61, %v3124_v39 }
 0xc73   :  { %2417 = vmatmul.msk.f32.vlgmr.msrb.gmra.mxu0 %vm254_vm12, %v1066_v23  ;;  %2425 = vmatmul.msk.f32.vlgmr.msrb.gmra.mxu1 %vm254_vm12, %v1066_v23 }
 0xc74   :  { %1844 = vmatpush.msrb.mxu0 %v3383_v38  ;;  %1864 = vmatpush.msrb.mxu1 %v3388_v62 }
 0xc76   :  { %1845 = vmatpush.msrb.mxu0 %v3400_v6  ;;  %1865 = vmatpush.msrb.mxu1 %v3405_v32 }
 0xc78   :  { %1846 = vmatpush.msrb.mxu0 %v3412_v33  ;;  %1866 = vmatpush.msrb.mxu1 %v3417_v7 }
 0xc7a   :  { %1847 = vmatpush.msrb.mxu0 %v3424_v20  ;;  %1867 = vmatpush.msrb.mxu1 %v3429_v31 }
 0xc7b   :  { %2418 = vmatmul.msk.f32.gmra.mxu0 %vm254_vm12, %v1067_v28  ;;  %2426 = vmatmul.msk.f32.gmra.mxu1 %vm254_vm12, %v1067_v28 }
 0xc7c   :  { %1848 = vmatpush.msrb.mxu0 %v3438_v8  ;;  %1868 = vmatpush.msrb.mxu1 %v3443_v42 }
 0xc7e   :  { %1849 = vmatpush.msrb.mxu0 %v3459_v53  ;;  %1869 = vmatpush.msrb.mxu1 %v3464_v49 }
 0xc80   :  { %1850 = vmatpush.msrb.mxu0 %v3471_v54  ;;  %1870 = vmatpush.msrb.mxu1 %v3476_v43 }
 0xc82   :  { %1851 = vmatpush.msrb.mxu0 %v3483_v47  ;;  %1871 = vmatpush.msrb.mxu1 %v3488_v34 }
 0xc83   :  { %2419 = vmatmul.msk.f32.gmra.mxu0 %vm254_vm12, %v1068_v44  ;;  %2427 = vmatmul.msk.f32.gmra.mxu1 %vm254_vm12, %v1068_v44 }
 0xc8b   :  { %2420 = vmatmul.msk.f32.gmra.mxu0 %vm254_vm12, %v1069_v30  ;;  %2428 = vmatmul.msk.f32.gmra.mxu1 %vm254_vm12, %v1069_v30 }
 0xc93   :  { %2421 = vmatmul.msk.f32.gmra.mxu0 %vm254_vm12, %v1070_v56  ;;  %2429 = vmatmul.msk.f32.gmra.mxu1 %vm254_vm12, %v1070_v56 }
 0xc9b   :  { %2422 = vmatmul.msk.f32.gmra.mxu0 %vm254_vm12, %v1071_v2  ;;  %2430 = vmatmul.msk.f32.gmra.mxu1 %vm254_vm12, %v1071_v2 }
 0xca3   :  { %2423 = vmatmul.msk.f32.gmra.mxu0 %vm254_vm12, %v1072_v36  ;;  %2431 = vmatmul.msk.f32.gmra.mxu1 %vm254_vm12, %v1072_v36 }
 0xcab   :  { %2424 = vmatmul.msk.f32.gmra.mxu0 %vm254_vm12, %v1073_v37  ;;  %2432 = vmatmul.msk.f32.gmra.mxu1 %vm254_vm12, %v1073_v37 }
 0xcf0   :  { %v1147_v55 = vpop.f32.mrf.mxu0  ;;  %v1188_v35 = vpop.f32.mrf.mxu1 }
 0xcf1   :  { %v3652_v36 = vadd.f32 %v1214_v48, %v1147_v55  ;;  %v3654_v37 = vadd.f32 %v1215_v1, %v1188_v35 }
 0xcf8   :  { %v1150_v9 = vpop.f32.mrf.mxu0  ;;  %v1191_v40 = vpop.f32.mrf.mxu1 }
 0xcf9   :  { %v3580_v27 = vadd.f32 %v1214_v48, %v1150_v9  ;;  %v3582_v10 = vadd.f32 %v1215_v1, %v1191_v40  ;;  %v1253_v40 = vpop.f32.mrf.mxu2 }
 0xd00   :  { %v1153_v11 = vpop.f32.mrf.mxu0  ;;  %v1194_v39 = vpop.f32.mrf.mxu1 }
 0xd01   :  { %v3584_v12 = vadd.f32 %v1214_v48, %v1153_v11  ;;  %v3586_v41 = vadd.f32 %v1215_v1, %v1194_v39  ;;  %v1273_v11 = vpop.f32.mrf.mxu3 }
 0xd08   :  { %v1156_v29 = vpop.f32.mrf.mxu0  ;;  %v1197_v13 = vpop.f32.mrf.mxu1 }
 0xd09   :  { %v3588_v14 = vadd.f32 %v1214_v48, %v1156_v29  ;;  %v3590_v15 = vadd.f32 %v1215_v1, %v1197_v13 }
 0xd10   :  { %v1159_v16 = vpop.f32.mrf.mxu0  ;;  %v1200_v45 = vpop.f32.mrf.mxu1 }
 0xd11   :  { %v3592_v3 = vadd.f32 %v1214_v48, %v1159_v16  ;;  %v3594_v17 = vadd.f32 %v1215_v1, %v1200_v45 }
 0xd13   :  { %v1529_v18 = vsel %vm3024_vm1, %v3588_v14, %v3592_v3  ;;  %v1530_v19 = vsel %vm3028_vm2, %v3590_v15, %v3594_v17  ;;  %v1629_v46 = vsel %vm3024_vm1, %v3592_v3, %v3588_v14  ;;  %v1630_v4 = vsel %vm3028_vm2, %v3594_v17, %v3590_v15 }
 0xd18   :  { %v1162_v21 = vpop.f32.mrf.mxu0  ;;  %v1203_v51 = vpop.f32.mrf.mxu1 }
 0xd19   :  { %v3612_v59 = vadd.f32 %v1214_v48, %v1162_v21  ;;  %v3614_v63 = vadd.f32 %v1215_v1, %v1203_v51 }
 0xd1b   :  { %v1429_v22 = vsel %vm3024_vm1, %v3584_v12, %v3612_v59  ;;  %v1430_v52 = vsel %vm3028_vm2, %v3586_v41, %v3614_v63 }
 0xd20   :  { %v1165_v25 = vpop.f32.mrf.mxu0  ;;  %v1206_v26 = vpop.f32.mrf.mxu1 }
 0xd21   :  { %v3632_v61 = vadd.f32 %v1214_v48, %v1165_v25  ;;  %v3634_v23 = vadd.f32 %v1215_v1, %v1206_v26 }
 0xd23   :  { %v1329_v28 = vsel %vm3024_vm1, %v3580_v27, %v3632_v61  ;;  %v1330_v44 = vsel %vm3028_vm2, %v3582_v10, %v3634_v23 }
 0xd28   :  { %v1168_v56 = vpop.f32.mrf.mxu0  ;;  %v1209_v2 = vpop.f32.mrf.mxu1 }
 0xd29   :  { %v3656_v0 = vadd.f32 %v1214_v48, %v1168_v56  ;;  %v3658_v9 = vadd.f32 %v1215_v1, %v1209_v2 }
 0xd2b   :  { %v1234_v39 = vsel %vm3024_vm1, %v3652_v36, %v3656_v0  ;;  %v1235_v29 = vsel %vm3028_vm2, %v3654_v37, %v3658_v9 }
 0xd2c   :  { %v1276_v48 = vadd.f32 %v1253_v40, %v1234_v39  ;;  %v1277_v1 = vadd.f32 %v1273_v11, %v1235_v29 }
 0xd2e   :  { %v2433_v13 = vmul.f32 -1.442695, %v1276_v48  ;;  %v2434_v16 = vmul.f32 -1.442695, %v1277_v1 }
 0xd30   :  { %2575 = vpow2.f32 %v2433_v13 }
 0xd31   :  { %2577 = vpow2.f32 %v2434_v16 }
 0xd36   :  { %v2576_v45 = vpop.eup %2575 }
 0xd37   :  { %v2578_v21 = vpop.eup %2577  ;;  %v1284_v51 = vadd.f32 1.0, %v2576_v45 }
 0xd38   :  { %v1285_v25 = vadd.f32 1.0, %v2578_v21 }
 0xd39   :  { %2579 = vrcp.f32 %v1284_v51  ;;  %v1297_v35 = vand.u32 2147483648, %v1284_v51  ;;  %v1295_v11 = vand.u32 2147483647, %v1284_v51  ;;  %vm1291_vm3 = vweird.f32 %v1284_v51 }
 0xd3a   :  { %2581 = vrcp.f32 %v1285_v25  ;;  %v1312_v39 = vand.u32 2147483648, %v1285_v25  ;;  %v1310_v48 = vand.u32 2147483647, %v1285_v25  ;;  %vm1306_vm5 = vweird.f32 %v1285_v25 }
 0xd3b   :  { %2583 = vtanh.f32 %v1277_v1  ;;  %v1298_v16 = vor.u32 1.1754944e-38, %v1297_v35  ;;  %vm1296_vm6 = vcmp.eq.f32.partialorder %v1295_v11, 8.507059e+37 }
 0xd3c   :  { %vm1311_vm9 = vcmp.eq.f32.partialorder %v1310_v48, 8.507059e+37 }
 0xd3f   :  { %v2580_v26 = vpop.eup %2579 }
 0xd40   :  { %v2582_v56 = vpop.eup %2581  ;;  %v1287_v2 = vmul.f32 %v2580_v26, %v1284_v51  ;;  %vm1292_vm14 = vweird.f32 %v2580_v26 }
 0xd41   :  { %v1302_v55 = vmul.f32 %v2582_v56, %v1285_v25  ;;  %vm1307_vm15 = vweird.f32 %v2582_v56  ;;  %vm1293_vm4 = vmor %vm1291_vm3, %vm1292_vm14 }
 0xd42   :  { %v1288_v30 = vsub.f32 1.0, %v1287_v2  ;;  %vm1308_vm7 = vmor %vm1306_vm5, %vm1307_vm15  ;;  %v1313_v2 = vor.u32 1.1754944e-38, %v1312_v39 }
 0xd43   :  { %v1303_v5 = vsub.f32 1.0, %v1302_v55  ;;  %v2584_v55 = vpop.eup %2583 }
 0xd44   :  { %v1289_v40 = vmul.f32 %v2580_v26, %v1288_v30 }
 0xd45   :  { %v1304_v29 = vmul.f32 %v2582_v56, %v1303_v5 }
 0xd46   :  { %v1290_v13 = vadd.f32 %v2580_v26, %v1289_v40 }
 0xd47   :  { %v1305_v45 = vadd.f32 %v2582_v56, %v1304_v29 }
 0xd48   :  { %v1294_v21 = vsel %vm1293_vm4, %v2580_v26, %v1290_v13 }
 0xd49   :  { %v1299_v1 = vsel %vm1296_vm6, %v1298_v16, %v1294_v21  ;;  %v1309_v24 = vsel %vm1308_vm7, %v2582_v56, %v1305_v45 }
 0xd4a   :  { %v1314_v30 = vsel %vm1311_vm9, %v1313_v2, %v1309_v24  ;;  %v1320_v51 = vmul.f32 0.0, %v1299_v1 }
 0xd4b   :  { %v1319_v5 = vsel %vm84_vm8, %v2584_v55, %v1314_v30 }
 0xd4c   :  { %v1321_v60 = vmul.f32 %v1319_v5, %v1299_v1 }
 0xd4e   :  { %1323 = vrot.lane.b32.xlu1 %v1321_v60, %s2696_s0 }
 0xdc0   :  { %v1324_v40 = vpop.permute.xlu1 %1323 }
 0xdc1   :  { %v3679_v35 = vadd.f32 %v1324_v40, %v1320_v51 }
 0xdc3   :  { %2585 = vtanh.f32 %v3679_v35 }
 0xdc9   :  { %v2586_v25 = vpop.eup %2585 }
 0xdca   :  { %v1328_v26 = vmul.f32 %v2586_v25, %v1319_v5 }
 0xdcc   :  { %1332 = vrot.lane.b32.xlu2 %v1328_v26, %s2696_s0 }
 0xe26   :  { %v3683_v11 = vpop.permute.xlu2 %1332 }
 0xe27   :  { %2435 = vmatmul.msk.f32.vlgmr.msrb.gmra.mxu2 %vm254_vm12, %v3683_v11  ;;  %2436 = vmatmul.msk.f32.vlgmr.msrb.gmra.mxu3 %vm254_vm12, %v3683_v11 }
 0xe28   :  { %1544 = vmatpush.msrb.mxu2 %v3383_v38  ;;  %1564 = vmatpush.msrb.mxu3 %v3388_v62 }
 0xe2a   :  { %1545 = vmatpush.msrb.mxu2 %v3400_v6  ;;  %1565 = vmatpush.msrb.mxu3 %v3405_v32 }
 0xe2c   :  { %1546 = vmatpush.msrb.mxu2 %v3412_v33  ;;  %1566 = vmatpush.msrb.mxu3 %v3417_v7 }
 0xe2e   :  { %1547 = vmatpush.msrb.mxu2 %v3424_v20  ;;  %1567 = vmatpush.msrb.mxu3 %v3429_v31 }
 0xe30   :  { %1548 = vmatpush.msrb.mxu2 %v3438_v8  ;;  %1568 = vmatpush.msrb.mxu3 %v3443_v42 }
 0xe32   :  { %1549 = vmatpush.msrb.mxu2 %v3459_v53  ;;  %1569 = vmatpush.msrb.mxu3 %v3464_v49 }
 0xe34   :  { %1550 = vmatpush.msrb.mxu2 %v3471_v54  ;;  %1570 = vmatpush.msrb.mxu3 %v3476_v43 }
 0xe36   :  { %1551 = vmatpush.msrb.mxu2 %v3483_v47  ;;  %1571 = vmatpush.msrb.mxu3 %v3488_v34 }
 0xeaa   :  { %v1353_v60 = vpop.f32.mrf.mxu2  ;;  %v1373_v24 = vpop.f32.mrf.mxu3 }
 0xeab   :  { %v1376_v56 = vadd.f32 %v1353_v60, %v1329_v28  ;;  %v1377_v39 = vadd.f32 %v1373_v24, %v1330_v44 }
 0xead   :  { %v2437_v29 = vmul.f32 -1.442695, %v1376_v56  ;;  %v2438_v48 = vmul.f32 -1.442695, %v1377_v39 }
 0xeaf   :  { %2587 = vpow2.f32 %v2437_v29 }
 0xeb0   :  { %2589 = vpow2.f32 %v2438_v48 }
 0xeb5   :  { %v2588_v13 = vpop.eup %2587 }
 0xeb6   :  { %v2590_v16 = vpop.eup %2589  ;;  %v1384_v45 = vadd.f32 1.0, %v2588_v13 }
 0xeb7   :  { %v1385_v21 = vadd.f32 1.0, %v2590_v16 }
 0xeb8   :  { %2591 = vrcp.f32 %v1384_v45  ;;  %v1397_v51 = vand.u32 2147483648, %v1384_v45  ;;  %v1395_v44 = vand.u32 2147483647, %v1384_v45  ;;  %vm1391_vm13 = vweird.f32 %v1384_v45 }
 0xeb9   :  { %2593 = vrcp.f32 %v1385_v21  ;;  %v1412_v25 = vand.u32 2147483648, %v1385_v21  ;;  %v1410_v60 = vand.u32 2147483647, %v1385_v21  ;;  %vm1406_vm15 = vweird.f32 %v1385_v21 }
 0xeba   :  { %2595 = vtanh.f32 %v1377_v39  ;;  %v1398_v56 = vor.u32 1.1754944e-38, %v1397_v51  ;;  %vm1396_vm3 = vcmp.eq.f32.partialorder %v1395_v44, 8.507059e+37 }
 0xebb   :  { %v1413_v13 = vor.u32 1.1754944e-38, %v1412_v25  ;;  %vm1411_vm5 = vcmp.eq.f32.partialorder %v1410_v60, 8.507059e+37 }
 0xebe   :  { %v2592_v2 = vpop.eup %2591 }
 0xebf   :  { %v2594_v55 = vpop.eup %2593  ;;  %v1387_v1 = vmul.f32 %v2592_v2, %v1384_v45  ;;  %vm1392_vm10 = vweird.f32 %v2592_v2 }
 0xec0   :  { %v1402_v28 = vmul.f32 %v2594_v55, %v1385_v21  ;;  %vm1407_vm11 = vweird.f32 %v2594_v55  ;;  %vm1393_vm14 = vmor %vm1391_vm13, %vm1392_vm10  ;;  %v2596_v16 = vpop.eup %2595 }
 0xec1   :  { %v1388_v30 = vsub.f32 1.0, %v1387_v1  ;;  %vm1408_vm4 = vmor %vm1406_vm15, %vm1407_vm11 }
 0xec2   :  { %v1403_v5 = vsub.f32 1.0, %v1402_v28 }
 0xec3   :  { %v1389_v40 = vmul.f32 %v2592_v2, %v1388_v30 }
 0xec4   :  { %v1404_v26 = vmul.f32 %v2594_v55, %v1403_v5 }
 0xec5   :  { %v1390_v24 = vadd.f32 %v2592_v2, %v1389_v40 }
 0xec6   :  { %v1405_v29 = vadd.f32 %v2594_v55, %v1404_v26 }
 0xec7   :  { %v1394_v48 = vsel %vm1393_vm14, %v2592_v2, %v1390_v24 }
 0xec8   :  { %v1399_v39 = vsel %vm1396_vm3, %v1398_v56, %v1394_v48  ;;  %v1409_v1 = vsel %vm1408_vm4, %v2594_v55, %v1405_v29 }
 0xec9   :  { %v1414_v28 = vsel %vm1411_vm5, %v1413_v13, %v1409_v1  ;;  %v1420_v45 = vmul.f32 %v1399_v39, %v3679_v35 }
 0xeca   :  { %v1419_v30 = vsel %vm84_vm8, %v2596_v16, %v1414_v28 }
 0xecb   :  { %v1421_v5 = vmul.f32 %v1419_v30, %v1399_v39 }
 0xecd   :  { %1423 = vrot.lane.b32.xlu0 %v1421_v5, %s2696_s0 }
 0xf3f   :  { %v1424_v51 = vpop.permute.xlu0 %1423 }
 0xf40   :  { %v3719_v40 = vadd.f32 %v1424_v51, %v1420_v45 }
 0xf42   :  { %2597 = vtanh.f32 %v3719_v40 }
 0xf48   :  { %v2598_v21 = vpop.eup %2597 }
 0xf49   :  { %v1428_v2 = vmul.f32 %v2598_v21, %v1419_v30 }
 0xf4b   :  { %1432 = vrot.lane.b32.xlu1 %v1428_v2, %s2696_s0 }
 0xfbd   :  { %v3723_v55 = vpop.permute.xlu1 %1432 }
 0xfbe   :  { %2439 = vmatmul.msk.f32.vlgmr.msra.gmra.mxu2 %vm254_vm12, %v3723_v55  ;;  %2440 = vmatmul.msk.f32.vlgmr.msra.gmra.mxu3 %vm254_vm12, %v3723_v55 }
 0xfbf   :  { %1744 = vmatpush.msra.mxu2 %v3383_v38  ;;  %1764 = vmatpush.msra.mxu3 %v3388_v62 }
 0xfc1   :  { %1745 = vmatpush.msra.mxu2 %v3400_v6  ;;  %1765 = vmatpush.msra.mxu3 %v3405_v32 }
 0xfc3   :  { %1746 = vmatpush.msra.mxu2 %v3412_v33  ;;  %1766 = vmatpush.msra.mxu3 %v3417_v7 }
 0xfc5   :  { %1747 = vmatpush.msra.mxu2 %v3424_v20  ;;  %1767 = vmatpush.msra.mxu3 %v3429_v31 }
 0xfc7   :  { %1748 = vmatpush.msra.mxu2 %v3438_v8  ;;  %1768 = vmatpush.msra.mxu3 %v3443_v42 }
 0xfc9   :  { %1749 = vmatpush.msra.mxu2 %v3459_v53  ;;  %1769 = vmatpush.msra.mxu3 %v3464_v49 }
 0xfcb   :  { %1750 = vmatpush.msra.mxu2 %v3471_v54  ;;  %1770 = vmatpush.msra.mxu3 %v3476_v43 }
 0xfcd   :  { %1751 = vmatpush.msra.mxu2 %v3483_v47  ;;  %1771 = vmatpush.msra.mxu3 %v3488_v34 }
0x1041   :  { %v1453_v35 = vpop.f32.mrf.mxu2  ;;  %v1473_v44 = vpop.f32.mrf.mxu3 }
0x1042   :  { %v1476_v25 = vadd.f32 %v1453_v35, %v1429_v22  ;;  %v1477_v26 = vadd.f32 %v1473_v44, %v1430_v52 }
0x1044   :  { %v2441_v60 = vmul.f32 -1.442695, %v1476_v25  ;;  %v2442_v24 = vmul.f32 -1.442695, %v1477_v26 }
0x1046   :  { %2599 = vpow2.f32 %v2441_v60 }
0x1047   :  { %2601 = vpow2.f32 %v2442_v24 }
0x104c   :  { %v2600_v56 = vpop.eup %2599 }
0x104d   :  { %v2602_v29 = vpop.eup %2601  ;;  %v1484_v48 = vadd.f32 1.0, %v2600_v56 }
0x104e   :  { %v1485_v13 = vadd.f32 1.0, %v2602_v29 }
0x104f   :  { %2603 = vrcp.f32 %v1484_v48  ;;  %v1497_v5 = vand.u32 2147483648, %v1484_v48  ;;  %v1495_v52 = vand.u32 2147483647, %v1484_v48  ;;  %vm1491_vm9 = vweird.f32 %v1484_v48 }
0x1050   :  { %2605 = vrcp.f32 %v1485_v13  ;;  %v1512_v51 = vand.u32 2147483648, %v1485_v13  ;;  %v1510_v2 = vand.u32 2147483647, %v1485_v13  ;;  %vm1506_vm11 = vweird.f32 %v1485_v13 }
0x1051   :  { %2607 = vtanh.f32 %v1477_v26  ;;  %v1498_v44 = vor.u32 1.1754944e-38, %v1497_v5  ;;  %vm1496_vm13 = vcmp.eq.f32.partialorder %v1495_v52, 8.507059e+37 }
0x1052   :  { %v1513_v24 = vor.u32 1.1754944e-38, %v1512_v51  ;;  %vm1511_vm15 = vcmp.eq.f32.partialorder %v1510_v2, 8.507059e+37 }
0x1055   :  { %v2604_v16 = vpop.eup %2603 }
0x1056   :  { %v2606_v39 = vpop.eup %2605  ;;  %v1487_v1 = vmul.f32 %v2604_v16, %v1484_v48  ;;  %vm1492_vm6 = vweird.f32 %v2604_v16 }
0x1057   :  { %v1502_v22 = vmul.f32 %v2606_v39, %v1485_v13  ;;  %vm1507_vm7 = vweird.f32 %v2606_v39  ;;  %vm1493_vm10 = vmor %vm1491_vm9, %vm1492_vm6  ;;  %v2608_v56 = vpop.eup %2607 }
0x1058   :  { %v1488_v28 = vsub.f32 1.0, %v1487_v1  ;;  %vm1508_vm14 = vmor %vm1506_vm11, %vm1507_vm7 }
0x1059   :  { %v1503_v30 = vsub.f32 1.0, %v1502_v22 }
0x105a   :  { %v1489_v45 = vmul.f32 %v2604_v16, %v1488_v28 }
0x105b   :  { %v1504_v21 = vmul.f32 %v2606_v39, %v1503_v30 }
0x105c   :  { %v1490_v35 = vadd.f32 %v2604_v16, %v1489_v45 }
0x105d   :  { %v1505_v25 = vadd.f32 %v2606_v39, %v1504_v21 }
0x105e   :  { %v1494_v60 = vsel %vm1493_vm10, %v2604_v16, %v1490_v35 }
0x105f   :  { %v1499_v26 = vsel %vm1496_vm13, %v1498_v44, %v1494_v60  ;;  %v1509_v29 = vsel %vm1508_vm14, %v2606_v39, %v1505_v25 }
0x1060   :  { %v1514_v1 = vsel %vm1511_vm15, %v1513_v24, %v1509_v29  ;;  %v1520_v48 = vmul.f32 %v1499_v26, %v3719_v40 }
0x1061   :  { %v1519_v22 = vsel %vm84_vm8, %v2608_v56, %v1514_v1 }
0x1062   :  { %v1521_v28 = vmul.f32 %v1519_v22, %v1499_v26 }
0x1064   :  { %1523 = vrot.lane.b32.xlu2 %v1521_v28, %s2696_s0 }
0x10be   :  { %v1524_v30 = vpop.permute.xlu2 %1523 }
0x10bf   :  { %v3759_v5 = vadd.f32 %v1524_v30, %v1520_v48 }
0x10c1   :  { %2609 = vtanh.f32 %v3759_v5 }
0x10c7   :  { %v2610_v13 = vpop.eup %2609 }
0x10c8   :  { %v1528_v16 = vmul.f32 %v2610_v13, %v1519_v22 }
0x10ca   :  { %1532 = vrot.lane.b32.xlu0 %v1528_v16, %s2696_s0 }
0x113c   :  { %v3763_v39 = vpop.permute.xlu0 %1532 }
0x113d   :  { %2443 = vmatmul.msk.f32.vlgmr.msrb.gmra.mxu2 %vm254_vm12, %v3763_v39  ;;  %2444 = vmatmul.msk.f32.vlgmr.msrb.gmra.mxu3 %vm254_vm12, %v3763_v39 }
0x113e   :  { %1944 = vmatpush.msrb.mxu2 %v3383_v38  ;;  %1964 = vmatpush.msrb.mxu3 %v3388_v62 }
0x1140   :  { %1945 = vmatpush.msrb.mxu2 %v3400_v6  ;;  %1965 = vmatpush.msrb.mxu3 %v3405_v32 }
0x1142   :  { %1946 = vmatpush.msrb.mxu2 %v3412_v33  ;;  %1966 = vmatpush.msrb.mxu3 %v3417_v7 }
0x1144   :  { %1947 = vmatpush.msrb.mxu2 %v3424_v20  ;;  %1967 = vmatpush.msrb.mxu3 %v3429_v31 }
0x1146   :  { %1948 = vmatpush.msrb.mxu2 %v3438_v8  ;;  %1968 = vmatpush.msrb.mxu3 %v3443_v42 }
0x1148   :  { %1949 = vmatpush.msrb.mxu2 %v3459_v53  ;;  %1969 = vmatpush.msrb.mxu3 %v3464_v49 }
0x114a   :  { %1950 = vmatpush.msrb.mxu2 %v3471_v54  ;;  %1970 = vmatpush.msrb.mxu3 %v3476_v43 }
0x114c   :  { %1951 = vmatpush.msrb.mxu2 %v3483_v47  ;;  %1971 = vmatpush.msrb.mxu3 %v3488_v34 }
0x11c0   :  { %v1553_v38 = vpop.f32.mrf.mxu2  ;;  %v1573_v62 = vpop.f32.mrf.mxu3 }
0x11c1   :  { %v1576_v6 = vadd.f32 %v1553_v38, %v1529_v18  ;;  %v1577_v32 = vadd.f32 %v1573_v62, %v1530_v19 }
0x11c3   :  { %v2445_v33 = vmul.f32 -1.442695, %v1576_v6  ;;  %v2446_v7 = vmul.f32 -1.442695, %v1577_v32 }
0x11c5   :  { %2611 = vpow2.f32 %v2445_v33 }
0x11c6   :  { %2613 = vpow2.f32 %v2446_v7 }
0x11cb   :  { %v2612_v20 = vpop.eup %2611 }
0x11cc   :  { %v2614_v31 = vpop.eup %2613  ;;  %v1584_v8 = vadd.f32 1.0, %v2612_v20 }
0x11cd   :  { %v1585_v42 = vadd.f32 1.0, %v2614_v31 }
0x11ce   :  { %2615 = vrcp.f32 %v1584_v8  ;;  %v1597_v18 = vand.u32 2147483648, %v1584_v8  ;;  %v1595_v19 = vand.u32 2147483647, %v1584_v8  ;;  %vm1591_vm5 = vweird.f32 %v1584_v8 }
0x11cf   :  { %2617 = vrcp.f32 %v1585_v42  ;;  %v1612_v45 = vand.u32 2147483648, %v1585_v42  ;;  %v1610_v51 = vand.u32 2147483647, %v1585_v42  ;;  %vm1606_vm7 = vweird.f32 %v1585_v42 }
0x11d0   :  { %2619 = vtanh.f32 %v1577_v32  ;;  %v1598_v2 = vor.u32 1.1754944e-38, %v1597_v18  ;;  %vm1596_vm9 = vcmp.eq.f32.partialorder %v1595_v19, 8.507059e+37 }
0x11d1   :  { %v1613_v25 = vor.u32 1.1754944e-38, %v1612_v45  ;;  %vm1611_vm11 = vcmp.eq.f32.partialorder %v1610_v51, 8.507059e+37 }
0x11d4   :  { %v2616_v53 = vpop.eup %2615 }
0x11d5   :  { %v2618_v49 = vpop.eup %2617  ;;  %v1587_v54 = vmul.f32 %v2616_v53, %v1584_v8  ;;  %vm1592_vm3 = vweird.f32 %v2616_v53 }
0x11d6   :  { %v1602_v43 = vmul.f32 %v2618_v49, %v1585_v42  ;;  %vm1607_vm4 = vweird.f32 %v2618_v49  ;;  %vm1593_vm6 = vmor %vm1591_vm5, %vm1592_vm3  ;;  %v2620_v60 = vpop.eup %2619 }
0x11d7   :  { %v1588_v47 = vsub.f32 1.0, %v1587_v54  ;;  %vm1608_vm10 = vmor %vm1606_vm7, %vm1607_vm4 }
0x11d8   :  { %v1603_v34 = vsub.f32 1.0, %v1602_v43 }
0x11d9   :  { %v1589_v40 = vmul.f32 %v2616_v53, %v1588_v47 }
0x11da   :  { %v1604_v52 = vmul.f32 %v2618_v49, %v1603_v34 }
0x11db   :  { %v1590_v21 = vadd.f32 %v2616_v53, %v1589_v40 }
0x11dc   :  { %v1605_v35 = vadd.f32 %v2618_v49, %v1604_v52 }
0x11dd   :  { %v1594_v44 = vsel %vm1593_vm6, %v2616_v53, %v1590_v21 }
0x11de   :  { %v1599_v24 = vsel %vm1596_vm9, %v1598_v2, %v1594_v44  ;;  %v1609_v56 = vsel %vm1608_vm10, %v2618_v49, %v1605_v35 }
0x11df   :  { %v1614_v26 = vsel %vm1611_vm11, %v1613_v25, %v1609_v56  ;;  %v1620_v22 = vmul.f32 %v1599_v24, %v3759_v5 }
0x11e0   :  { %v1619_v29 = vsel %vm84_vm8, %v2620_v60, %v1614_v26 }
0x11e1   :  { %v1621_v1 = vmul.f32 %v1619_v29, %v1599_v24 }
0x11e3   :  { %1623 = vrot.lane.b32.xlu1 %v1621_v1, %s2696_s0 }
0x1255   :  { %v1624_v28 = vpop.permute.xlu1 %1623 }
0x1256   :  { %v1626_v48 = vadd.f32 %v1624_v28, %v1620_v22  ;;  %v4085_v28 = vsel %vm3024_vm1, %v3612_v59, %v3584_v12 }
0x1258   :  { %2621 = vtanh.f32 %v1626_v48 }
0x125e   :  { %v2622_v30 = vpop.eup %2621 }
0x125f   :  { %v1628_v13 = vmul.f32 %v2622_v30, %v1619_v29  ;;  %v4086_v30 = vsel %vm3028_vm2, %v3614_v63, %v3586_v41 }
0x1261   :  { %1632 = vrot.lane.b32.xlu2 %v1628_v13, %s2696_s0 }
0x12bb   :  { %v3800_v16 = vpop.permute.xlu2 %1632 }
0x12bc   :  { %2447 = vmatmul.msk.f32.vlgmr.msra.gmra.mxu0 %vm254_vm12, %v3800_v16  ;;  %2448 = vmatmul.msk.f32.vlgmr.msra.gmra.mxu1 %vm254_vm12, %v3800_v16 }
0x1339   :  { %v1653_v38 = vpop.f32.mrf.mxu0  ;;  %v1673_v62 = vpop.f32.mrf.mxu1 }
0x133a   :  { %v1676_v5 = vadd.f32 %v1653_v38, %v1629_v46  ;;  %v1677_v6 = vadd.f32 %v1673_v62, %v1630_v4 }
0x133c   :  { %v2449_v32 = vmul.f32 -1.442695, %v1676_v5  ;;  %v2450_v33 = vmul.f32 -1.442695, %v1677_v6 }
0x133e   :  { %2623 = vpow2.f32 %v2449_v32 }
0x133f   :  { %2625 = vpow2.f32 %v2450_v33 }
0x1344   :  { %v2624_v7 = vpop.eup %2623 }
0x1345   :  { %v2626_v20 = vpop.eup %2625  ;;  %v1684_v31 = vadd.f32 1.0, %v2624_v7 }
0x1346   :  { %v1685_v8 = vadd.f32 1.0, %v2626_v20 }
0x1347   :  { %2627 = vrcp.f32 %v1684_v31  ;;  %v1697_v54 = vand.u32 2147483648, %v1684_v31  ;;  %v1695_v17 = vand.u32 2147483647, %v1684_v31  ;;  %vm1691_vm15 = vweird.f32 %v1684_v31 }
0x1348   :  { %2629 = vrcp.f32 %v1685_v8  ;;  %v1712_v4 = vand.u32 2147483648, %v1685_v8  ;;  %v1710_v47 = vand.u32 2147483647, %v1685_v8  ;;  %vm1706_vm4 = vweird.f32 %v1685_v8 }
0x1349   :  { %2631 = vtanh.f32 %v1677_v6  ;;  %v1698_v18 = vor.u32 1.1754944e-38, %v1697_v54  ;;  %vm1696_vm5 = vcmp.eq.f32.partialorder %v1695_v17, 8.507059e+37 }
0x134a   :  { %v1713_v45 = vor.u32 1.1754944e-38, %v1712_v4  ;;  %vm1711_vm7 = vcmp.eq.f32.partialorder %v1710_v47, 8.507059e+37 }
0x134d   :  { %v2628_v42 = vpop.eup %2627 }
0x134e   :  { %v2630_v53 = vpop.eup %2629  ;;  %v1687_v14 = vmul.f32 %v2628_v42, %v1684_v31  ;;  %vm1692_vm13 = vweird.f32 %v2628_v42 }
0x134f   :  { %v1702_v3 = vmul.f32 %v2630_v53, %v1685_v8  ;;  %vm1707_vm14 = vweird.f32 %v2630_v53  ;;  %vm1693_vm3 = vmor %vm1691_vm15, %vm1692_vm13  ;;  %v2632_v52 = vpop.eup %2631 }
0x1350   :  { %v1688_v46 = vsub.f32 1.0, %v1687_v14  ;;  %vm1708_vm6 = vmor %vm1706_vm4, %vm1707_vm14 }
0x1351   :  { %v1703_v49 = vsub.f32 1.0, %v1702_v3 }
0x1352   :  { %v1689_v15 = vmul.f32 %v2628_v42, %v1688_v46 }
0x1353   :  { %v1704_v43 = vmul.f32 %v2630_v53, %v1703_v49 }
0x1354   :  { %v1690_v34 = vadd.f32 %v2628_v42, %v1689_v15 }
0x1355   :  { %v1705_v40 = vadd.f32 %v2630_v53, %v1704_v43 }
0x1356   :  { %v1694_v19 = vsel %vm1693_vm3, %v2628_v42, %v1690_v34 }
0x1357   :  { %v1699_v51 = vsel %vm1696_vm5, %v1698_v18, %v1694_v19  ;;  %v1709_v21 = vsel %vm1708_vm6, %v2630_v53, %v1705_v40 }
0x1358   :  { %v1714_v2 = vsel %vm1711_vm7, %v1713_v45, %v1709_v21  ;;  %v1720_v25 = vmul.f32 %v1699_v51, %v1626_v48 }
0x1359   :  { %v1719_v35 = vsel %vm84_vm8, %v2632_v52, %v1714_v2 }
0x135a   :  { %v1721_v44 = vmul.f32 %v1719_v35, %v1699_v51 }
0x135c   :  { %1723 = vrot.lane.b32.xlu0 %v1721_v44, %s2696_s0 }
0x13ce   :  { %v1724_v60 = vpop.permute.xlu0 %1723 }
0x13cf   :  { %v1726_v24 = vadd.f32 %v1724_v60, %v1720_v25  ;;  %v4087_v25 = vsel %vm3024_vm1, %v3632_v61, %v3580_v27 }
0x13d1   :  { %2633 = vtanh.f32 %v1726_v24 }
0x13d7   :  { %v2634_v56 = vpop.eup %2633 }
0x13d8   :  { %v1728_v26 = vmul.f32 %v2634_v56, %v1719_v35 }
0x13da   :  { %1732 = vrot.lane.b32.xlu1 %v1728_v26, %s2696_s0 }
0x144c   :  { %v3820_v29 = vpop.permute.xlu1 %1732 }
0x144d   :  { %2451 = vmatmul.msk.f32.vlgmr.msra.gmra.mxu2 %vm254_vm12, %v3820_v29  ;;  %2452 = vmatmul.msk.f32.vlgmr.msra.gmra.mxu3 %vm254_vm12, %v3820_v29 }
0x14d0   :  { %v1753_v1 = vpop.f32.mrf.mxu2  ;;  %v1773_v22 = vpop.f32.mrf.mxu3 }
0x14d1   :  { %v1776_v48 = vadd.f32 %v1753_v1, %v4085_v28  ;;  %v1777_v13 = vadd.f32 %v1773_v22, %v4086_v30 }
0x14d3   :  { %v2453_v38 = vmul.f32 -1.442695, %v1776_v48  ;;  %v2454_v62 = vmul.f32 -1.442695, %v1777_v13 }
0x14d5   :  { %2635 = vpow2.f32 %v2453_v38 }
0x14d6   :  { %2637 = vpow2.f32 %v2454_v62 }
0x14db   :  { %v2636_v5 = vpop.eup %2635 }
0x14dc   :  { %v2638_v6 = vpop.eup %2637  ;;  %v1784_v32 = vadd.f32 1.0, %v2636_v5 }
0x14dd   :  { %v1785_v33 = vadd.f32 1.0, %v2638_v6 }
0x14de   :  { %2639 = vrcp.f32 %v1784_v32  ;;  %v1797_v42 = vand.u32 2147483648, %v1784_v32  ;;  %v1795_v63 = vand.u32 2147483647, %v1784_v32  ;;  %vm1791_vm11 = vweird.f32 %v1784_v32 }
0x14df   :  { %2641 = vrcp.f32 %v1785_v33  ;;  %v1812_v53 = vand.u32 2147483648, %v1785_v33  ;;  %v1810_v3 = vand.u32 2147483647, %v1785_v33  ;;  %vm1806_vm14 = vweird.f32 %v1785_v33 }
0x14e0   :  { %2643 = vtanh.f32 %v1777_v13  ;;  %v1798_v49 = vor.u32 1.1754944e-38, %v1797_v42  ;;  %vm1796_vm15 = vcmp.eq.f32.partialorder %v1795_v63, 8.507059e+37 }
0x14e1   :  { %v1813_v17 = vor.u32 1.1754944e-38, %v1812_v53  ;;  %vm1811_vm4 = vcmp.eq.f32.partialorder %v1810_v3, 8.507059e+37 }
0x14e4   :  { %v2640_v7 = vpop.eup %2639 }
0x14e5   :  { %v2642_v20 = vpop.eup %2641  ;;  %v1787_v12 = vmul.f32 %v2640_v7, %v1784_v32  ;;  %vm1792_vm9 = vweird.f32 %v2640_v7 }
0x14e6   :  { %v1802_v59 = vmul.f32 %v2642_v20, %v1785_v33  ;;  %vm1807_vm10 = vweird.f32 %v2642_v20  ;;  %vm1793_vm13 = vmor %vm1791_vm11, %vm1792_vm9  ;;  %v2644_v4 = vpop.eup %2643 }
0x14e7   :  { %v1788_v31 = vsub.f32 1.0, %v1787_v12  ;;  %vm1808_vm3 = vmor %vm1806_vm14, %vm1807_vm10 }
0x14e8   :  { %v1803_v8 = vsub.f32 1.0, %v1802_v59 }
0x14e9   :  { %v1789_v41 = vmul.f32 %v2640_v7, %v1788_v31 }
0x14ea   :  { %v1804_v14 = vmul.f32 %v2642_v20, %v1803_v8 }
0x14eb   :  { %v1790_v46 = vadd.f32 %v2640_v7, %v1789_v41 }
0x14ec   :  { %v1805_v54 = vadd.f32 %v2642_v20, %v1804_v14 }
0x14ed   :  { %v1794_v15 = vsel %vm1793_vm13, %v2640_v7, %v1790_v46 }
0x14ee   :  { %v1799_v43 = vsel %vm1796_vm15, %v1798_v49, %v1794_v15  ;;  %v1809_v47 = vsel %vm1808_vm3, %v2642_v20, %v1805_v54 }
0x14ef   :  { %v1814_v34 = vsel %vm1811_vm4, %v1813_v17, %v1809_v47  ;;  %v1820_v19 = vmul.f32 %v1799_v43, %v1726_v24  ;;  %v4088_v24 = vsel %vm3028_vm2, %v3634_v23, %v3582_v10 }
0x14f0   :  { %v1819_v18 = vsel %vm84_vm8, %v2644_v4, %v1814_v34  ;;  %v3866_v4 = vld [vmem:[%s4063_s7] ss:$0 sm:$0xff] }
0x14f1   :  { %v1821_v40 = vmul.f32 %v1819_v18, %v1799_v43  ;;  %v3871_v43 = vsel %vm119_vm0, %v3800_v16, %v3820_v29 }
0x14f2   :  { %v2055_v47 = vmul.f32 %v3866_v4, %v3871_v43 }
0x14f3   :  { %1823 = vrot.lane.b32.xlu2 %v1821_v40, %s2696_s0 }
0x14f4   :  { %v2069_v34 = vsel %vm254_vm12, %v2055_v47, 0.0 }
0x154d   :  { %v1824_v45 = vpop.permute.xlu2 %1823 }
0x154e   :  { %v1826_v52 = vadd.f32 %v1824_v45, %v1820_v19  ;;  %v20_v45 = vstv %s4064_s8 }
0x154f   :  { %21 = vst [vmem:[#allocation2] sm:$0x1] %v20_v45 }
0x1550   :  { %2645 = vtanh.f32 %v1826_v52 }
0x1556   :  { %v2646_v51 = vpop.eup %2645 }
0x1557   :  { %v1828_v21 = vmul.f32 %v2646_v51, %v1819_v18  ;;  %v3879_v18 = vsel %vm119_vm0, %v3820_v29, %v3800_v16  ;;  %v4089_v51 = vsel %vm3024_vm1, %v3656_v0, %v3652_v36 }
0x1558   :  { %v2056_v40 = vmul.f32 %v3866_v4, %v3879_v18 }
0x1559   :  { %1832 = vrot.lane.b32.xlu0 %v1828_v21, %s2696_s0 }
0x155a   :  { %v2072_v19 = vsel %vm254_vm12, %v2056_v40, 0.0 }
0x15cb   :  { %v3840_v2 = vpop.permute.xlu0 %1832 }
0x15cc   :  { %2455 = vmatmul.msk.f32.vlgmr.msrb.gmra.mxu0 %vm254_vm12, %v3840_v2  ;;  %2456 = vmatmul.msk.f32.vlgmr.msrb.gmra.mxu1 %vm254_vm12, %v3840_v2 }
0x1649   :  { %v1853_v35 = vpop.f32.mrf.mxu0  ;;  %v1873_v44 = vpop.f32.mrf.mxu1 }
0x164a   :  { %v1876_v60 = vadd.f32 %v1853_v35, %v4087_v25  ;;  %v1877_v56 = vadd.f32 %v1873_v44, %v4088_v24  ;;  %v4090_v35 = vsel %vm3028_vm2, %v3658_v9, %v3654_v37 }
0x164c   :  { %v2457_v26 = vmul.f32 -1.442695, %v1876_v60  ;;  %v2458_v1 = vmul.f32 -1.442695, %v1877_v56 }
0x164e   :  { %2647 = vpow2.f32 %v2457_v26 }
0x164f   :  { %2649 = vpow2.f32 %v2458_v1 }
0x1654   :  { %v2648_v22 = vpop.eup %2647 }
0x1655   :  { %v2650_v28 = vpop.eup %2649  ;;  %v1884_v48 = vadd.f32 1.0, %v2648_v22 }
0x1656   :  { %v1885_v30 = vadd.f32 1.0, %v2650_v28 }
0x1657   :  { %2651 = vrcp.f32 %v1884_v48  ;;  %v1897_v6 = vand.u32 2147483648, %v1884_v48  ;;  %v1895_v23 = vand.u32 2147483647, %v1884_v48  ;;  %vm1891_vm7 = vweird.f32 %v1884_v48 }
0x1658   :  { %2653 = vrcp.f32 %v1885_v30  ;;  %v1912_v32 = vand.u32 2147483648, %v1885_v30  ;;  %v1910_v7 = vand.u32 2147483647, %v1885_v30  ;;  %vm1906_vm10 = vweird.f32 %v1885_v30 }
0x1659   :  { %2655 = vtanh.f32 %v1877_v56  ;;  %v1898_v12 = vor.u32 1.1754944e-38, %v1897_v6  ;;  %vm1896_vm11 = vcmp.eq.f32.partialorder %v1895_v23, 8.507059e+37 }
0x165a   :  { %v1913_v8 = vor.u32 1.1754944e-38, %v1912_v32  ;;  %vm1911_vm14 = vcmp.eq.f32.partialorder %v1910_v7, 8.507059e+37 }
0x165d   :  { %v2652_v13 = vpop.eup %2651 }
0x165e   :  { %v2654_v38 = vpop.eup %2653  ;;  %v1887_v27 = vmul.f32 %v2652_v13, %v1884_v48  ;;  %vm1892_vm5 = vweird.f32 %v2652_v13 }
0x165f   :  { %v1902_v61 = vmul.f32 %v2654_v38, %v1885_v30  ;;  %vm1907_vm6 = vweird.f32 %v2654_v38  ;;  %vm1893_vm9 = vmor %vm1891_vm7, %vm1892_vm5  ;;  %v2656_v42 = vpop.eup %2655 }
0x1660   :  { %v1888_v62 = vsub.f32 1.0, %v1887_v27  ;;  %vm1908_vm13 = vmor %vm1906_vm10, %vm1907_vm6 }
0x1661   :  { %v1903_v5 = vsub.f32 1.0, %v1902_v61 }
0x1662   :  { %v1889_v10 = vmul.f32 %v2652_v13, %v1888_v62 }
0x1663   :  { %v1904_v33 = vmul.f32 %v2654_v38, %v1903_v5 }
0x1664   :  { %v1890_v20 = vadd.f32 %v2652_v13, %v1889_v10 }
0x1665   :  { %v1905_v59 = vadd.f32 %v2654_v38, %v1904_v33 }
0x1666   :  { %v1894_v31 = vsel %vm1893_vm9, %v2652_v13, %v1890_v20 }
0x1667   :  { %v1899_v41 = vsel %vm1896_vm11, %v1898_v12, %v1894_v31  ;;  %v1909_v63 = vsel %vm1908_vm13, %v2654_v38, %v1905_v59 }
0x1668   :  { %v1914_v53 = vsel %vm1911_vm14, %v1913_v8, %v1909_v63  ;;  %v1920_v46 = vmul.f32 %v1899_v41, %v1826_v52  ;;  %v3917_v8 = vsel %vm119_vm0, %v3840_v2, %v3763_v39 }
0x1669   :  { %v1919_v14 = vsel %vm84_vm8, %v2656_v42, %v1914_v53  ;;  %v2057_v50 = vmul.f32 %v3866_v4, %v3917_v8 }
0x166a   :  { %v1921_v3 = vmul.f32 %v1919_v14, %v1899_v41 }
0x166b   :  { %v2075_v42 = vsel %vm254_vm12, %v2057_v50, 0.0 }
0x166c   :  { %1923 = vrot.lane.b32.xlu1 %v1921_v3, %s2696_s0 }
0x16de   :  { %v1924_v49 = vpop.permute.xlu1 %1923 }
0x16df   :  { %v3859_v54 = vadd.f32 %v1924_v49, %v1920_v46  ;;  %v3927_v46 = vsel %vm119_vm0, %v3763_v39, %v3840_v2 }
0x16e0   :  { %v2054_v49 = vmul.f32 %v3866_v4, %v3927_v46 }
0x16e1   :  { %2657 = vtanh.f32 %v3859_v54 }
0x16e7   :  { %v2658_v15 = vpop.eup %2657 }
0x16e8   :  { %v1928_v17 = vmul.f32 %v2658_v15, %v1919_v14  ;;  %v2066_v15 = vsel %vm254_vm12, %v2054_v49, 0.0 }
0x16ea   :  { %1932 = vrot.lane.b32.xlu2 %v1928_v17, %s2696_s0 }
0x1713   :  { %2070 = vadd.xlane.f32.xlu2 %v2069_v34 }
0x171b   :  { %2073 = vadd.xlane.f32.xlu2 %v2072_v19 }
0x1744   :  { %v3887_v52 = vpop.permute.xlu2 %1932 }
0x1745   :  { %2459 = vmatmul.msk.f32.vlgmr.msrb.gmra.mxu2 %vm254_vm12, %v3887_v52  ;;  %2460 = vmatmul.msk.f32.vlgmr.msrb.gmra.mxu3 %vm254_vm12, %v3887_v52  ;;  %v3909_v12 = vsel %vm119_vm0, %v3723_v55, %v3887_v52 }
0x1746   :  { %v2053_v59 = vmul.f32 %v3866_v4, %v3909_v12 }
0x1748   :  { %v2063_v31 = vsel %vm254_vm12, %v2053_v59, 0.0 }
0x17c8   :  { %v1953_v16 = vpop.f32.mrf.mxu2  ;;  %v1973_v29 = vpop.f32.mrf.mxu3 }
0x17c9   :  { %v1976_v21 = vadd.f32 %v1953_v16, %v4089_v51  ;;  %v1977_v44 = vadd.f32 %v1973_v29, %v4090_v35 }
0x17cb   :  { %v2461_v25 = vmul.f32 -1.442695, %v1976_v21  ;;  %v2462_v60 = vmul.f32 -1.442695, %v1977_v44  ;;  %v2697_v21 = vmov 0  }
0x17cc   :  { %2472 = vset.pattern.permute.xlu2 %v2697_v21  ;;  %2471 = vset.pattern.permute.xlu1 %v2697_v21 }
0x17cd   :  { %2659 = vpow2.f32 %v2461_v25  ;;  %2470 = vset.pattern.permute.xlu0 %v2697_v21 }
0x17ce   :  { %2661 = vpow2.f32 %v2462_v60 }
0x17d3   :  { %v2660_v24 = vpop.eup %2659 }
0x17d4   :  { %v2662_v56 = vpop.eup %2661  ;;  %v1984_v26 = vadd.f32 1.0, %v2660_v24 }
0x17d5   :  { %v1985_v1 = vadd.f32 1.0, %v2662_v56 }
0x17d6   :  { %2663 = vrcp.f32 %v1984_v26  ;;  %v1997_v48 = vand.u32 2147483648, %v1984_v26  ;;  %v1995_v9 = vand.u32 2147483647, %v1984_v26  ;;  %vm1991_vm15 = vweird.f32 %v1984_v26 }
0x17d7   :  { %2665 = vrcp.f32 %v1985_v1  ;;  %v2012_v30 = vand.u32 2147483648, %v1985_v1  ;;  %v2010_v38 = vand.u32 2147483647, %v1985_v1  ;;  %vm2006_vm4 = vweird.f32 %v1985_v1 }
0x17d8   :  { %2667 = vtanh.f32 %v1977_v44  ;;  %v1998_v61 = vor.u32 1.1754944e-38, %v1997_v48  ;;  %vm1996_vm5 = vcmp.eq.f32.partialorder %v1995_v9, 8.507059e+37  ;;  %v2474_v44 = vld [vmem:[#allocation2] ss:$0 sm:$0xff] }
0x17d9   :  { %v2013_v6 = vor.u32 1.1754944e-38, %v2012_v30  ;;  %vm2011_vm7 = vcmp.eq.f32.partialorder %v2010_v38, 8.507059e+37 }
0x17dc   :  { %v2664_v57 = vpop.eup %2663 }
0x17dd   :  { %v2666_v22 = vpop.eup %2665  ;;  %v1987_v36 = vmul.f32 %v2664_v57, %v1984_v26  ;;  %vm1992_vm1 = vweird.f32 %v2664_v57 }
0x17de   :  { %v2002_v0 = vmul.f32 %v2666_v22, %v1985_v1  ;;  %vm2007_vm2 = vweird.f32 %v2666_v22  ;;  %vm1993_vm3 = vmor %vm1991_vm15, %vm1992_vm1  ;;  %v2668_v10 = vpop.eup %2667 }
0x17df   :  { %v1988_v28 = vsub.f32 1.0, %v1987_v36  ;;  %vm2008_vm6 = vmor %vm2006_vm4, %vm2007_vm2 }
0x17e0   :  { %v2003_v58 = vsub.f32 1.0, %v2002_v0 }
0x17e1   :  { %v1989_v37 = vmul.f32 %v2664_v57, %v1988_v28 }
0x17e2   :  { %v2004_v13 = vmul.f32 %v2666_v22, %v2003_v58 }
0x17e3   :  { %v1990_v27 = vadd.f32 %v2664_v57, %v1989_v37 }
0x17e4   :  { %v2005_v62 = vadd.f32 %v2666_v22, %v2004_v13 }
0x17e5   :  { %v1994_v5 = vsel %vm1993_vm3, %v2664_v57, %v1990_v27 }
0x17e6   :  { %v1999_v23 = vsel %vm1996_vm5, %v1998_v61, %v1994_v5  ;;  %v2009_v32 = vsel %vm2008_vm6, %v2666_v22, %v2005_v62 }
0x17e7   :  { %v2014_v33 = vsel %vm2011_vm7, %v2013_v6, %v2009_v32  ;;  %v2020_v41 = vmul.f32 %v1999_v23, %v3859_v54  ;;  %v3935_v54 = vsel %vm119_vm0, %v3887_v52, %v3723_v55  ;;  %v2071_v52 = vpop.xlane.xlu2 %2070 }
0x17e8   :  { %v2019_v7 = vsel %vm84_vm8, %v2668_v10, %v2014_v33  ;;  %v2058_v17 = vmul.f32 %v3866_v4, %v3935_v54  ;;  %vm2096_vm8 = vcmask 7168  }
0x17e9   :  { %v2021_v20 = vmul.f32 %v2019_v7, %v1999_v23 }
0x17ea   :  { %v2078_v47 = vsel %vm254_vm12, %v2058_v17, 0.0 }
0x17eb   :  { %2023 = vrot.lane.b32.xlu0 %v2021_v20, %s2696_s0 }
0x17ef   :  { %v2074_v16 = vpop.xlane.xlu2 %2073 }
0x17f0   :  { %v2092_v24 = vadd.f32 %v2474_v44, %v2074_v16 }
0x17f2   :  { %v2101_v0 = vsel %vm2096_vm8, %v2092_v24, -inf }
0x1815   :  { %2064 = vadd.xlane.f32.xlu0 %v2063_v31 }
0x181d   :  { %2076 = vadd.xlane.f32.xlu0 %v2075_v42 }
0x185d   :  { %v2024_v63 = vpop.permute.xlu0 %2023 }
0x185e   :  { %v2026_v53 = vadd.f32 %v2024_v63, %v2020_v41 }
0x1860   :  { %2669 = vtanh.f32 %v2026_v53 }
0x1866   :  { %v2670_v14 = vpop.eup %2669 }
0x1867   :  { %v2028_v3 = vmul.f32 %v2670_v14, %v2019_v7 }
0x1869   :  { %2030 = vrot.lane.b32.xlu1 %v2028_v3, %s2696_s0 }
0x1888   :  { %v2065_v29 = vpop.xlane.xlu0 %2064 }
0x1889   :  { %v2089_v1 = vadd.f32 %v2474_v44, %v2065_v29 }
0x188b   :  { %v2098_v30 = vsel %vm2096_vm8, %v2089_v1, -inf }
0x1890   :  { %v2077_v25 = vpop.xlane.xlu0 %2076 }
0x1891   :  { %v2093_v56 = vadd.f32 %v2474_v44, %v2077_v25 }
0x1893   :  { %2067 = vadd.xlane.f32.xlu1 %v2066_v15  ;;  %v2103_v28 = vsel %vm2096_vm8, %v2093_v56, -inf }
0x1894   :  { %v2104_v27 = vmax.f32 %v2098_v30, %v2103_v28 }
0x189b   :  { %2079 = vadd.xlane.f32.xlu1 %v2078_v47 }
0x18db   :  { %v2031_v34 = vpop.permute.xlu1 %2030 }
0x18dc   :  { %v3942_v39 = vsel %vm119_vm0, %v3683_v11, %v2031_v34  ;;  %v3949_v55 = vsel %vm119_vm0, %v2031_v34, %v3683_v11 }
0x18dd   :  { %v2052_v2 = vmul.f32 %v3866_v4, %v3942_v39  ;;  %v2059_v19 = vmul.f32 %v3866_v4, %v3949_v55  ;;  %v2091_v4 = vadd.f32 %v2474_v44, %v2071_v52 }
0x18df   :  { %v2060_v40 = vsel %vm254_vm12, %v2052_v2, 0.0  ;;  %v2081_v45 = vsel %vm254_vm12, %v2059_v19, 0.0  ;;  %v2100_v9 = vsel %vm2096_vm8, %v2091_v4, -inf }
0x18e0   :  { %2061 = vadd.xlane.f32.xlu2 %v2060_v40 }
0x18e8   :  { %2082 = vadd.xlane.f32.xlu2 %v2081_v45 }
0x1906   :  { %v2068_v51 = vpop.xlane.xlu1 %2067 }
0x1907   :  { %v2090_v57 = vadd.f32 %v2474_v44, %v2068_v51 }
0x1909   :  { %v2099_v13 = vsel %vm2096_vm8, %v2090_v57, -inf }
0x190e   :  { %v2080_v11 = vpop.xlane.xlu1 %2079 }
0x190f   :  { %v2094_v26 = vadd.f32 %v2474_v44, %v2080_v11 }
0x1911   :  { %v2105_v58 = vsel %vm2096_vm8, %v2094_v26, -inf }
0x1912   :  { %v2106_v61 = vmax.f32 %v2099_v13, %v2105_v58  ;;  %v2230_v13 = vld [vmem:[%s4066_s9 + $0x38] sm:$0xff] }
0x1913   :  { %2246 = vmatpush.msra.mxu0 %v2230_v13 }
0x1953   :  { %v2062_v35 = vpop.xlane.xlu2 %2061 }
0x1954   :  { %v2088_v60 = vadd.f32 %v2474_v44, %v2062_v35 }
0x1956   :  { %v2097_v22 = vsel %vm2096_vm8, %v2088_v60, -inf }
0x1957   :  { %v2102_v37 = vmax.f32 %v2097_v22, %v2101_v0 }
0x1959   :  { %v2109_v5 = vmax.f32 %v2102_v37, %v2104_v27  ;;  %v2228_v27 = vld [vmem:[%s4066_s9 + $0x28] sm:$0xff] }
0x195b   :  { %v2083_v36 = vpop.xlane.xlu2 %2082 }
0x195c   :  { %v2095_v48 = vadd.f32 %v2474_v44, %v2083_v36 }
0x195e   :  { %v2107_v38 = vsel %vm2096_vm8, %v2095_v48, -inf }
0x195f   :  { %v2108_v62 = vmax.f32 %v2100_v9, %v2107_v38  ;;  %v2229_v38 = vld [vmem:[%s4066_s9 + $0x30] sm:$0xff] }
0x1960   :  { %2247 = vmatpush.msra.mxu0 %v2229_v38 }
0x1961   :  { %v2110_v6 = vmax.f32 %v2106_v61, %v2108_v62  ;;  %v2227_v61 = vld [vmem:[%s4066_s9 + $0x20] sm:$0xff]  ;;  %v2226_v62 = vld [vmem:[%s4066_s9 + $0x18] sm:$0xff] }
0x1962   :  { %2248 = vmatpush.msra.mxu0 %v2228_v27  ;;  %v2338_v27 = vld [vmem:[%s4070_s13 + $0x38] sm:$0xff] }
0x1963   :  { %v2111_v10 = vmax.f32 %v2109_v5, %v2110_v6  ;;  %v2225_v5 = vld [vmem:[%s4066_s9 + $0x10] sm:$0xff]  ;;  %v2224_v6 = vld [vmem:[%s4066_s9 + $0x8] sm:$0xff]  ;;  %2354 = vmatpush.msra.mxu1 %v2338_v27 }
0x1964   :  { %2249 = vmatpush.msra.mxu0 %v2227_v61  ;;  %v2337_v61 = vld [vmem:[%s4070_s13 + $0x30] sm:$0xff] }
0x1965   :  { %v2112_v23 = vsub.f32 %v2088_v60, %v2111_v10  ;;  %v2113_v32 = vsub.f32 %v2089_v1, %v2111_v10  ;;  %v2114_v33 = vsub.f32 %v2090_v57, %v2111_v10  ;;  %v2115_v7 = vsub.f32 %v2091_v4, %v2111_v10  ;;  %2355 = vmatpush.msra.mxu1 %v2337_v61 }
0x1966   :  { %v2116_v20 = vsub.f32 %v2092_v24, %v2111_v10  ;;  %v2117_v42 = vsub.f32 %v2093_v56, %v2111_v10  ;;  %v2118_v63 = vsub.f32 %v2094_v26, %v2111_v10  ;;  %v2119_v14 = vsub.f32 %v2095_v48, %v2111_v10  ;;  %2250 = vmatpush.msra.mxu0 %v2226_v62 }
0x1967   :  { %v2120_v59 = vmul.f32 1.442695, %v2112_v23  ;;  %v2122_v31 = vmul.f32 1.442695, %v2113_v32  ;;  %v2124_v50 = vmul.f32 1.442695, %v2114_v33 }
0x1968   :  { %v2126_v41 = vmul.f32 1.442695, %v2115_v7  ;;  %v2128_v53 = vmul.f32 1.442695, %v2116_v20  ;;  %v2130_v3 = vmul.f32 1.442695, %v2117_v42  ;;  %2251 = vmatpush.msra.mxu0 %v2225_v5 }
0x1969   :  { %2671 = vpow2.f32 %v2120_v59  ;;  %v2132_v49 = vmul.f32 1.442695, %v2118_v63  ;;  %v2134_v47 = vmul.f32 1.442695, %v2119_v14  ;;  %v2223_v23 = vld [vmem:[%s4066_s9] sm:$0xff]  ;;  %v2336_v5 = vld [vmem:[%s4070_s13 + $0x28] sm:$0xff] }
0x196a   :  { %2673 = vpow2.f32 %v2122_v31  ;;  %2252 = vmatpush.msra.mxu0 %v2224_v6  ;;  %2356 = vmatpush.msra.mxu1 %v2336_v5  ;;  %v2335_v6 = vld [vmem:[%s4070_s13 + $0x20] sm:$0xff] }
0x196b   :  { %2675 = vpow2.f32 %v2124_v50 }
0x196c   :  { %2677 = vpow2.f32 %v2126_v41  ;;  %2253 = vmatpush.msra.mxu0 %v2223_v23  ;;  %2357 = vmatpush.msra.mxu1 %v2335_v6 }
0x196d   :  { %2679 = vpow2.f32 %v2128_v53 }
0x196e   :  { %2681 = vpow2.f32 %v2130_v3 }
0x196f   :  { %v2672_v15 = vpop.eup %2671  ;;  %2683 = vpow2.f32 %v2132_v49 }
0x1970   :  { %v2674_v17 = vpop.eup %2673  ;;  %v2136_v34 = vsel %vm2096_vm8, %v2672_v15, 0.0  ;;  %2685 = vpow2.f32 %v2134_v47 }
0x1971   :  { %v2676_v2 = vpop.eup %2675  ;;  %v2137_v40 = vsel %vm2096_vm8, %v2674_v17, 0.0 }
0x1972   :  { %v2678_v19 = vpop.eup %2677  ;;  %v2138_v45 = vadd.f32 %v2137_v40, %v2136_v34  ;;  %v2139_v52 = vsel %vm2096_vm8, %v2676_v2, 0.0 }
0x1973   :  { %v2680_v16 = vpop.eup %2679  ;;  %v2141_v51 = vsel %vm2096_vm8, %v2678_v19, 0.0 }
0x1974   :  { %v2140_v29 = vadd.f32 %v2139_v52, %v2138_v45  ;;  %v2682_v21 = vpop.eup %2681  ;;  %v2143_v44 = vsel %vm2096_vm8, %v2680_v16, 0.0 }
0x1975   :  { %v2684_v25 = vpop.eup %2683  ;;  %v2145_v60 = vsel %vm2096_vm8, %v2682_v21, 0.0 }
0x1976   :  { %v2142_v35 = vadd.f32 %v2141_v51, %v2140_v29  ;;  %v2686_v24 = vpop.eup %2685  ;;  %v2147_v26 = vsel %vm2096_vm8, %v2684_v25, 0.0 }
0x1977   :  { %v2149_v1 = vsel %vm2096_vm8, %v2686_v24, 0.0 }
0x1978   :  { %v2144_v11 = vadd.f32 %v2143_v44, %v2142_v35  ;;  %v2699_v44 = vmov 32.0  }
0x197a   :  { %v2146_v56 = vadd.f32 %v2145_v60, %v2144_v11 }
0x197c   :  { %v2148_v4 = vadd.f32 %v2147_v26, %v2146_v56 }
0x197e   :  { %v2150_v57 = vadd.f32 %v2149_v1, %v2148_v4 }
0x1980   :  { %2687 = vrcp.f32 %v2150_v57 }
0x1981   :  { %2689 = vrcp.f32 %v2699_v44 }
0x1986   :  { %v2688_v22 = vpop.eup %2687 }
0x1987   :  { %v2154_v36 = vmul.f32 %v2688_v22, %v2676_v2  ;;  %v2153_v0 = vmul.f32 %v2688_v22, %v2674_v17  ;;  %v2152_v28 = vmul.f32 %v2688_v22, %v2672_v15  ;;  %v2156_v58 = vmul.f32 %v2688_v22, %v2680_v16 }
0x1988   :  { %v2155_v48 = vmul.f32 %v2688_v22, %v2678_v19  ;;  %v2159_v37 = vmul.f32 %v2688_v22, %v2686_v24  ;;  %v2158_v9 = vmul.f32 %v2688_v22, %v2684_v25  ;;  %v2157_v30 = vmul.f32 %v2688_v22, %v2682_v21  ;;  %v2690_v25 = vpop.eup %2689 }
0x1989   :  { %2172 = vperm.xlu2 %2472, %v2154_v36   ;;  %2167 = vperm.xlu1 %2471, %v2153_v0   ;;  %v2264_v11 = vmul.f32 32.0, %v2690_v25  ;;  %vm2268_vm9 = vweird.f32 %v2690_v25 }
0x198a   :  { %2162 = vperm.xlu0 %2470, %v2152_v28  }
0x198b   :  { %v2265_v60 = vsub.f32 1.0, %v2264_v11 }
0x198d   :  { %v2266_v24 = vmul.f32 %v2690_v25, %v2265_v60 }
0x198f   :  { %v2267_v56 = vadd.f32 %v2690_v25, %v2266_v24 }
0x1991   :  { %2182 = vperm.xlu2 %2472, %v2156_v58   ;;  %2177 = vperm.xlu1 %2471, %v2155_v48   ;;  %v2269_v26 = vsel %vm2268_vm9, %v2690_v25, %v2267_v56 }
0x1992   :  { %2197 = vperm.xlu0 %2470, %v2159_v37  }
0x1999   :  { %2192 = vperm.xlu2 %2472, %v2158_v9   ;;  %2187 = vperm.xlu1 %2471, %v2157_v30  }
0x19e3   :  { %v2173_v10 = vpop.permute.xlu2 %2172 }
0x19e4   :  { %v2202_v42 = vmul.f32 %v2173_v10, %v3927_v46  ;;  %v2334_v10 = vld [vmem:[%s4070_s13 + $0x18] sm:$0xff] }
0x19e5   :  { %2358 = vmatpush.msra.mxu1 %v2334_v10 }
0x19e6   :  { %v2211_v14 = vsel %vm254_vm12, %v2202_v42, 0.0 }
0x19eb   :  { %v2183_v59 = vpop.permute.xlu2 %2182 }
0x19f3   :  { %v2193_v15 = vpop.permute.xlu2 %2192 }
0x19f4   :  { %v2206_v2 = vmul.f32 %v2193_v15, %v3935_v54  ;;  %v2475_v54 = vld [vmem:[%s4065_s10] ss:$0 sm:$0xff] }
0x19f6   :  { %v2219_v52 = vsel %vm254_vm12, %v2206_v2, 0.0  ;;  %v2477_v2 = vld [vmem:[%s4068_s12] ss:$0 sm:$0xff] }
0x19fb   :  { %v2168_v32 = vpop.permute.xlu1 %2167 }
0x19fc   :  { %v2201_v33 = vmul.f32 %v2168_v32, %v3909_v12  ;;  %v2163_v7 = vpop.permute.xlu0 %2162  ;;  %v2204_v12 = vmul.f32 %v2183_v59, %v3879_v18  ;;  %v2333_v32 = vld [vmem:[%s4070_s13 + $0x10] sm:$0xff] }
0x19fd   :  { %v2200_v20 = vmul.f32 %v2163_v7, %v3942_v39  ;;  %2359 = vmatpush.msra.mxu1 %v2333_v32 }
0x19fe   :  { %v2209_v31 = vsel %vm254_vm12, %v2201_v33, 0.0  ;;  %v2215_v34 = vsel %vm254_vm12, %v2204_v12, 0.0  ;;  %v2332_v33 = vld [vmem:[%s4070_s13 + $0x8] sm:$0xff] }
0x19ff   :  { %v2208_v50 = vsel %vm254_vm12, %v2200_v20, 0.0  ;;  %2360 = vmatpush.msra.mxu1 %v2332_v33 }
0x1a00   :  { %v2210_v41 = vadd.f32 %v2209_v31, %v2208_v50  ;;  %v2331_v31 = vld [vmem:[%s4070_s13] sm:$0xff] }
0x1a01   :  { %2361 = vmatpush.msra.mxu1 %v2331_v31 }
0x1a02   :  { %v2212_v49 = vadd.f32 %v2211_v14, %v2210_v41 }
0x1a03   :  { %v2178_v63 = vpop.permute.xlu1 %2177 }
0x1a04   :  { %v2203_v53 = vmul.f32 %v2178_v63, %v3871_v43  ;;  %v2198_v17 = vpop.permute.xlu0 %2197 }
0x1a05   :  { %v2207_v43 = vmul.f32 %v2198_v17, %v3949_v55 }
0x1a06   :  { %v2213_v3 = vsel %vm254_vm12, %v2203_v53, 0.0 }
0x1a07   :  { %v2214_v39 = vadd.f32 %v2213_v3, %v2212_v49  ;;  %v2221_v18 = vsel %vm254_vm12, %v2207_v43, 0.0 }
0x1a09   :  { %v2216_v40 = vadd.f32 %v2215_v34, %v2214_v39  ;;  %v2476_v39 = vld [vmem:[%s4067_s11] ss:$0 sm:$0xff] }
0x1a0b   :  { %v2188_v47 = vpop.permute.xlu1 %2187 }
0x1a0c   :  { %v2205_v46 = vmul.f32 %v2188_v47, %v3917_v8 }
0x1a0e   :  { %v2217_v19 = vsel %vm254_vm12, %v2205_v46, 0.0 }
0x1a0f   :  { %v2218_v45 = vadd.f32 %v2217_v19, %v2216_v40 }
0x1a11   :  { %v2220_v16 = vadd.f32 %v2219_v52, %v2218_v45 }
0x1a13   :  { %v2222_v29 = vadd.f32 %v2221_v18, %v2220_v16  ;;  %v2478_v18 = vld [vmem:[%s4069_s14] ss:$0 sm:$0xff] }
0x1a15   :  { %2463 = vmatmul.msk.f32.vlgmr.msra.gmra.mxu0 %vm254_vm12, %v2222_v29 }
0x1a92   :  { %v2255_v51 = vpop.f32.mrf.mxu0 }
0x1a93   :  { %v2256_v8 = vadd.f32 %v2475_v54, %v2255_v51 }
0x1a95   :  { %2298 = vrot.lane.b32.xlu1 %v2256_v8, %s2698_s25  ;;  %v2260_v55 = vsel %vm119_vm0, %v2256_v8, 0.0 }
0x1a96   :  { %2261 = vadd.xlane.f32.xlu0 %v2260_v55 }
0x1b07   :  { %v2299_v21 = vpop.permute.xlu1 %2298 }
0x1b08   :  { %v2301_v35 = vsel %vm119_vm0, %v2299_v21, 0.0 }
0x1b09   :  { %2302 = vadd.xlane.f32.xlu2 %v2301_v35  ;;  %v2262_v36 = vpop.xlane.xlu0 %2261 }
0x1b0a   :  { %v2270_v0 = vmul.f32 %v2269_v26, %v2262_v36 }
0x1b0c   :  { %v2271_v28 = vsub.f32 %v2256_v8, %v2270_v0 }
0x1b0e   :  { %v2272_v58 = vmul.f32 %v2271_v28, %v2271_v28 }
0x1b10   :  { %v2273_v48 = vsel %vm119_vm0, %v2272_v58, 0.0 }
0x1b7c   :  { %v2303_v4 = vpop.xlane.xlu2 %2302 }
0x1b7d   :  { %v2304_v1 = vmul.f32 %v2303_v4, %v2269_v26 }
0x1b7f   :  { %v2305_v57 = vsub.f32 %v2256_v8, %v2304_v1 }
0x1b81   :  { %v2306_v22 = vmul.f32 %v2305_v57, %v2305_v57 }
0x1b83   :  { %2308 = vrot.lane.b32.xlu1 %v2306_v22, %s2698_s25 }
0x1bad   :  { %2274 = vadd.xlane.f32.xlu1 %v2273_v48 }
0x1bf5   :  { %v2309_v37 = vpop.permute.xlu1 %2308 }
0x1bf6   :  { %v2311_v9 = vsel %vm119_vm0, %v2309_v37, 0.0 }
0x1bf7   :  { %2312 = vadd.xlane.f32.xlu2 %v2311_v9 }
0x1c20   :  { %v2275_v30 = vpop.xlane.xlu1 %2274 }
0x1c21   :  { %v2276_v13 = vmul.f32 %v2275_v30, %v2269_v26 }
0x1c23   :  { %v2277_v38 = vadd.f32 1e-05, %v2276_v13 }
0x1c25   :  { %2691 = vrsqrt.f32 %v2277_v38  ;;  %vm2284_vm11 = vweird.f32 %v2277_v38 }
0x1c2b   :  { %v2692_v62 = vpop.eup %2691 }
0x1c2c   :  { %v2279_v23 = vmul.f32 %v2692_v62, %v2277_v38  ;;  %vm2285_vm10 = vweird.f32 %v2692_v62 }
0x1c2d   :  { %vm2286_vm13 = vmor %vm2284_vm11, %vm2285_vm10 }
0x1c2e   :  { %v2280_v7 = vmul.f32 %v2692_v62, %v2279_v23 }
0x1c30   :  { %v2281_v42 = vmul.f32 0.5, %v2280_v7 }
0x1c32   :  { %v2282_v41 = vsub.f32 1.5, %v2281_v42 }
0x1c34   :  { %v2283_v53 = vmul.f32 %v2692_v62, %v2282_v41 }
0x1c36   :  { %v2287_v49 = vsel %vm2286_vm13, %v2692_v62, %v2283_v53 }
0x1c37   :  { %v2288_v17 = vmul.f32 %v2287_v49, %v2271_v28 }
0x1c39   :  { %v2292_v46 = vmul.f32 %v2476_v39, %v2288_v17 }
0x1c3b   :  { %v2296_v19 = vadd.f32 %v2477_v2, %v2292_v46 }
0x1c6a   :  { %v2313_v20 = vpop.xlane.xlu2 %2312 }
0x1c6b   :  { %v2314_v59 = vmul.f32 %v2313_v20, %v2269_v26 }
0x1c6d   :  { %v2315_v50 = vadd.f32 1e-05, %v2314_v59 }
0x1c6f   :  { %2693 = vrsqrt.f32 %v2315_v50  ;;  %vm2322_vm1 = vweird.f32 %v2315_v50 }
0x1c75   :  { %v2694_v63 = vpop.eup %2693 }
0x1c76   :  { %v2317_v14 = vmul.f32 %v2694_v63, %v2315_v50  ;;  %vm2323_vm14 = vweird.f32 %v2694_v63 }
0x1c77   :  { %vm2324_vm2 = vmor %vm2322_vm1, %vm2323_vm14 }
0x1c78   :  { %v2318_v3 = vmul.f32 %v2694_v63, %v2317_v14 }
0x1c7a   :  { %v2319_v12 = vmul.f32 0.5, %v2318_v3 }
0x1c7c   :  { %v2320_v15 = vsub.f32 1.5, %v2319_v12 }
0x1c7e   :  { %v2321_v47 = vmul.f32 %v2694_v63, %v2320_v15 }
0x1c80   :  { %v2325_v34 = vsel %vm2324_vm2, %v2694_v63, %v2321_v47 }
0x1c81   :  { %v2326_v40 = vmul.f32 %v2325_v34, %v2305_v57 }
0x1c83   :  { %v2327_v43 = vmul.f32 %v2476_v39, %v2326_v40 }
0x1c85   :  { %v2328_v45 = vadd.f32 %v2477_v2, %v2327_v43 }
0x1c87   :  { %v2329_v52 = vsel %vm119_vm0, %v2296_v19, %v2328_v45 }
0x1c88   :  { %v2330_v16 = vmax.f32 %v2329_v52, 0.0 }
0x1c8a   :  { %2464 = vmatmul.msk.f32.vlgmr.msra.gmra.mxu1 %vm254_vm12, %v2330_v16 }
0x1d07   :  { %v2363_v29 = vpop.f32.mrf.mxu1 }
0x1d08   :  { %v2364_v54 = vadd.f32 %v2478_v18, %v2363_v29 }
0x1d0a   :  { %2366 = vst [vmem:[%s4071_s15] sm:$0xff] %v2364_v54 }

</bundles_post_ra>
